<compile_context>
chip_gen: v7x
topology: tpu7x:2x2x1
jax: 0.10.0
libtpu: 0.0.40
codegen_flags: <defaults>
</compile_context>

<pallas_src>
import jax
import jax.numpy as jnp
from jax.experimental import pallas as pl
from jax.experimental.pallas import tpu as pltpu

LEAKY_SLOPE = 0.01   # nn.LeakyReLU default
BN_EPS = 1e-5        # nn.BatchNorm2d default


def _round_up(x, m):
    return ((x + m - 1) // m) * m


def _pick_tile(q_pad):
    """Largest lane tile <= 512 (multiple of 128) that divides q_pad."""
    for t in (512, 384, 256, 128):
        if q_pad % t == 0:
            return t
    return 128


# ---------------------------------------------------------------------------
# Pallas kernels
# ---------------------------------------------------------------------------
def _conv_block_kernel(x_ref, wt_ref, scale_ref, bias_ref, o_ref):
    """Fused Conv3x3 (merged-K matmul per pool position) + folded BN + LeakyReLU + 2x2 MaxPool.

    x_ref:  (4, K, q_tile)  bf16  im2col columns, K = 9*Cin (taps merged into contraction)
    wt_ref: (Cout, K)       bf16  conv weight, transposed (Cout on sublanes)
    scale_ref, bias_ref: (Cout, 1) f32  folded BatchNorm affine
    o_ref:  (Cout, q_tile)  f32   lane-dense output (q_tile multiple of 128)
    """
    wt = wt_ref[...]
    scale = scale_ref[...]
    bias = bias_ref[...]

    def act(p):
        y = jnp.dot(wt, x_ref[p], preferred_element_type=jnp.float32)
        y = y * scale + bias                          # folded BatchNorm (affine)
        return jnp.where(y >= 0, y, LEAKY_SLOPE * y)  # LeakyReLU(0.01)

    # MaxPool2d(2,2): the four pool positions are the leading axis of x_ref.
    o_ref[...] = jnp.maximum(jnp.maximum(act(0), act(1)),
                             jnp.maximum(act(2), act(3)))


def _mlp_kernel(xt_ref, w1t_ref, b1_ref, w2t_ref, b2_ref, ot_ref):
    """Fused Linear(3136,128) + LeakyReLU + Linear(128,10), transposed (batch on lanes).

    xt_ref:  (D_in, n_tile) bf16   flattened features (column = one sample)
    w1t_ref: (128, D_in)    bf16 ; b1_ref: (128, 1) f32
    w2t_ref: (10, 128)      f32  ; b2_ref: (10, 1)  f32
    ot_ref:  (10, n_tile)   f32
    """
    h = jnp.dot(w1t_ref[...], xt_ref[...], preferred_element_type=jnp.float32) + b1_ref[...]
    h = jnp.where(h >= 0, h, LEAKY_SLOPE * h)
    ot_ref[...] = jnp.dot(w2t_ref[...], h, preferred_element_type=jnp.float32) + b2_ref[...]


# ---------------------------------------------------------------------------
# JAX glue (im2col / tiling / parameter folding)
# ---------------------------------------------------------------------------
def _im2col_T(x):
    """x: (Cin, H, W, N) -> cols (4, 9*Cin, Q), Q ordered (oh, ow, n), K ordered (kh, kw, cin)."""
    cin, h, w, n = x.shape
    ho, wo = h // 2, w // 2
    q = ho * wo * n
    xp = jnp.pad(x, ((0, 0), (1, 1), (1, 1), (0, 0)))      # conv padding = 1
    taps = []
    for kh in range(3):
        for kw in range(3):
            s = xp[:, kh:kh + h, kw:kw + w, :]             # tap value at each conv-output pixel
            s = s.reshape(cin, ho, 2, wo, 2, n)
            s = jnp.transpose(s, (2, 4, 0, 1, 3, 5))       # (ph, pw, cin, oh, ow, n)
            taps.append(s.reshape(4, cin, q))
    cols = jnp.stack(taps, axis=1).reshape(4, 9 * cin, q)  # K index = (3*kh+kw)*cin + c
    return cols, q


def _conv_block(x, wt, scale, bias):
    """Conv2d(3x3,s1,p1) + folded-BN + LeakyReLU + MaxPool2d(2,2).

    x: (Cin, H, W, N) f32 -> (Cout, H/2, W/2, N) f32.
    """
    cin, h, w, n = x.shape
    ho, wo = h // 2, w // 2
    cout, k = wt.shape

    cols, q = _im2col_T(x)                                  # (4, 9*Cin, q)
    if k != 9 * cin:                                        # K padded for bf16 packing
        cols = jnp.pad(cols, ((0, 0), (0, k - 9 * cin), (0, 0)))
    q_pad = _round_up(q, 128)
    q_tile = _pick_tile(q_pad)
    if q_pad != q:
        cols = jnp.pad(cols, ((0, 0), (0, 0), (0, q_pad - q)))
    cols = cols.astype(jnp.bfloat16)

    flops = 2 * 4 * cout * k * q_pad
    bytes_accessed = cols.size * 2 + wt.size * 2 + cout * q_pad * 4 + 2 * cout * 4

    pooled = pl.pallas_call(
        _conv_block_kernel,
        out_shape=jax.ShapeDtypeStruct((cout, q_pad), jnp.float32),
        grid=(q_pad // q_tile,),
        in_specs=[
            pl.BlockSpec((4, k, q_tile), lambda i: (0, 0, i)),
            pl.BlockSpec((cout, k), lambda i: (0, 0)),
            pl.BlockSpec((cout, 1), lambda i: (0, 0)),
            pl.BlockSpec((cout, 1), lambda i: (0, 0)),
        ],
        out_specs=pl.BlockSpec((cout, q_tile), lambda i: (0, i)),
        compiler_params=pltpu.CompilerParams(dimension_semantics=("parallel",)),
        cost_estimate=pl.CostEstimate(flops=flops, transcendentals=0,
                                      bytes_accessed=bytes_accessed),
    )(cols, wt, scale, bias)

    return pooled[:, :q].reshape(cout, ho, wo, n)


def _mlp_head(feat_t, w1t, b1, w2t, b2):
    """feat_t: (D_in, N) f32 (feature order (c,h,w)) -> logits (N, 10) f32."""
    d_in, n = feat_t.shape
    d_h = w1t.shape[0]
    d_out = w2t.shape[0]

    n_pad = _round_up(n, 128)
    n_tile = _pick_tile(n_pad)
    if n_pad != n:
        feat_t = jnp.pad(feat_t, ((0, 0), (0, n_pad - n)))
    feat_t = feat_t.astype(jnp.bfloat16)

    flops = 2 * n_pad * (d_in * d_h + d_h * d_out)
    bytes_accessed = feat_t.size * 2 + w1t.size * 2 + w2t.size * 4 + d_out * n_pad * 4

    out_t = pl.pallas_call(
        _mlp_kernel,
        out_shape=jax.ShapeDtypeStruct((d_out, n_pad), jnp.float32),
        grid=(n_pad // n_tile,),
        in_specs=[
            pl.BlockSpec((d_in, n_tile), lambda j: (0, j)),
            pl.BlockSpec((d_h, d_in), lambda j: (0, 0)),
            pl.BlockSpec((d_h, 1), lambda j: (0, 0)),
            pl.BlockSpec((d_out, d_h), lambda j: (0, 0)),
            pl.BlockSpec((d_out, 1), lambda j: (0, 0)),
        ],
        out_specs=pl.BlockSpec((d_out, n_tile), lambda j: (0, j)),
        compiler_params=pltpu.CompilerParams(dimension_semantics=("parallel",)),
        cost_estimate=pl.CostEstimate(flops=flops, transcendentals=0,
                                      bytes_accessed=bytes_accessed),
    )(feat_t, w1t, b1, w2t, b2)

    return out_t[:, :n].T                                   # (N, 10)


def prepare_params(p):
    """One-time parameter folding: BN -> affine, conv/FC weight transposes, bf16 casts."""
    def fold_bn(conv_b, gamma, beta, mean, var):
        scale = gamma / jnp.sqrt(var + BN_EPS)
        bias = beta + (conv_b - mean) * scale
        return scale, bias

    def conv_wt(w):  # HWIO (3,3,cin,cout) -> (cout, K_pad) bf16, K ordered (kh,kw,cin)
        kh, kw, cin, cout = w.shape
        k = kh * kw * cin
        wt = jnp.transpose(w.reshape(k, cout))              # (cout, k)
        k_pad = _round_up(k, 16)                            # bf16 sublane packing
        if k_pad != k:
            wt = jnp.pad(wt, ((0, 0), (0, k_pad - k)))
        return wt.astype(jnp.bfloat16)

    s1, b1 = fold_bn(p["conv1_b"], p["bn1_gamma"], p["bn1_beta"], p["bn1_mean"], p["bn1_var"])
    s2, b2 = fold_bn(p["conv2_b"], p["bn2_gamma"], p["bn2_beta"], p["bn2_mean"], p["bn2_var"])

    return {
        "conv1_wt": conv_wt(p["conv1_w"]),
        "conv1_scale": s1.reshape(-1, 1).astype(jnp.float32),
        "conv1_bias": b1.reshape(-1, 1).astype(jnp.float32),
        "conv2_wt": conv_wt(p["conv2_w"]),
        "conv2_scale": s2.reshape(-1, 1).astype(jnp.float32),
        "conv2_bias": b2.reshape(-1, 1).astype(jnp.float32),
        # Conv activations stay channel-first (c,h,w,n), so flatten already matches
        # PyTorch's NCHW nn.Flatten order: only the FC weights need a one-time transpose.
        "fc1_wt": jnp.transpose(p["fc1_w"]).astype(jnp.bfloat16),   # (128, 3136)
        "fc1_b": p["fc1_b"].reshape(-1, 1).astype(jnp.float32),
        "fc2_wt": jnp.transpose(p["fc2_w"]).astype(jnp.float32),    # (10, 128)
        "fc2_b": p["fc2_b"].reshape(-1, 1).astype(jnp.float32),
    }


@jax.jit
def cnn_forward(x, prep):
    """x: (N, 1, 28, 28) NCHW float32 -> logits (N, 10) float32."""
    n = x.shape[0]
    xt = jnp.transpose(x, (1, 2, 3, 0)).astype(jnp.float32)         # (Cin, H, W, N)

    y = _conv_block(xt, prep["conv1_wt"], prep["conv1_scale"], prep["conv1_bias"])  # (32,14,14,N)
    y = _conv_block(y, prep["conv2_wt"], prep["conv2_scale"], prep["conv2_bias"])   # (64, 7, 7,N)

    feat_t = y.reshape(-1, n)                                        # (3136, N), (c,h,w) order
    return _mlp_head(feat_t, prep["fc1_wt"], prep["fc1_b"], prep["fc2_wt"], prep["fc2_b"])


# ---------------------------------------------------------------------------
# Deterministic parameter init (synthetic; shapes from the PyTorch module)
# ---------------------------------------------------------------------------
def init_params(key, in_channels=1, img_size=28, output_dim=10):
    ks = jax.random.split(key, 16)
    f = lambda k, shape, s: (s * jax.random.normal(k, shape)).astype(jnp.float32)
    feat_dim = (img_size // 4) * (img_size // 4) * 64                # 3136
    return {
        "conv1_w": f(ks[0], (3, 3, in_channels, 32), 0.10),          # HWIO
        "conv1_b": f(ks[1], (32,), 0.10),
        "bn1_gamma": (1.0 + 0.1 * jax.random.normal(ks[2], (32,))).astype(jnp.float32),
        "bn1_beta": f(ks[3], (32,), 0.10),
        "bn1_mean": f(ks[4], (32,), 0.10),
        "bn1_var": (0.5 + jax.random.uniform(ks[5], (32,))).astype(jnp.float32),
        "conv2_w": f(ks[6], (3, 3, 32, 64), 0.05),
        "conv2_b": f(ks[7], (64,), 0.05),
        "bn2_gamma": (1.0 + 0.1 * jax.random.normal(ks[8], (64,))).astype(jnp.float32),
        "bn2_beta": f(ks[9], (64,), 0.10),
        "bn2_mean": f(ks[10], (64,), 0.10),
        "bn2_var": (0.5 + jax.random.uniform(ks[11], (64,))).astype(jnp.float32),
        "fc1_w": f(ks[12], (feat_dim, 128), 0.02),                   # in-features ordered (c,h,w)
        "fc1_b": f(ks[13], (128,), 0.02),
        "fc2_w": f(ks[14], (128, output_dim), 0.09),
        "fc2_b": f(ks[15], (output_dim,), 0.09),
    }


if __name__ == "__main__":
    key = jax.random.PRNGKey(0)
    pkey, xkey = jax.random.split(key)
    params = init_params(pkey)
    prep = prepare_params(params)                                    # one-time folding/casts
    x = jax.random.normal(xkey, (2, 1, 28, 28), dtype=jnp.float32)   # NCHW like PyTorch
    out = cnn_forward(x, prep)
    jax.block_until_ready(out)
    assert out.shape == (2, 10) and out.dtype == jnp.float32
    print("KERNEL_OK")
</pallas_src>

<mosaic_0001>
module attributes {stable_mosaic.version = 11 : i64} {
  func.func @_conv_block_kernel(%arg0: i32, %arg1: memref<4x16x512xbf16, #tpu.memory_space<vmem>>, %arg2: memref<32x16xbf16, #tpu.memory_space<vmem>>, %arg3: memref<32x1xf32, #tpu.memory_space<vmem>>, %arg4: memref<32x1xf32, #tpu.memory_space<vmem>>, %arg5: memref<32x512xf32, #tpu.memory_space<vmem>>) attributes {dimension_semantics = [#tpu.dimension_semantics<parallel>], iteration_bounds = array<i64: 1>, scalar_prefetch = 0 : i64, scratch_operands = 0 : i64, tpu.core_type = #tpu.core_type<tc>, window_params = [{transform_indices = @transform_0, window_bounds = array<i64: 4, 16, 512>}, {pipeline_mode = #tpu.pipeline_mode<synchronous>, transform_indices = @transform_1, window_bounds = array<i64: 32, 16>}, {pipeline_mode = #tpu.pipeline_mode<synchronous>, transform_indices = @transform_2, window_bounds = array<i64: 32, 1>}, {pipeline_mode = #tpu.pipeline_mode<synchronous>, transform_indices = @transform_3, window_bounds = array<i64: 32, 1>}, {transform_indices = @transform_4, window_bounds = array<i64: 32, 512>}]} {
    %c0 = arith.constant 0 : index
    %c0_0 = arith.constant 0 : index
    %0 = vector.load %arg2[%c0, %c0_0] : memref<32x16xbf16, #tpu.memory_space<vmem>>, vector<32x16xbf16>
    %c0_1 = arith.constant 0 : index
    %c0_2 = arith.constant 0 : index
    %1 = vector.load %arg3[%c0_1, %c0_2] : memref<32x1xf32, #tpu.memory_space<vmem>>, vector<32x1xf32>
    %c0_3 = arith.constant 0 : index
    %c0_4 = arith.constant 0 : index
    %2 = vector.load %arg4[%c0_3, %c0_4] : memref<32x1xf32, #tpu.memory_space<vmem>>, vector<32x1xf32>
    %c0_5 = arith.constant 0 : index
    %c0_6 = arith.constant 0 : index
    %c0_7 = arith.constant 0 : index
    %3 = vector.load %arg1[%c0_5, %c0_6, %c0_7] : memref<4x16x512xbf16, #tpu.memory_space<vmem>>, vector<1x16x512xbf16>
    %4 = vector.shape_cast %3 : vector<1x16x512xbf16> to vector<16x512xbf16>
    %cst = arith.constant dense<0.000000e+00> : vector<32x512xf32>
    %5 = tpu.matmul %0, %4, %cst {dimension_numbers = #tpu.dot_dimension_numbers<[1], [0], [0], [1], [0, 0, 1, 1], [], []>} : vector<32x16xbf16>, vector<16x512xbf16>, vector<32x512xf32> -> vector<32x512xf32>
    %6 = vector.broadcast %1 : vector<32x1xf32> to vector<32x512xf32>
    %7 = arith.mulf %5, %6 : vector<32x512xf32>
    %8 = vector.broadcast %2 : vector<32x1xf32> to vector<32x512xf32>
    %9 = arith.addf %7, %8 : vector<32x512xf32>
    %cst_8 = arith.constant 0.000000e+00 : f32
    %10 = vector.broadcast %cst_8 : f32 to vector<32x512xf32>
    %11 = arith.cmpf oge, %9, %10 : vector<32x512xf32>
    %cst_9 = arith.constant 0.00999999977 : f32
    %12 = vector.broadcast %cst_9 : f32 to vector<32x512xf32>
    %13 = arith.mulf %12, %9 : vector<32x512xf32>
    %14 = arith.select %11, %9, %13 : vector<32x512xi1>, vector<32x512xf32>
    %c1 = arith.constant 1 : index
    %c0_10 = arith.constant 0 : index
    %c0_11 = arith.constant 0 : index
    %15 = vector.load %arg1[%c1, %c0_10, %c0_11] : memref<4x16x512xbf16, #tpu.memory_space<vmem>>, vector<1x16x512xbf16>
    %16 = vector.shape_cast %15 : vector<1x16x512xbf16> to vector<16x512xbf16>
    %cst_12 = arith.constant dense<0.000000e+00> : vector<32x512xf32>
    %17 = tpu.matmul %0, %16, %cst_12 {dimension_numbers = #tpu.dot_dimension_numbers<[1], [0], [0], [1], [0, 0, 1, 1], [], []>} : vector<32x16xbf16>, vector<16x512xbf16>, vector<32x512xf32> -> vector<32x512xf32>
    %18 = vector.broadcast %1 : vector<32x1xf32> to vector<32x512xf32>
    %19 = arith.mulf %17, %18 : vector<32x512xf32>
    %20 = vector.broadcast %2 : vector<32x1xf32> to vector<32x512xf32>
    %21 = arith.addf %19, %20 : vector<32x512xf32>
    %cst_13 = arith.constant 0.000000e+00 : f32
    %22 = vector.broadcast %cst_13 : f32 to vector<32x512xf32>
    %23 = arith.cmpf oge, %21, %22 : vector<32x512xf32>
    %cst_14 = arith.constant 0.00999999977 : f32
    %24 = vector.broadcast %cst_14 : f32 to vector<32x512xf32>
    %25 = arith.mulf %24, %21 : vector<32x512xf32>
    %26 = arith.select %23, %21, %25 : vector<32x512xi1>, vector<32x512xf32>
    %27 = arith.maximumf %14, %26 : vector<32x512xf32>
    %c2 = arith.constant 2 : index
    %c0_15 = arith.constant 0 : index
    %c0_16 = arith.constant 0 : index
    %28 = vector.load %arg1[%c2, %c0_15, %c0_16] : memref<4x16x512xbf16, #tpu.memory_space<vmem>>, vector<1x16x512xbf16>
    %29 = vector.shape_cast %28 : vector<1x16x512xbf16> to vector<16x512xbf16>
    %cst_17 = arith.constant dense<0.000000e+00> : vector<32x512xf32>
    %30 = tpu.matmul %0, %29, %cst_17 {dimension_numbers = #tpu.dot_dimension_numbers<[1], [0], [0], [1], [0, 0, 1, 1], [], []>} : vector<32x16xbf16>, vector<16x512xbf16>, vector<32x512xf32> -> vector<32x512xf32>
    %31 = vector.broadcast %1 : vector<32x1xf32> to vector<32x512xf32>
    %32 = arith.mulf %30, %31 : vector<32x512xf32>
    %33 = vector.broadcast %2 : vector<32x1xf32> to vector<32x512xf32>
    %34 = arith.addf %32, %33 : vector<32x512xf32>
    %cst_18 = arith.constant 0.000000e+00 : f32
    %35 = vector.broadcast %cst_18 : f32 to vector<32x512xf32>
    %36 = arith.cmpf oge, %34, %35 : vector<32x512xf32>
    %cst_19 = arith.constant 0.00999999977 : f32
    %37 = vector.broadcast %cst_19 : f32 to vector<32x512xf32>
    %38 = arith.mulf %37, %34 : vector<32x512xf32>
    %39 = arith.select %36, %34, %38 : vector<32x512xi1>, vector<32x512xf32>
    %c3 = arith.constant 3 : index
    %c0_20 = arith.constant 0 : index
    %c0_21 = arith.constant 0 : index
    %40 = vector.load %arg1[%c3, %c0_20, %c0_21] : memref<4x16x512xbf16, #tpu.memory_space<vmem>>, vector<1x16x512xbf16>
    %41 = vector.shape_cast %40 : vector<1x16x512xbf16> to vector<16x512xbf16>
    %cst_22 = arith.constant dense<0.000000e+00> : vector<32x512xf32>
    %42 = tpu.matmul %0, %41, %cst_22 {dimension_numbers = #tpu.dot_dimension_numbers<[1], [0], [0], [1], [0, 0, 1, 1], [], []>} : vector<32x16xbf16>, vector<16x512xbf16>, vector<32x512xf32> -> vector<32x512xf32>
    %43 = vector.broadcast %1 : vector<32x1xf32> to vector<32x512xf32>
    %44 = arith.mulf %42, %43 : vector<32x512xf32>
    %45 = vector.broadcast %2 : vector<32x1xf32> to vector<32x512xf32>
    %46 = arith.addf %44, %45 : vector<32x512xf32>
    %cst_23 = arith.constant 0.000000e+00 : f32
    %47 = vector.broadcast %cst_23 : f32 to vector<32x512xf32>
    %48 = arith.cmpf oge, %46, %47 : vector<32x512xf32>
    %cst_24 = arith.constant 0.00999999977 : f32
    %49 = vector.broadcast %cst_24 : f32 to vector<32x512xf32>
    %50 = arith.mulf %49, %46 : vector<32x512xf32>
    %51 = arith.select %48, %46, %50 : vector<32x512xi1>, vector<32x512xf32>
    %52 = arith.maximumf %39, %51 : vector<32x512xf32>
    %53 = arith.maximumf %27, %52 : vector<32x512xf32>
    %c0_25 = arith.constant 0 : index
    %c0_26 = arith.constant 0 : index
    %54 = vector.load %arg5[%c0_25, %c0_26] : memref<32x512xf32, #tpu.memory_space<vmem>>, vector<32x512xf32>
    tpu.vector_store %arg5[%c0_25, %c0_26], %53 {strides = array<i32>} : memref<32x512xf32, #tpu.memory_space<vmem>>, vector<32x512xf32>,
    return
  }
  func.func @transform_0(%arg0: i32) -> (i32, i32, i32) {
    %c0_i32 = arith.constant 0 : i32
    %c0_i32_0 = arith.constant 0 : i32
    %c0_i32_1 = arith.constant 0 : i32
    return %c0_i32, %c0_i32_0, %arg0 : i32, i32, i32
  }
  func.func @transform_1(%arg0: i32) -> (i32, i32) {
    %c0_i32 = arith.constant 0 : i32
    %c0_i32_0 = arith.constant 0 : i32
    %c0_i32_1 = arith.constant 0 : i32
    return %c0_i32, %c0_i32_0 : i32, i32
  }
  func.func @transform_2(%arg0: i32) -> (i32, i32) {
    %c0_i32 = arith.constant 0 : i32
    %c0_i32_0 = arith.constant 0 : i32
    %c0_i32_1 = arith.constant 0 : i32
    return %c0_i32, %c0_i32_0 : i32, i32
  }
  func.func @transform_3(%arg0: i32) -> (i32, i32) {
    %c0_i32 = arith.constant 0 : i32
    %c0_i32_0 = arith.constant 0 : i32
    %c0_i32_1 = arith.constant 0 : i32
    return %c0_i32, %c0_i32_0 : i32, i32
  }
  func.func @transform_4(%arg0: i32) -> (i32, i32) {
    %c0_i32 = arith.constant 0 : i32
    %c0_i32_0 = arith.constant 0 : i32
    return %c0_i32, %arg0 : i32, i32
  }
}

module attributes {stable_mosaic.version = 11 : i64} {
  func.func @_conv_block_kernel(%arg0: i32, %arg1: memref<4x288x128xbf16, #tpu.memory_space<vmem>>, %arg2: memref<64x288xbf16, #tpu.memory_space<vmem>>, %arg3: memref<64x1xf32, #tpu.memory_space<vmem>>, %arg4: memref<64x1xf32, #tpu.memory_space<vmem>>, %arg5: memref<64x128xf32, #tpu.memory_space<vmem>>) attributes {dimension_semantics = [#tpu.dimension_semantics<parallel>], iteration_bounds = array<i64: 1>, scalar_prefetch = 0 : i64, scratch_operands = 0 : i64, tpu.core_type = #tpu.core_type<tc>, window_params = [{transform_indices = @transform_0, window_bounds = array<i64: 4, 288, 128>}, {pipeline_mode = #tpu.pipeline_mode<synchronous>, transform_indices = @transform_1, window_bounds = array<i64: 64, 288>}, {pipeline_mode = #tpu.pipeline_mode<synchronous>, transform_indices = @transform_2, window_bounds = array<i64: 64, 1>}, {pipeline_mode = #tpu.pipeline_mode<synchronous>, transform_indices = @transform_3, window_bounds = array<i64: 64, 1>}, {transform_indices = @transform_4, window_bounds = array<i64: 64, 128>}]} {
    %c0 = arith.constant 0 : index
    %c0_0 = arith.constant 0 : index
    %0 = vector.load %arg2[%c0, %c0_0] : memref<64x288xbf16, #tpu.memory_space<vmem>>, vector<64x288xbf16>
    %c0_1 = arith.constant 0 : index
    %c0_2 = arith.constant 0 : index
    %1 = vector.load %arg3[%c0_1, %c0_2] : memref<64x1xf32, #tpu.memory_space<vmem>>, vector<64x1xf32>
    %c0_3 = arith.constant 0 : index
    %c0_4 = arith.constant 0 : index
    %2 = vector.load %arg4[%c0_3, %c0_4] : memref<64x1xf32, #tpu.memory_space<vmem>>, vector<64x1xf32>
    %c0_5 = arith.constant 0 : index
    %c0_6 = arith.constant 0 : index
    %c0_7 = arith.constant 0 : index
    %3 = vector.load %arg1[%c0_5, %c0_6, %c0_7] : memref<4x288x128xbf16, #tpu.memory_space<vmem>>, vector<1x288x128xbf16>
    %4 = vector.shape_cast %3 : vector<1x288x128xbf16> to vector<288x128xbf16>
    %cst = arith.constant dense<0.000000e+00> : vector<64x128xf32>
    %5 = tpu.matmul %0, %4, %cst {dimension_numbers = #tpu.dot_dimension_numbers<[1], [0], [0], [1], [0, 0, 1, 1], [], []>} : vector<64x288xbf16>, vector<288x128xbf16>, vector<64x128xf32> -> vector<64x128xf32>
    %6 = vector.broadcast %1 : vector<64x1xf32> to vector<64x128xf32>
    %7 = arith.mulf %5, %6 : vector<64x128xf32>
    %8 = vector.broadcast %2 : vector<64x1xf32> to vector<64x128xf32>
    %9 = arith.addf %7, %8 : vector<64x128xf32>
    %cst_8 = arith.constant 0.000000e+00 : f32
    %10 = vector.broadcast %cst_8 : f32 to vector<64x128xf32>
    %11 = arith.cmpf oge, %9, %10 : vector<64x128xf32>
    %cst_9 = arith.constant 0.00999999977 : f32
    %12 = vector.broadcast %cst_9 : f32 to vector<64x128xf32>
    %13 = arith.mulf %12, %9 : vector<64x128xf32>
    %14 = arith.select %11, %9, %13 : vector<64x128xi1>, vector<64x128xf32>
    %c1 = arith.constant 1 : index
    %c0_10 = arith.constant 0 : index
    %c0_11 = arith.constant 0 : index
    %15 = vector.load %arg1[%c1, %c0_10, %c0_11] : memref<4x288x128xbf16, #tpu.memory_space<vmem>>, vector<1x288x128xbf16>
    %16 = vector.shape_cast %15 : vector<1x288x128xbf16> to vector<288x128xbf16>
    %cst_12 = arith.constant dense<0.000000e+00> : vector<64x128xf32>
    %17 = tpu.matmul %0, %16, %cst_12 {dimension_numbers = #tpu.dot_dimension_numbers<[1], [0], [0], [1], [0, 0, 1, 1], [], []>} : vector<64x288xbf16>, vector<288x128xbf16>, vector<64x128xf32> -> vector<64x128xf32>
    %18 = vector.broadcast %1 : vector<64x1xf32> to vector<64x128xf32>
    %19 = arith.mulf %17, %18 : vector<64x128xf32>
    %20 = vector.broadcast %2 : vector<64x1xf32> to vector<64x128xf32>
    %21 = arith.addf %19, %20 : vector<64x128xf32>
    %cst_13 = arith.constant 0.000000e+00 : f32
    %22 = vector.broadcast %cst_13 : f32 to vector<64x128xf32>
    %23 = arith.cmpf oge, %21, %22 : vector<64x128xf32>
    %cst_14 = arith.constant 0.00999999977 : f32
    %24 = vector.broadcast %cst_14 : f32 to vector<64x128xf32>
    %25 = arith.mulf %24, %21 : vector<64x128xf32>
    %26 = arith.select %23, %21, %25 : vector<64x128xi1>, vector<64x128xf32>
    %27 = arith.maximumf %14, %26 : vector<64x128xf32>
    %c2 = arith.constant 2 : index
    %c0_15 = arith.constant 0 : index
    %c0_16 = arith.constant 0 : index
    %28 = vector.load %arg1[%c2, %c0_15, %c0_16] : memref<4x288x128xbf16, #tpu.memory_space<vmem>>, vector<1x288x128xbf16>
    %29 = vector.shape_cast %28 : vector<1x288x128xbf16> to vector<288x128xbf16>
    %cst_17 = arith.constant dense<0.000000e+00> : vector<64x128xf32>
    %30 = tpu.matmul %0, %29, %cst_17 {dimension_numbers = #tpu.dot_dimension_numbers<[1], [0], [0], [1], [0, 0, 1, 1], [], []>} : vector<64x288xbf16>, vector<288x128xbf16>, vector<64x128xf32> -> vector<64x128xf32>
    %31 = vector.broadcast %1 : vector<64x1xf32> to vector<64x128xf32>
    %32 = arith.mulf %30, %31 : vector<64x128xf32>
    %33 = vector.broadcast %2 : vector<64x1xf32> to vector<64x128xf32>
    %34 = arith.addf %32, %33 : vector<64x128xf32>
    %cst_18 = arith.constant 0.000000e+00 : f32
    %35 = vector.broadcast %cst_18 : f32 to vector<64x128xf32>
    %36 = arith.cmpf oge, %34, %35 : vector<64x128xf32>
    %cst_19 = arith.constant 0.00999999977 : f32
    %37 = vector.broadcast %cst_19 : f32 to vector<64x128xf32>
    %38 = arith.mulf %37, %34 : vector<64x128xf32>
    %39 = arith.select %36, %34, %38 : vector<64x128xi1>, vector<64x128xf32>
    %c3 = arith.constant 3 : index
    %c0_20 = arith.constant 0 : index
    %c0_21 = arith.constant 0 : index
    %40 = vector.load %arg1[%c3, %c0_20, %c0_21] : memref<4x288x128xbf16, #tpu.memory_space<vmem>>, vector<1x288x128xbf16>
    %41 = vector.shape_cast %40 : vector<1x288x128xbf16> to vector<288x128xbf16>
    %cst_22 = arith.constant dense<0.000000e+00> : vector<64x128xf32>
    %42 = tpu.matmul %0, %41, %cst_22 {dimension_numbers = #tpu.dot_dimension_numbers<[1], [0], [0], [1], [0, 0, 1, 1], [], []>} : vector<64x288xbf16>, vector<288x128xbf16>, vector<64x128xf32> -> vector<64x128xf32>
    %43 = vector.broadcast %1 : vector<64x1xf32> to vector<64x128xf32>
    %44 = arith.mulf %42, %43 : vector<64x128xf32>
    %45 = vector.broadcast %2 : vector<64x1xf32> to vector<64x128xf32>
    %46 = arith.addf %44, %45 : vector<64x128xf32>
    %cst_23 = arith.constant 0.000000e+00 : f32
    %47 = vector.broadcast %cst_23 : f32 to vector<64x128xf32>
    %48 = arith.cmpf oge, %46, %47 : vector<64x128xf32>
    %cst_24 = arith.constant 0.00999999977 : f32
    %49 = vector.broadcast %cst_24 : f32 to vector<64x128xf32>
    %50 = arith.mulf %49, %46 : vector<64x128xf32>
    %51 = arith.select %48, %46, %50 : vector<64x128xi1>, vector<64x128xf32>
    %52 = arith.maximumf %39, %51 : vector<64x128xf32>
    %53 = arith.maximumf %27, %52 : vector<64x128xf32>
    %c0_25 = arith.constant 0 : index
    %c0_26 = arith.constant 0 : index
    %54 = vector.load %arg5[%c0_25, %c0_26] : memref<64x128xf32, #tpu.memory_space<vmem>>, vector<64x128xf32>
    tpu.vector_store %arg5[%c0_25, %c0_26], %53 {strides = array<i32>} : memref<64x128xf32, #tpu.memory_space<vmem>>, vector<64x128xf32>,
    return
  }
  func.func @transform_0(%arg0: i32) -> (i32, i32, i32) {
    %c0_i32 = arith.constant 0 : i32
    %c0_i32_0 = arith.constant 0 : i32
    %c0_i32_1 = arith.constant 0 : i32
    return %c0_i32, %c0_i32_0, %arg0 : i32, i32, i32
  }
  func.func @transform_1(%arg0: i32) -> (i32, i32) {
    %c0_i32 = arith.constant 0 : i32
    %c0_i32_0 = arith.constant 0 : i32
    %c0_i32_1 = arith.constant 0 : i32
    return %c0_i32, %c0_i32_0 : i32, i32
  }
  func.func @transform_2(%arg0: i32) -> (i32, i32) {
    %c0_i32 = arith.constant 0 : i32
    %c0_i32_0 = arith.constant 0 : i32
    %c0_i32_1 = arith.constant 0 : i32
    return %c0_i32, %c0_i32_0 : i32, i32
  }
  func.func @transform_3(%arg0: i32) -> (i32, i32) {
    %c0_i32 = arith.constant 0 : i32
    %c0_i32_0 = arith.constant 0 : i32
    %c0_i32_1 = arith.constant 0 : i32
    return %c0_i32, %c0_i32_0 : i32, i32
  }
  func.func @transform_4(%arg0: i32) -> (i32, i32) {
    %c0_i32 = arith.constant 0 : i32
    %c0_i32_0 = arith.constant 0 : i32
    return %c0_i32, %arg0 : i32, i32
  }
}

module attributes {stable_mosaic.version = 11 : i64} {
  func.func @_mlp_kernel(%arg0: i32, %arg1: memref<3136x128xbf16, #tpu.memory_space<vmem>>, %arg2: memref<128x3136xbf16, #tpu.memory_space<vmem>>, %arg3: memref<128x1xf32, #tpu.memory_space<vmem>>, %arg4: memref<10x128xf32, #tpu.memory_space<vmem>>, %arg5: memref<10x1xf32, #tpu.memory_space<vmem>>, %arg6: memref<10x128xf32, #tpu.memory_space<vmem>>) attributes {dimension_semantics = [#tpu.dimension_semantics<parallel>], iteration_bounds = array<i64: 1>, scalar_prefetch = 0 : i64, scratch_operands = 0 : i64, tpu.core_type = #tpu.core_type<tc>, window_params = [{transform_indices = @transform_0, window_bounds = array<i64: 3136, 128>}, {pipeline_mode = #tpu.pipeline_mode<synchronous>, transform_indices = @transform_1, window_bounds = array<i64: 128, 3136>}, {pipeline_mode = #tpu.pipeline_mode<synchronous>, transform_indices = @transform_2, window_bounds = array<i64: 128, 1>}, {pipeline_mode = #tpu.pipeline_mode<synchronous>, transform_indices = @transform_3, window_bounds = array<i64: 10, 128>}, {pipeline_mode = #tpu.pipeline_mode<synchronous>, transform_indices = @transform_4, window_bounds = array<i64: 10, 1>}, {transform_indices = @transform_5, window_bounds = array<i64: 10, 128>}]} {
    %c0 = arith.constant 0 : index
    %c0_0 = arith.constant 0 : index
    %0 = vector.load %arg2[%c0, %c0_0] : memref<128x3136xbf16, #tpu.memory_space<vmem>>, vector<128x3136xbf16>
    %c0_1 = arith.constant 0 : index
    %c0_2 = arith.constant 0 : index
    %1 = vector.load %arg1[%c0_1, %c0_2] : memref<3136x128xbf16, #tpu.memory_space<vmem>>, vector<3136x128xbf16>
    %cst = arith.constant dense<0.000000e+00> : vector<128x128xf32>
    %2 = tpu.matmul %0, %1, %cst {dimension_numbers = #tpu.dot_dimension_numbers<[1], [0], [0], [1], [0, 0, 1, 1], [], []>} : vector<128x3136xbf16>, vector<3136x128xbf16>, vector<128x128xf32> -> vector<128x128xf32>
    %c0_3 = arith.constant 0 : index
    %c0_4 = arith.constant 0 : index
    %3 = vector.load %arg3[%c0_3, %c0_4] : memref<128x1xf32, #tpu.memory_space<vmem>>, vector<128x1xf32>
    %4 = vector.broadcast %3 : vector<128x1xf32> to vector<128x128xf32>
    %5 = arith.addf %2, %4 : vector<128x128xf32>
    %cst_5 = arith.constant 0.000000e+00 : f32
    %6 = vector.broadcast %cst_5 : f32 to vector<128x128xf32>
    %7 = arith.cmpf oge, %5, %6 : vector<128x128xf32>
    %cst_6 = arith.constant 0.00999999977 : f32
    %8 = vector.broadcast %cst_6 : f32 to vector<128x128xf32>
    %9 = arith.mulf %8, %5 : vector<128x128xf32>
    %10 = arith.select %7, %5, %9 : vector<128x128xi1>, vector<128x128xf32>
    %c0_7 = arith.constant 0 : index
    %c0_8 = arith.constant 0 : index
    %11 = vector.load %arg4[%c0_7, %c0_8] : memref<10x128xf32, #tpu.memory_space<vmem>>, vector<10x128xf32>
    %cst_9 = arith.constant dense<0.000000e+00> : vector<10x128xf32>
    %12 = tpu.matmul %11, %10, %cst_9 {dimension_numbers = #tpu.dot_dimension_numbers<[1], [0], [0], [1], [0, 0, 1, 1], [], []>} : vector<10x128xf32>, vector<128x128xf32>, vector<10x128xf32> -> vector<10x128xf32>
    %c0_10 = arith.constant 0 : index
    %c0_11 = arith.constant 0 : index
    %13 = vector.load %arg5[%c0_10, %c0_11] : memref<10x1xf32, #tpu.memory_space<vmem>>, vector<10x1xf32>
    %14 = vector.broadcast %13 : vector<10x1xf32> to vector<10x128xf32>
    %15 = arith.addf %12, %14 : vector<10x128xf32>
    %c0_12 = arith.constant 0 : index
    %c0_13 = arith.constant 0 : index
    %16 = vector.load %arg6[%c0_12, %c0_13] : memref<10x128xf32, #tpu.memory_space<vmem>>, vector<10x128xf32>
    tpu.vector_store %arg6[%c0_12, %c0_13], %15 {strides = array<i32>} : memref<10x128xf32, #tpu.memory_space<vmem>>, vector<10x128xf32>,
    return
  }
  func.func @transform_0(%arg0: i32) -> (i32, i32) {
    %c0_i32 = arith.constant 0 : i32
    %c0_i32_0 = arith.constant 0 : i32
    return %c0_i32, %arg0 : i32, i32
  }
  func.func @transform_1(%arg0: i32) -> (i32, i32) {
    %c0_i32 = arith.constant 0 : i32
    %c0_i32_0 = arith.constant 0 : i32
    %c0_i32_1 = arith.constant 0 : i32
    return %c0_i32, %c0_i32_0 : i32, i32
  }
  func.func @transform_2(%arg0: i32) -> (i32, i32) {
    %c0_i32 = arith.constant 0 : i32
    %c0_i32_0 = arith.constant 0 : i32
    %c0_i32_1 = arith.constant 0 : i32
    return %c0_i32, %c0_i32_0 : i32, i32
  }
  func.func @transform_3(%arg0: i32) -> (i32, i32) {
    %c0_i32 = arith.constant 0 : i32
    %c0_i32_0 = arith.constant 0 : i32
    %c0_i32_1 = arith.constant 0 : i32
    return %c0_i32, %c0_i32_0 : i32, i32
  }
  func.func @transform_4(%arg0: i32) -> (i32, i32) {
    %c0_i32 = arith.constant 0 : i32
    %c0_i32_0 = arith.constant 0 : i32
    %c0_i32_1 = arith.constant 0 : i32
    return %c0_i32, %c0_i32_0 : i32, i32
  }
  func.func @transform_5(%arg0: i32) -> (i32, i32) {
    %c0_i32 = arith.constant 0 : i32
    %c0_i32_0 = arith.constant 0 : i32
    return %c0_i32, %arg0 : i32, i32
  }
}

</mosaic_0001>

<bundles_post_ra>
// kernel: cnn_forward.3
= control target key start
LH: loop header
LB: loop body
LE: loop exit
PB: predicated region body
PF: predicated region fallthrough
CT: control target
= control target key end

     0   :  { %v1073_v1 = vmov 0   ;;  %vm64_vm0 = vcmask 130048   ;;  %s1745_s0 = inlined_call_operand.vmem [shape: bf16[4,16,512], index: 0, kind: input, shape index: {}]   ;;  %s1746_s1 = inlined_call_operand.vmem [shape: bf16[32,16], index: 1, kind: input, shape index: {}]   ;;  %s1747_s2 = inlined_call_operand.vmem [shape: f32[32,1], index: 2, kind: input, shape index: {}]   ;;  %s1748_s3 = inlined_call_operand.vmem [shape: f32[32,1], index: 3, kind: input, shape index: {}]   ;;  %s1749_s4 = inlined_call_operand.vmem [shape: f32[32,512], index: 4, kind: output, shape index: {}]  }
   0x1   :  { %v1047_v0 = vld [vmem:[%s1745_s0 + $0x4] ss:$16 sps:$4 sm:$0xff]   ;;  %103 = vmatprep.mubr.bf16.mxu0 %v1073_v1  ;;  %156 = vmatprep.mubr.bf16.mxu1 %v1073_v1  ;;  %v1049_v2 = vld [vmem:[%s1745_s0 + $0xc] ss:$16 sps:$4 sm:$0xff]   ;;  %v1051_v3 = vld [vmem:[%s1745_s0] ss:$16 sps:$4 sm:$0xff]  }
   0x2   :  { %1045 = vset.pattern.permute.xlu0 %v1073_v1  ;;  %1046 = vset.pattern.permute.xlu1 %v1073_v1  ;;  %v1052_v4 = vld [vmem:[%s1745_s0 + $0x8] ss:$16 sps:$4 sm:$0xff]   ;;  %v1118_v5 = vld [vmem:[%s1746_s1] sm:$0xff]   ;;  %v1059_v9 = vld [vmem:[%s1745_s0 + $0x2c] ss:$16 sps:$4 sm:$0xff]  }
   0x3   :  { %71 = vmatprep.subr.bf16.mxu0 %v1047_v0  ;;  %124 = vmatprep.subr.bf16.mxu1 %v1049_v2  ;;  %v1054_v6 = vld [vmem:[%s1745_s0 + $0x20] ss:$16 sps:$4 sm:$0xff]   ;;  %v1056_v7 = vld [vmem:[%s1745_s0 + $0x24] ss:$16 sps:$4 sm:$0xff]   ;;  %v1057_v8 = vld [vmem:[%s1745_s0 + $0x28] ss:$16 sps:$4 sm:$0xff]  }
   0x4   :  { %72 = vmatpush1.bf16.msra.mxu0 %v1051_v3  ;;  %125 = vmatpush1.bf16.msra.mxu1 %v1052_v4  ;;  %v1063_v10 = vld [vmem:[%s1745_s0 + $0x44] ss:$16 sps:$4 sm:$0xff]   ;;  %v1066_v11 = vld [vmem:[%s1745_s0 + $0x4c] ss:$16 sps:$4 sm:$0xff]   ;;  %v1061_v19 = vld [vmem:[%s1745_s0 + $0x40] ss:$16 sps:$4 sm:$0xff]  }
   0x5   :  { %322 = vmatprep.subr.bf16.mxu0 %v1056_v7  ;;  %375 = vmatprep.subr.bf16.mxu1 %v1059_v9  ;;  %v1060_v12 = vld [vmem:[%s1746_s1 + $0x8] sm:$0xff]   ;;  %v22_v13 = vld [vmem:[%s1747_s2] sm:$0xff]  ;;  %v24_v14 = vld [vmem:[%s1747_s2 + $0x10] sm:$0xff] }
   0x6   :  { %179 = vperm.xlu0 %1045, %v22_v13   ;;  %189 = vperm.xlu1 %1046, %v24_v14   ;;  %v23_v15 = vld [vmem:[%s1747_s2 + $0x8] sm:$0xff]  ;;  %v25_v16 = vld [vmem:[%s1747_s2 + $0x18] sm:$0xff]  ;;  %v26_v17 = vld [vmem:[%s1748_s3] sm:$0xff] }
   0x7   :  { %1004 = vmatmul.mubr.msk.bf16.vlgmr.msra.gmra.mrb[0].mxu0 %vm64_vm0, %v1118_v5  ;;  %1006 = vmatmul.mubr.msk.bf16.vlgmr.msra.gmra.mrb[0].mxu1 %vm64_vm0, %v1118_v5  ;;  %v27_v18 = vld [vmem:[%s1748_s3 + $0x8] sm:$0xff]  ;;  %v1069_v21 = vld [vmem:[%s1745_s0 + $0x64] ss:$16 sps:$4 sm:$0xff]   ;;  %v29_v24 = vld [vmem:[%s1748_s3 + $0x18] sm:$0xff] }
   0x8   :  { %323 = vmatpush1.bf16.msra.mxu0 %v1054_v6  ;;  %376 = vmatpush1.bf16.msra.mxu1 %v1057_v8  ;;  %v1064_v20 = vld [vmem:[%s1745_s0 + $0x48] ss:$16 sps:$4 sm:$0xff]   ;;  %v1072_v22 = vld [vmem:[%s1745_s0 + $0x6c] ss:$16 sps:$4 sm:$0xff]   ;;  %v28_v23 = vld [vmem:[%s1748_s3 + $0x10] sm:$0xff] }
   0x9   :  { %113 = vmatprep.mubr.bf16.mxu0 %v1073_v1  ;;  %166 = vmatprep.mubr.bf16.mxu1 %v1073_v1  ;;  %v1067_v25 = vld [vmem:[%s1745_s0 + $0x60] ss:$16 sps:$4 sm:$0xff]   ;;  %v1070_v26 = vld [vmem:[%s1745_s0 + $0x68] ss:$16 sps:$4 sm:$0xff]  }
   0xa   :  { %549 = vmatprep.subr.bf16.mxu0 %v1063_v10  ;;  %602 = vmatprep.subr.bf16.mxu1 %v1066_v11 }
   0xb   :  { %184 = vperm.xlu0 %1045, %v23_v15   ;;  %194 = vperm.xlu1 %1046, %v25_v16  }
   0xf   :  { %1005 = vmatmul.mubr.msk.bf16.gmra.mrb[4].mxu0 %vm64_vm0, %v1060_v12  ;;  %1007 = vmatmul.mubr.msk.bf16.gmra.mrb[4].mxu1 %vm64_vm0, %v1060_v12 }
  0x10   :  { %354 = vmatprep.mubr.bf16.mxu0 %v1073_v1  ;;  %407 = vmatprep.mubr.bf16.mxu1 %v1073_v1 }
  0x11   :  { %215 = vperm.xlu0 %1045, %v26_v17   ;;  %220 = vperm.xlu1 %1046, %v27_v18  }
  0x15   :  { %225 = vperm.xlu0 %1045, %v28_v23   ;;  %230 = vperm.xlu1 %1046, %v29_v24  }
  0x17   :  { %1016 = vmatmul.mubr.msk.bf16.vlgmr.msra.gmra.mrb[8].mxu0 %vm64_vm0, %v1118_v5  ;;  %1018 = vmatmul.mubr.msk.bf16.vlgmr.msra.gmra.mrb[8].mxu1 %vm64_vm0, %v1118_v5 }
  0x18   :  { %550 = vmatpush1.bf16.msra.mxu0 %v1061_v19  ;;  %603 = vmatpush1.bf16.msra.mxu1 %v1064_v20 }
  0x19   :  { %364 = vmatprep.mubr.bf16.mxu0 %v1073_v1  ;;  %417 = vmatprep.mubr.bf16.mxu1 %v1073_v1 }
  0x1a   :  { %760 = vmatprep.subr.bf16.mxu0 %v1069_v21  ;;  %813 = vmatprep.subr.bf16.mxu1 %v1072_v22 }
  0x1f   :  { %1017 = vmatmul.mubr.msk.bf16.gmra.mrb[12].mxu0 %vm64_vm0, %v1060_v12  ;;  %1019 = vmatmul.mubr.msk.bf16.gmra.mrb[12].mxu1 %vm64_vm0, %v1060_v12 }
  0x20   :  { %581 = vmatprep.mubr.bf16.mxu0 %v1073_v1  ;;  %634 = vmatprep.mubr.bf16.mxu1 %v1073_v1 }
  0x27   :  { %1028 = vmatmul.mubr.msk.bf16.vlgmr.msra.gmra.mrb[16].mxu0 %vm64_vm0, %v1118_v5  ;;  %1030 = vmatmul.mubr.msk.bf16.vlgmr.msra.gmra.mrb[16].mxu1 %vm64_vm0, %v1118_v5 }
  0x28   :  { %761 = vmatpush1.bf16.msra.mxu0 %v1067_v25  ;;  %814 = vmatpush1.bf16.msra.mxu1 %v1070_v26 }
  0x29   :  { %591 = vmatprep.mubr.bf16.mxu0 %v1073_v1  ;;  %644 = vmatprep.mubr.bf16.mxu1 %v1073_v1 }
  0x2f   :  { %1029 = vmatmul.mubr.msk.bf16.gmra.mrb[20].mxu0 %vm64_vm0, %v1060_v12  ;;  %1031 = vmatmul.mubr.msk.bf16.gmra.mrb[20].mxu1 %vm64_vm0, %v1060_v12 }
  0x30   :  { %792 = vmatprep.mubr.bf16.mxu0 %v1073_v1  ;;  %845 = vmatprep.mubr.bf16.mxu1 %v1073_v1 }
  0x37   :  { %1040 = vmatmul.mubr.msk.bf16.vlgmr.msra.gmra.mrb[24].mxu0 %vm64_vm0, %v1118_v5  ;;  %1042 = vmatmul.mubr.msk.bf16.vlgmr.msra.gmra.mrb[24].mxu1 %vm64_vm0, %v1118_v5 }
  0x38   :  { %802 = vmatprep.mubr.bf16.mxu0 %v1073_v1  ;;  %855 = vmatprep.mubr.bf16.mxu1 %v1073_v1 }
  0x3f   :  { %1041 = vmatmul.mubr.msk.bf16.gmra.mrb[28].mxu0 %vm64_vm0, %v1060_v12  ;;  %1043 = vmatmul.mubr.msk.bf16.gmra.mrb[28].mxu1 %vm64_vm0, %v1060_v12 }
  0x85   :  { %v1221_v27 = vpop.permute.xlu0 %179  ;;  %v1223_v28 = vpop.permute.xlu1 %189 }
  0x8a   :  { %v1225_v29 = vpop.permute.xlu0 %184  ;;  %v1227_v30 = vpop.permute.xlu1 %194 }
  0x8b   :  { %1769 = vst [vmem:[#allocation2_spill] sm:$0xff] %v1227_v30 }
  0x90   :  { %v1229_v31 = vpop.permute.xlu0 %215  ;;  %v1241_v50 = vpop.permute.xlu1 %220 }
  0x94   :  { %v1245_v56 = vpop.permute.xlu0 %225  ;;  %v1270_v20 = vpop.permute.xlu1 %230 }
  0xda   :  { %v105_v32 = vpop.f32.mrb[0].mxu0  ;;  %v158_v33 = vpop.f32.mrb[0].mxu1 }
  0xdb   :  { %v197_v34 = vmul.f32 %v1221_v27, %v105_v32  ;;  %v199_v35 = vmul.f32 %v1221_v27, %v158_v33  ;;  %v107_v36 = vpop.f32.mrb[1].mxu0  ;;  %v160_v37 = vpop.f32.mrb[1].mxu1 }
  0xdc   :  { %v198_v38 = vmul.f32 %v1221_v27, %v107_v36  ;;  %v200_v39 = vmul.f32 %v1221_v27, %v160_v37  ;;  %v109_v40 = vpop.f32.mrb[2].mxu0  ;;  %v162_v41 = vpop.f32.mrb[2].mxu1 }
  0xdd   :  { %v201_v42 = vmul.f32 %v1225_v29, %v109_v40  ;;  %v203_v43 = vmul.f32 %v1225_v29, %v162_v41  ;;  %v111_v44 = vpop.f32.mrb[3].mxu0  ;;  %v164_v45 = vpop.f32.mrb[3].mxu1  ;;  %v233_v46 = vadd.f32 %v1229_v31, %v197_v34  ;;  %v235_v47 = vadd.f32 %v1229_v31, %v199_v35 }
  0xde   :  { %v202_v48 = vmul.f32 %v1225_v29, %v111_v44  ;;  %v204_v49 = vmul.f32 %v1225_v29, %v164_v45  ;;  %v234_v51 = vadd.f32 %v1229_v31, %v198_v38  ;;  %v236_v52 = vadd.f32 %v1229_v31, %v200_v39 }
  0xdf   :  { %vm249_vm1 = vcmp.ge.f32.partialorder %v233_v46, 0.0  ;;  %v265_v53 = vmul.f32 0.01, %v233_v46  ;;  %vm251_vm2 = vcmp.ge.f32.partialorder %v235_v47, 0.0  ;;  %v267_v54 = vmul.f32 0.01, %v235_v47 }
  0xe0   :  { %v266_v55 = vmul.f32 0.01, %v234_v51  ;;  %vm250_vm3 = vcmp.ge.f32.partialorder %v234_v51, 0.0  ;;  %v268_v57 = vmul.f32 0.01, %v236_v52  ;;  %v237_v58 = vadd.f32 %v1241_v50, %v201_v42 }
  0xe1   :  { %v239_v59 = vadd.f32 %v1241_v50, %v203_v43  ;;  %v1249_v62 = vsel %vm249_vm1, %v233_v46, %v265_v53  ;;  %vm252_vm4 = vcmp.ge.f32.partialorder %v236_v52, 0.0  ;;  %v238_v63 = vadd.f32 %v1241_v50, %v202_v48 }
  0xe2   :  { %v115_v60 = vpop.f32.mrb[4].mxu0  ;;  %v168_v61 = vpop.f32.mrb[4].mxu1  ;;  %v240_v0 = vadd.f32 %v1241_v50, %v204_v49  ;;  %vm253_vm5 = vcmp.ge.f32.partialorder %v237_v58, 0.0  ;;  %v269_v5 = vmul.f32 0.01, %v237_v58  ;;  %v1257_v9 = vsel %vm251_vm2, %v235_v47, %v267_v54 }
  0xe3   :  { %v205_v1 = vmul.f32 %v1223_v28, %v115_v60  ;;  %v207_v2 = vmul.f32 %v1223_v28, %v168_v61  ;;  %v117_v3 = vpop.f32.mrb[5].mxu0  ;;  %v170_v4 = vpop.f32.mrb[5].mxu1  ;;  %v1260_v10 = vsel %vm250_vm3, %v234_v51, %v266_v55  ;;  %v271_v11 = vmul.f32 0.01, %v239_v59 }
  0xe4   :  { %v206_v6 = vmul.f32 %v1223_v28, %v117_v3  ;;  %v119_v7 = vpop.f32.mrb[6].mxu0  ;;  %v172_v8 = vpop.f32.mrb[6].mxu1  ;;  %v208_v12 = vmul.f32 %v1223_v28, %v170_v4  ;;  %v1265_v16 = vsel %vm252_vm4, %v236_v52, %v268_v57  ;;  %vm255_vm6 = vcmp.ge.f32.partialorder %v239_v59, 0.0 }
  0xe5   :  { %v209_v13 = vmul.f32 %v1227_v30, %v119_v7  ;;  %v121_v14 = vpop.f32.mrb[7].mxu0  ;;  %v174_v15 = vpop.f32.mrb[7].mxu1  ;;  %v211_v17 = vmul.f32 %v1227_v30, %v172_v8  ;;  %v1268_v18 = vsel %vm253_vm5, %v237_v58, %v269_v5  ;;  %vm254_vm7 = vcmp.ge.f32.partialorder %v238_v63, 0.0 }
  0xe6   :  { %v270_v19 = vmul.f32 0.01, %v238_v63  ;;  %vm256_vm8 = vcmp.ge.f32.partialorder %v240_v0, 0.0  ;;  %v272_v21 = vmul.f32 0.01, %v240_v0  ;;  %v241_v22 = vadd.f32 %v1245_v56, %v205_v1 }
  0xe7   :  { %v243_v23 = vadd.f32 %v1245_v56, %v207_v2  ;;  %v1275_v24 = vmul.f32 %v1227_v30, %v121_v14  ;;  %v1278_v25 = vmul.f32 %v1227_v30, %v174_v15  ;;  %v1280_v26 = vsel %vm255_vm6, %v239_v59, %v271_v11 }
  0xe8   :  { %v1283_v32 = vadd.f32 %v1245_v56, %v206_v6  ;;  %v1285_v33 = vsel %vm254_vm7, %v238_v63, %v270_v19  ;;  %vm257_vm9 = vcmp.ge.f32.partialorder %v241_v22, 0.0  ;;  %v273_v34 = vmul.f32 0.01, %v241_v22 }
  0xe9   :  { %vm259_vm10 = vcmp.ge.f32.partialorder %v243_v23, 0.0  ;;  %v1287_v37 = vsel %vm256_vm8, %v240_v0, %v272_v21  ;;  %v275_v38 = vmul.f32 0.01, %v243_v23  ;;  %v1290_v39 = vadd.f32 %v1245_v56, %v208_v12 }
  0xea   :  { %v356_v35 = vpop.f32.mrb[8].mxu0  ;;  %v409_v36 = vpop.f32.mrb[8].mxu1  ;;  %v1293_v40 = vadd.f32 %v1270_v20, %v209_v13  ;;  %v1297_v45 = vsel %vm257_vm9, %v241_v22, %v273_v34  ;;  %v1300_v46 = vadd.f32 %v1270_v20, %v211_v17  ;;  %v274_v53 = vmul.f32 0.01, %v1283_v32 }
  0xeb   :  { %v428_v41 = vmul.f32 %v356_v35, %v1221_v27  ;;  %v430_v42 = vmul.f32 %v409_v36, %v1221_v27  ;;  %v358_v43 = vpop.f32.mrb[9].mxu0  ;;  %v411_v44 = vpop.f32.mrb[9].mxu1  ;;  %1770 = vst [vmem:[#allocation3_spill] sm:$0xff] %v1297_v45  ;;  %v1305_v52 = vsel %vm259_vm10, %v243_v23, %v275_v38  ;;  %vm258_vm11 = vcmp.ge.f32.partialorder %v1283_v32, 0.0 }
  0xec   :  { %v429_v47 = vmul.f32 %v358_v43, %v1221_v27  ;;  %v431_v48 = vmul.f32 %v411_v44, %v1221_v27  ;;  %v360_v49 = vpop.f32.mrb[10].mxu0  ;;  %v413_v51 = vpop.f32.mrb[10].mxu1  ;;  %1771 = vst [vmem:[#allocation4_spill] sm:$0xff] %v1305_v52  ;;  %vm260_vm0 = vcmp.ge.f32.partialorder %v1290_v39, 0.0  ;;  %vm261_vm8 = vcmp.ge.f32.partialorder %v1293_v40, 0.0 }
  0xed   :  { %v444_v54 = vadd.f32 %v428_v41, %v1229_v31  ;;  %v446_v55 = vadd.f32 %v430_v42, %v1229_v31  ;;  %v432_v57 = vmul.f32 %v360_v49, %v1225_v29  ;;  %v434_v58 = vmul.f32 %v413_v51, %v1225_v29  ;;  %v362_v59 = vpop.f32.mrb[11].mxu0  ;;  %v415_v60 = vpop.f32.mrb[11].mxu1 }
  0xee   :  { %v445_v61 = vadd.f32 %v429_v47, %v1229_v31  ;;  %v447_v63 = vadd.f32 %v431_v48, %v1229_v31  ;;  %v433_v0 = vmul.f32 %v362_v59, %v1225_v29  ;;  %v435_v1 = vmul.f32 %v415_v60, %v1225_v29 }
  0xef   :  { %vm460_vm12 = vcmp.ge.f32.partialorder %v444_v54, 0.0  ;;  %v476_v2 = vmul.f32 0.01, %v444_v54  ;;  %vm462_vm13 = vcmp.ge.f32.partialorder %v446_v55, 0.0  ;;  %v478_v3 = vmul.f32 0.01, %v446_v55 }
  0xf0   :  { %vm461_vm14 = vcmp.ge.f32.partialorder %v445_v61, 0.0  ;;  %v477_v4 = vmul.f32 0.01, %v445_v61  ;;  %vm463_vm15 = vcmp.ge.f32.partialorder %v447_v63, 0.0  ;;  %v479_v5 = vmul.f32 0.01, %v447_v63 }
  0xf1   :  { %v1318_v6 = vsel %vm460_vm12, %v444_v54, %v476_v2  ;;  %v1320_v7 = vsel %vm462_vm13, %v446_v55, %v478_v3  ;;  %v448_v8 = vadd.f32 %v432_v57, %v1241_v50  ;;  %v450_v11 = vadd.f32 %v434_v58, %v1241_v50 }
  0xf2   :  { %v1328_v14 = vsel %vm461_vm14, %v445_v61, %v477_v4  ;;  %v1330_v15 = vsel %vm463_vm15, %v447_v63, %v479_v5  ;;  %v366_v17 = vpop.f32.mrb[12].mxu0  ;;  %v419_v19 = vpop.f32.mrb[12].mxu1  ;;  %v449_v38 = vadd.f32 %v433_v0, %v1241_v50  ;;  %v451_v41 = vadd.f32 %v435_v1, %v1241_v50 }
  0xf3   :  { %vm464_vm1 = vcmp.ge.f32.partialorder %v448_v8, 0.0  ;;  %v480_v23 = vmul.f32 0.01, %v448_v8  ;;  %v368_v34 = vpop.f32.mrb[13].mxu0  ;;  %v421_v35 = vpop.f32.mrb[13].mxu1  ;;  %vm466_vm2 = vcmp.ge.f32.partialorder %v450_v11, 0.0  ;;  %v436_v47 = vmul.f32 %v366_v17, %v1223_v28 }
  0xf4   :  { %v482_v36 = vmul.f32 0.01, %v450_v11  ;;  %v370_v42 = vpop.f32.mrb[14].mxu0  ;;  %v423_v43 = vpop.f32.mrb[14].mxu1  ;;  %v438_v48 = vmul.f32 %v419_v19, %v1223_v28  ;;  %v276_v49 = vmul.f32 0.01, %v1290_v39  ;;  %v1358_v1 = vsel %vm258_vm11, %v1283_v32, %v274_v53 }
  0xf5   :  { %v1338_v44 = vsel %vm464_vm1, %v448_v8, %v480_v23  ;;  %v372_v51 = vpop.f32.mrb[15].mxu0  ;;  %v1343_v54 = vpop.f32.mrb[15].mxu1  ;;  %vm465_vm3 = vcmp.ge.f32.partialorder %v449_v38, 0.0  ;;  %v481_v58 = vmul.f32 0.01, %v449_v38  ;;  %vm467_vm4 = vcmp.ge.f32.partialorder %v451_v41, 0.0 }
  0xf6   :  { %v1347_v57 = vsel %vm466_vm2, %v450_v11, %v482_v36  ;;  %v483_v60 = vmul.f32 0.01, %v451_v41  ;;  %v452_v61 = vadd.f32 %v436_v47, %v1245_v56  ;;  %v454_v0 = vadd.f32 %v438_v48, %v1245_v56  ;;  %1772 = vst [vmem:[#allocation5_spill] sm:$0xff] %v1358_v1 }
  0xf7   :  { %v1352_v63 = vsel %vm465_vm3, %v449_v38, %v481_v58  ;;  %v437_v2 = vmul.f32 %v368_v34, %v1223_v28  ;;  %v1373_v53 = vsel %vm260_vm0, %v1290_v39, %v276_v49  ;;  %v439_v34 = vmul.f32 %v421_v35, %v1223_v28 }
  0xf8   :  { %v1363_v4 = vsel %vm467_vm4, %v451_v41, %v483_v60  ;;  %vm468_vm5 = vcmp.ge.f32.partialorder %v452_v61, 0.0  ;;  %v484_v5 = vmul.f32 0.01, %v452_v61  ;;  %vm470_vm6 = vcmp.ge.f32.partialorder %v454_v0, 0.0  ;;  %1775 = vst [vmem:[#allocation8_spill] sm:$0xff] %v1373_v53 }
  0xf9   :  { %1773 = vst [vmem:[#allocation6_spill] sm:$0xff] %v1363_v4  ;;  %v486_v11 = vmul.f32 0.01, %v454_v0  ;;  %v453_v17 = vadd.f32 %v437_v2, %v1245_v56  ;;  %v277_v36 = vmul.f32 0.01, %v1293_v40  ;;  %v455_v49 = vadd.f32 %v439_v34, %v1245_v56 }
  0xfa   :  { %v583_v19 = vpop.f32.mrb[16].mxu0  ;;  %v636_v23 = vpop.f32.mrb[16].mxu1  ;;  %v1368_v32 = vsel %vm468_vm5, %v452_v61, %v484_v5  ;;  %v440_v35 = vmul.f32 %v370_v42, %v1227_v30  ;;  %vm263_vm9 = vcmp.ge.f32.partialorder %v1300_v46, 0.0  ;;  %v442_v47 = vmul.f32 %v423_v43, %v1227_v30 }
  0xfb   :  { %1774 = vst [vmem:[#allocation7_spill] sm:$0xff] %v1368_v32  ;;  %v585_v38 = vpop.f32.mrb[17].mxu0  ;;  %v638_v41 = vpop.f32.mrb[17].mxu1  ;;  %v1379_v48 = vsel %vm470_vm6, %v454_v0, %v486_v11  ;;  %vm469_vm7 = vcmp.ge.f32.partialorder %v453_v17, 0.0  ;;  %v485_v58 = vmul.f32 0.01, %v453_v17  ;;  %v1401_v42 = vsel %vm261_vm8, %v1293_v40, %v277_v36 }
  0xfc   :  { %1776 = vst [vmem:[#allocation9_spill] sm:$0xff] %v1379_v48  ;;  %v587_v60 = vpop.f32.mrb[18].mxu0  ;;  %v1381_v61 = vpop.f32.mrb[18].mxu1  ;;  %v279_v11 = vmul.f32 0.01, %v1300_v46  ;;  %vm471_vm10 = vcmp.ge.f32.partialorder %v455_v49, 0.0  ;;  %v456_v8 = vadd.f32 %v440_v35, %v1270_v20  ;;  %v458_v3 = vadd.f32 %v442_v47, %v1270_v20 }
  0xfd   :  { %v1388_v2 = vpop.f32.mrb[19].mxu0  ;;  %v1390_v5 = vpop.f32.mrb[19].mxu1  ;;  %v1392_v0 = vsel %vm469_vm7, %v453_v17, %v485_v58  ;;  %v487_v34 = vmul.f32 0.01, %v455_v49  ;;  %1778 = vst [vmem:[#allocation11_spill] sm:$0xff] %v1401_v42  ;;  %v246_v17 = vadd.f32 %v1270_v20, %v1275_v24  ;;  %v441_v58 = vmul.f32 %v372_v51, %v1227_v30 }
  0xfe   :  { %1777 = vst [vmem:[#allocation10_spill] sm:$0xff] %v1392_v0  ;;  %vm472_vm11 = vcmp.ge.f32.partialorder %v456_v8, 0.0  ;;  %v488_v43 = vmul.f32 0.01, %v456_v8  ;;  %v248_v39 = vadd.f32 %v1270_v20, %v1278_v25  ;;  %v1416_v40 = vsel %vm263_vm9, %v1300_v46, %v279_v11 }
  0xff   :  { %v1407_v59 = vsel %vm471_vm10, %v455_v49, %v487_v34  ;;  %1780 = vst [vmem:[#allocation13_spill] sm:$0xff] %v1416_v40  ;;  %vm474_vm12 = vcmp.ge.f32.partialorder %v458_v3, 0.0  ;;  %v490_v36 = vmul.f32 0.01, %v458_v3  ;;  %vm262_vm13 = vcmp.ge.f32.partialorder %v246_v17, 0.0 }
 0x100   :  { %1779 = vst [vmem:[#allocation12_spill] sm:$0xff] %v1407_v59  ;;  %v1420_v51 = vsel %vm472_vm11, %v456_v8, %v488_v43  ;;  %v278_v49 = vmul.f32 0.01, %v246_v17  ;;  %v457_v34 = vadd.f32 %v441_v58, %v1270_v20  ;;  %v280_v46 = vmul.f32 0.01, %v248_v39 }
 0x101   :  { %1781 = vst [vmem:[#allocation14_spill] sm:$0xff] %v1420_v51  ;;  %v1425_v22 = vsel %vm474_vm12, %v458_v3, %v490_v36  ;;  %v443_v11 = vmul.f32 %v1343_v54, %v1227_v30  ;;  %vm264_vm15 = vcmp.ge.f32.partialorder %v248_v39, 0.0  ;;  %v655_v54 = vmul.f32 %v583_v19, %v1221_v27 }
 0x102   :  { %v593_v24 = vpop.f32.mrb[20].mxu0  ;;  %v1418_v47 = vpop.f32.mrb[20].mxu1  ;;  %1782 = vst [vmem:[#allocation15_spill] sm:$0xff] %v1425_v22  ;;  %vm473_vm14 = vcmp.ge.f32.partialorder %v457_v34, 0.0  ;;  %v489_v43 = vmul.f32 0.01, %v457_v34  ;;  %v1438_v3 = vsel %vm262_vm13, %v246_v17, %v278_v49  ;;  %v657_v35 = vmul.f32 %v636_v23, %v1221_v27 }
 0x103   :  { %v595_v25 = vpop.f32.mrb[21].mxu0  ;;  %v648_v55 = vpop.f32.mrb[21].mxu1  ;;  %1783 = vst [vmem:[#allocation16_spill] sm:$0xff] %v1438_v3  ;;  %v459_v36 = vadd.f32 %v443_v11, %v1270_v20  ;;  %v656_v8 = vmul.f32 %v585_v38, %v1221_v27  ;;  %v658_v22 = vmul.f32 %v638_v41, %v1221_v27  ;;  %v659_v40 = vmul.f32 %v587_v60, %v1225_v29 }
 0x104   :  { %v597_v21 = vpop.f32.mrb[22].mxu0  ;;  %v1429_v13 = vpop.f32.mrb[22].mxu1  ;;  %v1443_v51 = vsel %vm473_vm14, %v457_v34, %v489_v43  ;;  %v671_v49 = vadd.f32 %v655_v54, %v1229_v31  ;;  %v1451_v11 = vsel %vm264_vm15, %v248_v39, %v280_v46  ;;  %v673_v19 = vadd.f32 %v657_v35, %v1229_v31 }
 0x105   :  { %v1433_v58 = vpop.f32.mrb[23].mxu0  ;;  %v1435_v12 = vpop.f32.mrb[23].mxu1  ;;  %1784 = vst [vmem:[#allocation17_spill] sm:$0xff] %v1443_v51  ;;  %vm475_vm0 = vcmp.ge.f32.partialorder %v459_v36, 0.0  ;;  %v491_v17 = vmul.f32 0.01, %v459_v36  ;;  %v672_v23 = vadd.f32 %v656_v8, %v1229_v31  ;;  %v674_v34 = vadd.f32 %v658_v22, %v1229_v31 }
 0x106   :  { %1785 = vst [vmem:[#allocation18_spill] sm:$0xff] %v1451_v11  ;;  %vm687_vm1 = vcmp.ge.f32.partialorder %v671_v49, 0.0  ;;  %v703_v41 = vmul.f32 0.01, %v671_v49  ;;  %v661_v60 = vmul.f32 %v1381_v61, %v1225_v29  ;;  %v675_v35 = vadd.f32 %v659_v40, %v1241_v50 }
 0x107   :  { %v1456_v38 = vsel %vm475_vm0, %v459_v36, %v491_v17  ;;  %vm689_vm2 = vcmp.ge.f32.partialorder %v673_v19, 0.0  ;;  %v705_v54 = vmul.f32 0.01, %v673_v19  ;;  %vm688_vm3 = vcmp.ge.f32.partialorder %v672_v23, 0.0 }
 0x108   :  { %1786 = vst [vmem:[#allocation19_spill] sm:$0xff] %v1456_v38  ;;  %v1473_v36 = vsel %vm687_vm1, %v671_v49, %v703_v41  ;;  %v677_v61 = vadd.f32 %v661_v60, %v1241_v50  ;;  %v704_v39 = vmul.f32 0.01, %v672_v23  ;;  %vm690_vm4 = vcmp.ge.f32.partialorder %v674_v34, 0.0 }
 0x109   :  { %v660_v40 = vmul.f32 %v1388_v2, %v1225_v29  ;;  %v662_v38 = vmul.f32 %v1390_v5, %v1225_v29  ;;  %v706_v49 = vmul.f32 0.01, %v674_v34  ;;  %vm691_vm5 = vcmp.ge.f32.partialorder %v675_v35, 0.0 }
 0x10a   :  { %v1460_v43 = vpop.f32.mrb[24].mxu0  ;;  %v1462_v42 = vpop.f32.mrb[24].mxu1  ;;  %v707_v41 = vmul.f32 0.01, %v675_v35  ;;  %v663_v3 = vmul.f32 %v593_v24, %v1223_v28  ;;  %v665_v53 = vmul.f32 %v1418_v47, %v1223_v28  ;;  %v664_v0 = vmul.f32 %v595_v25, %v1223_v28 }
 0x10b   :  { %v1467_v46 = vpop.f32.mrb[25].mxu0  ;;  %v1469_v8 = vpop.f32.mrb[25].mxu1  ;;  %v676_v60 = vadd.f32 %v660_v40, %v1241_v50  ;;  %v678_v59 = vadd.f32 %v662_v38, %v1241_v50  ;;  %v709_v2 = vmul.f32 0.01, %v677_v61  ;;  %v666_v5 = vmul.f32 %v648_v55, %v1223_v28 }
 0x10c   :  { %v1471_v22 = vpop.f32.mrb[26].mxu0  ;;  %v1476_v17 = vpop.f32.mrb[26].mxu1  ;;  %v679_v1 = vadd.f32 %v663_v3, %v1245_v56  ;;  %v667_v48 = vmul.f32 %v597_v21, %v1227_v30  ;;  %v1496_v52 = vsel %vm689_vm2, %v673_v19, %v705_v54  ;;  %v1499_v24 = vsel %vm688_vm3, %v672_v23, %v704_v39 }
 0x10d   :  { %v1478_v51 = vpop.f32.mrb[27].mxu0  ;;  %v1484_v11 = vpop.f32.mrb[27].mxu1  ;;  %vm693_vm6 = vcmp.ge.f32.partialorder %v677_v61, 0.0  ;;  %v708_v38 = vmul.f32 0.01, %v676_v60  ;;  %v1502_v40 = vsel %vm690_vm4, %v674_v34, %v706_v49  ;;  %vm692_vm7 = vcmp.ge.f32.partialorder %v676_v60, 0.0 }
 0x10e   :  { %v681_v47 = vadd.f32 %v665_v53, %v1245_v56  ;;  %v680_v25 = vadd.f32 %v664_v0, %v1245_v56  ;;  %v1511_v21 = vsel %vm691_vm5, %v675_v35, %v707_v41  ;;  %v710_v19 = vmul.f32 0.01, %v678_v59 }
 0x10f   :  { %v682_v23 = vadd.f32 %v666_v5, %v1245_v56  ;;  %v683_v39 = vadd.f32 %v667_v48, %v1270_v20  ;;  %v1519_v49 = vsel %vm693_vm6, %v677_v61, %v709_v2  ;;  %vm694_vm8 = vcmp.ge.f32.partialorder %v678_v59, 0.0 }
 0x110   :  { %vm695_vm9 = vcmp.ge.f32.partialorder %v679_v1, 0.0  ;;  %v711_v53 = vmul.f32 0.01, %v679_v1  ;;  %v1526_v35 = vsel %vm692_vm7, %v676_v60, %v708_v38  ;;  %vm697_vm10 = vcmp.ge.f32.partialorder %v681_v47, 0.0 }
 0x111   :  { %v713_v41 = vmul.f32 0.01, %v681_v47  ;;  %vm696_vm11 = vcmp.ge.f32.partialorder %v680_v25, 0.0  ;;  %v712_v48 = vmul.f32 0.01, %v680_v25  ;;  %vm698_vm12 = vcmp.ge.f32.partialorder %v682_v23, 0.0 }
 0x112   :  { %v1506_v3 = vpop.f32.mrb[28].mxu0  ;;  %v1508_v55 = vpop.f32.mrb[28].mxu1  ;;  %v669_v5 = vmul.f32 %v1429_v13, %v1227_v30  ;;  %v668_v61 = vmul.f32 %v1433_v58, %v1227_v30  ;;  %v670_v60 = vmul.f32 %v1435_v12, %v1227_v30  ;;  %v866_v38 = vmul.f32 %v1460_v43, %v1221_v27 }
 0x113   :  { %v1515_v54 = vpop.f32.mrb[29].mxu0  ;;  %v1517_v34 = vpop.f32.mrb[29].mxu1  ;;  %vm699_vm13 = vcmp.ge.f32.partialorder %v683_v39, 0.0  ;;  %v868_v58 = vmul.f32 %v1462_v42, %v1221_v27  ;;  %v867_v12 = vmul.f32 %v1467_v46, %v1221_v27  ;;  %v869_v43 = vmul.f32 %v1469_v8, %v1221_v27 }
 0x114   :  { %v1521_v0 = vpop.f32.mrb[30].mxu0  ;;  %v1523_v32 = vpop.f32.mrb[30].mxu1  ;;  %v1541_v4 = vadd.f32 %v669_v5, %v1270_v20  ;;  %v1544_v13 = vadd.f32 %v668_v61, %v1270_v20  ;;  %v1557_v5 = vsel %vm694_vm8, %v678_v59, %v710_v19  ;;  %v1560_v61 = vsel %vm695_vm9, %v679_v1, %v711_v53 }
 0x115   :  { %1787 = vst [vmem:[#allocation20_spill] sm:$0xff] %v1521_v0  ;;  %1788 = vst [vmem:[#allocation21_spill] sm:$0xff] %v1523_v32  ;;  %v1532_v2 = vpop.f32.mrb[31].mxu0  ;;  %v1534_v45 = vpop.f32.mrb[31].mxu1  ;;  %v714_v0 = vmul.f32 0.01, %v682_v23  ;;  %v1563_v30 = vsel %vm697_vm10, %v681_v47, %v713_v41  ;;  %v1566_v42 = vsel %vm696_vm11, %v680_v25, %v712_v48  ;;  %v884_v1 = vadd.f32 %v868_v58, %v1229_v31 }
 0x116   :  { %1789 = vst [vmem:[#allocation22_spill] sm:$0xff] %v1532_v2  ;;  %1790 = vst [vmem:[#allocation23_spill] sm:$0xff] %v1534_v45  ;;  %v715_v32 = vmul.f32 0.01, %v683_v39  ;;  %v1549_v45 = vadd.f32 %v670_v60, %v1270_v20  ;;  %v882_v2 = vadd.f32 %v866_v38, %v1229_v31  ;;  %v1574_v27 = vmul.f32 0.01, %v1541_v4 }
 0x117   :  { %v1569_v60 = vsel %vm698_vm12, %v682_v23, %v714_v0  ;;  %v1577_v59 = vmul.f32 0.01, %v1544_v13  ;;  %v883_v8 = vadd.f32 %v867_v12, %v1229_v31  ;;  %v885_v19 = vadd.f32 %v869_v43, %v1229_v31 }
 0x118   :  { %v1571_v38 = vsel %vm699_vm13, %v683_v39, %v715_v32  ;;  %vm898_vm14 = vcmp.ge.f32.partialorder %v882_v2, 0.0  ;;  %v914_v46 = vmul.f32 0.01, %v882_v2  ;;  %v1582_v47 = vmul.f32 0.01, %v1549_v45 }
 0x119   :  { %v870_v32 = vmul.f32 %v1471_v22, %v1225_v29  ;;  %vm900_vm15 = vcmp.ge.f32.partialorder %v884_v1, 0.0  ;;  %v916_v39 = vmul.f32 0.01, %v884_v1  ;;  %vm899_vm0 = vcmp.ge.f32.partialorder %v883_v8, 0.0 }
 0x11a   :  { %v930_v25 = vsel %vm898_vm14, %v882_v2, %v914_v46  ;;  %v915_v53 = vmul.f32 0.01, %v883_v8  ;;  %vm901_vm1 = vcmp.ge.f32.partialorder %v885_v19, 0.0  ;;  %v917_v0 = vmul.f32 0.01, %v885_v19 }
 0x11b   :  { %v946_v23 = vmax.f32 %v1473_v36, %v930_v25  ;;  %v886_v41 = vadd.f32 %v870_v32, %v1241_v50  ;;  %v1791_v48 = vmax.f32 %v1249_v62, %v1318_v6  ;;  %v932_v2 = vsel %vm900_vm15, %v884_v1, %v916_v39 }
 0x11c   :  { %v872_v31 = vmul.f32 %v1476_v17, %v1225_v29  ;;  %v871_v22 = vmul.f32 %v1478_v51, %v1225_v29  ;;  %v948_v36 = vmax.f32 %v1496_v52, %v932_v2  ;;  %v931_v12 = vsel %vm899_vm0, %v883_v8, %v915_v53 }
 0x11d   :  { %v962_v58 = vmax.f32 %v1791_v48, %v946_v23  ;;  %v933_v43 = vsel %vm901_vm1, %v885_v19, %v917_v0  ;;  %vm902_vm2 = vcmp.ge.f32.partialorder %v886_v41, 0.0  ;;  %v947_v46 = vmax.f32 %v1499_v24, %v931_v12  ;;  %v1801_v12 = vld [vmem:[#allocation20_spill] sm:$0xff] }
 0x11e   :  { %v949_v62 = vmax.f32 %v1502_v40, %v933_v43  ;;  %v918_v6 = vmul.f32 0.01, %v886_v41  ;;  %v888_v1 = vadd.f32 %v872_v31, %v1241_v50  ;;  %v1792_v17 = vmax.f32 %v1257_v9, %v1320_v7 }
 0x11f   :  { %978 = vst [vmem:[%s1749_s4] sm:$0xff] %v962_v58  ;;  %v887_v52 = vadd.f32 %v871_v22, %v1241_v50  ;;  %v873_v8 = vmul.f32 %v1484_v11, %v1225_v29  ;;  %v874_v25 = vmul.f32 %v1506_v3, %v1223_v28  ;;  %v1793_v24 = vmax.f32 %v1260_v10, %v1328_v14 }
 0x120   :  { %v964_v51 = vmax.f32 %v1792_v17, %v948_v36  ;;  %v1794_v40 = vmax.f32 %v1265_v16, %v1330_v15  ;;  %v934_v23 = vsel %vm902_vm2, %v886_v41, %v918_v6  ;;  %vm904_vm3 = vcmp.ge.f32.partialorder %v888_v1, 0.0  ;;  %v1800_v36 = vld [vmem:[#allocation2_spill] sm:$0xff] }
 0x121   :  { %v963_v19 = vmax.f32 %v1793_v24, %v947_v46  ;;  %v950_v9 = vmax.f32 %v1511_v21, %v934_v23  ;;  %v920_v29 = vmul.f32 0.01, %v888_v1  ;;  %vm903_vm4 = vcmp.ge.f32.partialorder %v887_v52, 0.0  ;;  %v1802_v46 = vld [vmem:[#allocation3_spill] sm:$0xff]  ;;  %v1806_v24 = vld [vmem:[#allocation22_spill] sm:$0xff] }
 0x122   :  { %v965_v32 = vmax.f32 %v1794_v40, %v949_v62  ;;  %980 = vst [vmem:[%s1749_s4 + $0x10] sm:$0xff] %v964_v51  ;;  %v919_v7 = vmul.f32 0.01, %v887_v52  ;;  %v889_v10 = vadd.f32 %v873_v8, %v1241_v50  ;;  %v890_v16 = vadd.f32 %v874_v25, %v1245_v56  ;;  %v1803_v62 = vld [vmem:[#allocation7_spill] sm:$0xff]  ;;  %v1808_v40 = vld [vmem:[#allocation9_spill] sm:$0xff] }
 0x123   :  { %979 = vst [vmem:[%s1749_s4 + $0x8] sm:$0xff] %v963_v19  ;;  %v876_v14 = vmul.f32 %v1508_v55, %v1223_v28  ;;  %v875_v15 = vmul.f32 %v1515_v54, %v1223_v28  ;;  %v1795_v11 = vmax.f32 %v1268_v18, %v1338_v44  ;;  %v936_v21 = vsel %vm904_vm3, %v888_v1, %v920_v29 }
 0x124   :  { %981 = vst [vmem:[%s1749_s4 + $0x18] sm:$0xff] %v965_v32  ;;  %v935_v39 = vsel %vm903_vm4, %v887_v52, %v919_v7  ;;  %v877_v53 = vmul.f32 %v1517_v34, %v1223_v28  ;;  %vm701_vm5 = vcmp.ge.f32.partialorder %v1541_v4, 0.0  ;;  %v952_v50 = vmax.f32 %v1519_v49, %v936_v21  ;;  %v1814_v21 = vld [vmem:[#allocation8_spill] sm:$0xff] }
 0x125   :  { %v966_v3 = vmax.f32 %v1795_v11, %v950_v9  ;;  %v951_v0 = vmax.f32 %v1526_v35, %v935_v39  ;;  %vm905_vm6 = vcmp.ge.f32.partialorder %v889_v10, 0.0  ;;  %v921_v55 = vmul.f32 0.01, %v889_v10  ;;  %v1815_v39 = vld [vmem:[#allocation12_spill] sm:$0xff] }
 0x126   :  { %vm906_vm7 = vcmp.ge.f32.partialorder %v890_v16, 0.0  ;;  %v922_v18 = vmul.f32 0.01, %v890_v16  ;;  %v892_v44 = vadd.f32 %v876_v14, %v1245_v56  ;;  %v891_v54 = vadd.f32 %v875_v15, %v1245_v56 }
 0x127   :  { %982 = vst [vmem:[%s1749_s4 + $0x20] sm:$0xff] %v966_v3  ;;  %vm700_vm8 = vcmp.ge.f32.partialorder %v1544_v13, 0.0  ;;  %v1796_v28 = vmax.f32 %v1280_v26, %v1347_v57  ;;  %v1797_v49 = vmax.f32 %v1285_v33, %v1352_v63  ;;  %v937_v41 = vsel %vm905_vm6, %v889_v10, %v921_v55  ;;  %v1811_v10 = vld [vmem:[#allocation5_spill] sm:$0xff] }
 0x128   :  { %v893_v48 = vadd.f32 %v877_v53, %v1245_v56  ;;  %vm702_vm9 = vcmp.ge.f32.partialorder %v1549_v45, 0.0  ;;  %v953_v58 = vmax.f32 %v1557_v5, %v937_v41  ;;  %v938_v2 = vsel %vm906_vm7, %v890_v16, %v922_v18  ;;  %v1798_v56 = vld [vmem:[#allocation6_spill] sm:$0xff] }
 0x129   :  { %v968_v34 = vmax.f32 %v1796_v28, %v952_v50  ;;  %v967_v35 = vmax.f32 %v1797_v49, %v951_v0  ;;  %vm908_vm10 = vcmp.ge.f32.partialorder %v892_v44, 0.0  ;;  %v924_v31 = vmul.f32 0.01, %v892_v44  ;;  %v1812_v16 = vld [vmem:[#allocation10_spill] sm:$0xff] }
 0x12a   :  { %v954_v26 = vmax.f32 %v1560_v61, %v938_v2  ;;  %vm907_vm11 = vcmp.ge.f32.partialorder %v891_v54, 0.0  ;;  %v923_v33 = vmul.f32 0.01, %v891_v54  ;;  %vm909_vm12 = vcmp.ge.f32.partialorder %v893_v48, 0.0  ;;  %v1805_v61 = vld [vmem:[#allocation21_spill] sm:$0xff]  ;;  %v1818_v41 = vld [vmem:[#allocation14_spill] sm:$0xff] }
 0x12b   :  { %984 = vst [vmem:[%s1749_s4 + $0x30] sm:$0xff] %v968_v34  ;;  %983 = vst [vmem:[%s1749_s4 + $0x28] sm:$0xff] %v967_v35  ;;  %v1799_v57 = vmax.f32 %v1287_v37, %v1798_v56  ;;  %v940_v5 = vsel %vm908_vm10, %v892_v44, %v924_v31  ;;  %v925_v22 = vmul.f32 0.01, %v893_v48  ;;  %v878_v43 = vmul.f32 %v1801_v12, %v1800_v36  ;;  %v1817_v35 = vld [vmem:[#allocation11_spill] sm:$0xff]  ;;  %v1820_v31 = vld [vmem:[#allocation13_spill] sm:$0xff] }
 0x12c   :  { %v1804_v6 = vmax.f32 %v1802_v46, %v1803_v62  ;;  %v956_v17 = vmax.f32 %v1563_v30, %v940_v5  ;;  %v939_v51 = vsel %vm907_vm11, %v891_v54, %v923_v33  ;;  %v880_v52 = vmul.f32 %v1805_v61, %v1800_v36  ;;  %v1807_v30 = vld [vmem:[#allocation4_spill] sm:$0xff] }
 0x12d   :  { %v969_v63 = vmax.f32 %v1799_v57, %v953_v58  ;;  %v955_v37 = vmax.f32 %v1566_v42, %v939_v51  ;;  %v941_v8 = vsel %vm909_vm12, %v893_v48, %v925_v22  ;;  %v894_v25 = vadd.f32 %v878_v43, %v1270_v20  ;;  %v1810_v42 = vld [vmem:[#allocation23_spill] sm:$0xff] }
 0x12e   :  { %v970_v1 = vmax.f32 %v1804_v6, %v954_v26  ;;  %v879_v19 = vmul.f32 %v1806_v24, %v1800_v36  ;;  %v1809_v32 = vmax.f32 %v1807_v30, %v1808_v40  ;;  %v957_v9 = vmax.f32 %v1569_v60, %v941_v8  ;;  %v1821_v26 = vld [vmem:[#allocation15_spill] sm:$0xff] }
 0x12f   :  { %985 = vst [vmem:[%s1749_s4 + $0x38] sm:$0xff] %v969_v63  ;;  %v896_v29 = vadd.f32 %v880_v52, %v1270_v20  ;;  %v881_v7 = vmul.f32 %v1810_v42, %v1800_v36  ;;  %v1813_v14 = vmax.f32 %v1811_v10, %v1812_v16  ;;  %vm910_vm13 = vcmp.ge.f32.partialorder %v894_v25, 0.0 }
 0x130   :  { %986 = vst [vmem:[%s1749_s4 + $0x40] sm:$0xff] %v970_v1  ;;  %v972_v23 = vmax.f32 %v1809_v32, %v956_v17  ;;  %v926_v11 = vmul.f32 0.01, %v894_v25  ;;  %v895_v3 = vadd.f32 %v879_v19, %v1270_v20  ;;  %v1816_v60 = vmax.f32 %v1814_v21, %v1815_v39 }
 0x131   :  { %v971_v15 = vmax.f32 %v1813_v14, %v955_v37  ;;  %vm912_vm14 = vcmp.ge.f32.partialorder %v896_v29, 0.0  ;;  %v928_v50 = vmul.f32 0.01, %v896_v29  ;;  %v897_v0 = vadd.f32 %v881_v7, %v1270_v20 }
 0x132   :  { %988 = vst [vmem:[%s1749_s4 + $0x50] sm:$0xff] %v972_v23  ;;  %v973_v53 = vmax.f32 %v1816_v60, %v957_v9  ;;  %v733_v55 = vsel %vm701_vm5, %v1541_v4, %v1574_v27  ;;  %v942_v18 = vsel %vm910_vm13, %v894_v25, %v926_v11  ;;  %vm911_vm15 = vcmp.ge.f32.partialorder %v895_v3, 0.0 }
 0x133   :  { %987 = vst [vmem:[%s1749_s4 + $0x48] sm:$0xff] %v971_v15  ;;  %v927_v44 = vmul.f32 0.01, %v895_v3  ;;  %v958_v54 = vmax.f32 %v1571_v38, %v942_v18  ;;  %v944_v28 = vsel %vm912_vm14, %v896_v29, %v928_v50  ;;  %vm913_vm0 = vcmp.ge.f32.partialorder %v897_v0, 0.0 }
 0x134   :  { %989 = vst [vmem:[%s1749_s4 + $0x58] sm:$0xff] %v973_v53  ;;  %v929_v20 = vmul.f32 0.01, %v897_v0  ;;  %v732_v4 = vsel %vm700_vm8, %v1544_v13, %v1577_v59  ;;  %v960_v27 = vmax.f32 %v733_v55, %v944_v28  ;;  %v734_v49 = vsel %vm702_vm9, %v1549_v45, %v1582_v47  ;;  %v1823_v13 = vld [vmem:[#allocation16_spill] sm:$0xff]  ;;  %v1824_v59 = vld [vmem:[#allocation17_spill] sm:$0xff]  ;;  %v1826_v45 = vld [vmem:[#allocation18_spill] sm:$0xff] }
 0x135   :  { %v943_v34 = vsel %vm911_vm15, %v895_v3, %v927_v44  ;;  %v1819_v48 = vmax.f32 %v1817_v35, %v1818_v41  ;;  %v1822_v33 = vmax.f32 %v1820_v31, %v1821_v26  ;;  %v1825_v63 = vmax.f32 %v1823_v13, %v1824_v59  ;;  %v1827_v47 = vld [vmem:[#allocation19_spill] sm:$0xff] }
 0x136   :  { %v959_v38 = vmax.f32 %v732_v4, %v943_v34  ;;  %v945_v2 = vsel %vm913_vm0, %v897_v0, %v929_v20  ;;  %v1828_v22 = vmax.f32 %v1826_v45, %v1827_v47 }
 0x137   :  { %v974_v58 = vmax.f32 %v1819_v48, %v958_v54  ;;  %v976_v56 = vmax.f32 %v1822_v33, %v960_v27  ;;  %v961_v57 = vmax.f32 %v734_v49, %v945_v2 }
 0x138   :  { %v975_v5 = vmax.f32 %v1825_v63, %v959_v38 }
 0x139   :  { %990 = vst [vmem:[%s1749_s4 + $0x60] sm:$0xff] %v974_v58  ;;  %992 = vst [vmem:[%s1749_s4 + $0x70] sm:$0xff] %v976_v56  ;;  %v977_v36 = vmax.f32 %v1828_v22, %v961_v57 }
 0x13a   :  { %991 = vst [vmem:[%s1749_s4 + $0x68] sm:$0xff] %v975_v5 }
 0x13b   :  { %993 = vst [vmem:[%s1749_s4 + $0x78] sm:$0xff] %v977_v36 }

// kernel: cnn_forward.4
= control target key start
LH: loop header
LB: loop body
LE: loop exit
PB: predicated region body
PF: predicated region fallthrough
CT: control target
= control target key end

     0   :  { %v2029_v1 = vmov 0   ;;  %vm254_vm0 = vcmask 261120   ;;  %s2717_s0 = inlined_call_operand.vmem [shape: bf16[4,288,128], index: 0, kind: input, shape index: {}]   ;;  %s2718_s1 = inlined_call_operand.vmem [shape: bf16[64,288], index: 1, kind: input, shape index: {}]   ;;  %s2719_s2 = inlined_call_operand.vmem [shape: f32[64,1], index: 2, kind: input, shape index: {}]   ;;  %s2720_s3 = inlined_call_operand.vmem [shape: f32[64,1], index: 3, kind: input, shape index: {}]   ;;  %s2721_s4 = inlined_call_operand.vmem [shape: f32[64,128], index: 4, kind: output, shape index: {}]  }
   0x1   :  { %v1941_v0 = vld [vmem:[%s2717_s0 + $0x40] sm:$0xff]   ;;  %1939 = vset.pattern.permute.xlu0 %v2029_v1  ;;  %1940 = vset.pattern.permute.xlu1 %v2029_v1  ;;  %v1942_v2 = vld [vmem:[%s2717_s0 + $0xd0] sm:$0xff]   ;;  %v1945_v5 = vld [vmem:[%s2717_s0 + $0x48] sm:$0xff]  }
   0x2   :  { %1706 = vmatprep.subr.bf16.mxu0 %v1941_v0  ;;  %v1943_v3 = vld [vmem:[%s2717_s0] sm:$0xff]   ;;  %1752 = vmatprep.subr.bf16.mxu1 %v1942_v2  ;;  %v1944_v4 = vld [vmem:[%s2717_s0 + $0x90] sm:$0xff]   ;;  %v1946_v6 = vld [vmem:[%s2717_s0 + $0xd8] sm:$0xff]  }
   0x3   :  { %1707 = vmatpush3.bf16.msra.mxu0 %v1943_v3  ;;  %1753 = vmatpush3.bf16.msra.mxu1 %v1944_v4  ;;  %v1947_v7 = vld [vmem:[%s2717_s0 + $0x8] sm:$0xff]   ;;  %v1948_v8 = vld [vmem:[%s2717_s0 + $0x98] sm:$0xff]   ;;  %v1949_v9 = vld [vmem:[%s2717_s0 + $0x50] sm:$0xff]  }
   0x4   :  { %1708 = vmatprep.subr.bf16.mxu0 %v1945_v5  ;;  %1754 = vmatprep.subr.bf16.mxu1 %v1946_v6  ;;  %v1950_v10 = vld [vmem:[%s2717_s0 + $0xe0] sm:$0xff]   ;;  %v1951_v11 = vld [vmem:[%s2717_s0 + $0x10] sm:$0xff]   ;;  %v1953_v13 = vld [vmem:[%s2717_s0 + $0x58] sm:$0xff]  }
   0x5   :  { %v1952_v12 = vld [vmem:[%s2717_s0 + $0xa0] sm:$0xff]   ;;  %v1954_v14 = vld [vmem:[%s2717_s0 + $0xe8] sm:$0xff]   ;;  %v1955_v15 = vld [vmem:[%s2717_s0 + $0x18] sm:$0xff]  }
   0x6   :  { %v1956_v16 = vld [vmem:[%s2717_s0 + $0xa8] sm:$0xff]   ;;  %v1957_v17 = vld [vmem:[%s2717_s0 + $0x60] sm:$0xff]   ;;  %v1958_v18 = vld [vmem:[%s2717_s0 + $0xf0] sm:$0xff]  }
   0x7   :  { %1709 = vmatpush3.bf16.msra.mxu0 %v1947_v7  ;;  %1755 = vmatpush3.bf16.msra.mxu1 %v1948_v8  ;;  %v1959_v19 = vld [vmem:[%s2717_s0 + $0x20] sm:$0xff]   ;;  %v1960_v20 = vld [vmem:[%s2717_s0 + $0xb0] sm:$0xff]   ;;  %v1961_v21 = vld [vmem:[%s2717_s0 + $0x68] sm:$0xff]  }
   0x8   :  { %1710 = vmatprep.subr.bf16.mxu0 %v1949_v9  ;;  %1756 = vmatprep.subr.bf16.mxu1 %v1950_v10  ;;  %v1962_v22 = vld [vmem:[%s2717_s0 + $0xf8] sm:$0xff]   ;;  %v1963_v23 = vld [vmem:[%s2717_s0 + $0x28] sm:$0xff]   ;;  %v1965_v25 = vld [vmem:[%s2717_s0 + $0x70] sm:$0xff]  }
   0x9   :  { %v1964_v24 = vld [vmem:[%s2717_s0 + $0xb8] sm:$0xff]   ;;  %v1966_v26 = vld [vmem:[%s2717_s0 + $0x100] sm:$0xff]   ;;  %v1967_v27 = vld [vmem:[%s2717_s0 + $0x30] sm:$0xff]  }
   0xa   :  { %v1968_v28 = vld [vmem:[%s2717_s0 + $0xc0] sm:$0xff]   ;;  %v1969_v29 = vld [vmem:[%s2717_s0 + $0x78] sm:$0xff]   ;;  %v1970_v30 = vld [vmem:[%s2717_s0 + $0x108] sm:$0xff]  }
   0xb   :  { %1711 = vmatpush3.bf16.msra.mxu0 %v1951_v11  ;;  %1757 = vmatpush3.bf16.msra.mxu1 %v1952_v12  ;;  %v1971_v31 = vld [vmem:[%s2717_s0 + $0x38] sm:$0xff]   ;;  %v1972_v32 = vld [vmem:[%s2717_s0 + $0xc8] sm:$0xff]   ;;  %v2154_v33 = vld [vmem:[%s2718_s1 + $0x4] ss:$12 sps:$4 sm:$0xff]  }
   0xc   :  { %1712 = vmatprep.subr.bf16.mxu0 %v1953_v13  ;;  %1758 = vmatprep.subr.bf16.mxu1 %v1954_v14  ;;  %v2159_v34 = vld [vmem:[%s2718_s1] ss:$12 sps:$4 sm:$0xff]   ;;  %v2183_v40 = vld [vmem:[%s2718_s1 + $0x1c] ss:$12 sps:$4 sm:$0xff]   ;;  %v2188_v41 = vld [vmem:[%s2718_s1 + $0x18] ss:$12 sps:$4 sm:$0xff]  }
   0xd   :  { %299 = vmatprep.mubr.bf16.mxu0 %v2154_v33  ;;  %694 = vmatprep.mubr.bf16.mxu1 %v2154_v33  ;;  %v1976_v35 = vld [vmem:[%s2717_s0 + $0x160] sm:$0xff]   ;;  %v1979_v38 = vld [vmem:[%s2717_s0 + $0x168] sm:$0xff]   ;;  %v1984_v42 = vld [vmem:[%s2717_s0 + $0x170] sm:$0xff]  }
   0xe   :  { %v1977_v36 = vld [vmem:[%s2717_s0 + $0x120] sm:$0xff]   ;;  %v1980_v39 = vld [vmem:[%s2717_s0 + $0x128] sm:$0xff]   ;;  %v1985_v43 = vld [vmem:[%s2717_s0 + $0x130] sm:$0xff]  }
   0xf   :  { %1713 = vmatpush3.bf16.msra.mxu0 %v1955_v15  ;;  %1759 = vmatpush3.bf16.msra.mxu1 %v1956_v16  ;;  %v1978_v37 = vld [vmem:[%s2717_s0 + $0x80] sm:$0xff]   ;;  %v1986_v44 = vld [vmem:[%s2717_s0 + $0x178] sm:$0xff]   ;;  %v1993_v49 = vld [vmem:[%s2717_s0 + $0x88] sm:$0xff]  }
  0x10   :  { %1714 = vmatprep.subr.bf16.mxu0 %v1957_v17  ;;  %1760 = vmatprep.subr.bf16.mxu1 %v1958_v18  ;;  %v1987_v45 = vld [vmem:[%s2717_s0 + $0x138] sm:$0xff]   ;;  %v2209_v46 = vld [vmem:[%s2718_s1 + $0x34] ss:$12 sps:$4 sm:$0xff]   ;;  %v1994_v51 = vld [vmem:[%s2717_s0 + $0x188] sm:$0xff]  }
  0x11   :  { %v2214_v47 = vld [vmem:[%s2718_s1 + $0x30] ss:$12 sps:$4 sm:$0xff]   ;;  %v1991_v48 = vld [vmem:[%s2717_s0 + $0x180] sm:$0xff]   ;;  %v2233_v52 = vld [vmem:[%s2718_s1 + $0x4c] ss:$12 sps:$4 sm:$0xff]  }
  0x12   :  { %v1992_v50 = vld [vmem:[%s2717_s0 + $0x140] sm:$0xff]   ;;  %v1995_v53 = vld [vmem:[%s2717_s0 + $0x148] sm:$0xff]   ;;  %v1999_v54 = vld [vmem:[%s2717_s0 + $0x190] sm:$0xff]  }
  0x13   :  { %1715 = vmatpush3.bf16.msra.mxu0 %v1959_v19  ;;  %1761 = vmatpush3.bf16.msra.mxu1 %v1960_v20  ;;  %v2248_v55 = vld [vmem:[%s2718_s1 + $0x48] ss:$12 sps:$4 sm:$0xff]   ;;  %v2001_v58 = vld [vmem:[%s2717_s0 + $0x198] sm:$0xff]   ;;  %v2278_v62 = vld [vmem:[%s2718_s1 + $0x20] ss:$12 sps:$4 sm:$0xff]  }
  0x14   :  { %1716 = vmatprep.subr.bf16.mxu0 %v1961_v21  ;;  %1762 = vmatprep.subr.bf16.mxu1 %v1962_v22  ;;  %v2253_v56 = vld [vmem:[%s2718_s1 + $0x8] ss:$12 sps:$4 sm:$0xff]   ;;  %v2002_v60 = vld [vmem:[%s2717_s0 + $0x158] sm:$0xff]   ;;  %v2012_v4 = vld [vmem:[%s2717_s0 + $0x200] sm:$0xff]  }
  0x15   :  { %v2000_v57 = vld [vmem:[%s2717_s0 + $0x150] sm:$0xff]   ;;  %v2286_v0 = vld [vmem:[%s2718_s1 + $0x38] ss:$12 sps:$4 sm:$0xff]   ;;  %v2015_v8 = vld [vmem:[%s2717_s0 + $0x208] sm:$0xff]  }
  0x16   :  { %v2007_v59 = vld [vmem:[%s2717_s0 + $0x110] sm:$0xff]   ;;  %v2008_v1 = vld [vmem:[%s2717_s0 + $0x1f8] sm:$0xff]   ;;  %v2019_v6 = vld [vmem:[%s2717_s0 + $0x1a0] sm:$0xff]  }
  0x17   :  { %1717 = vmatpush3.bf16.msra.mxu0 %v1963_v23  ;;  %1763 = vmatpush3.bf16.msra.mxu1 %v1964_v24  ;;  %v2005_v61 = vld [vmem:[%s2717_s0 + $0x1f0] sm:$0xff]   ;;  %v2014_v2 = vld [vmem:[%s2717_s0 + $0x118] sm:$0xff]   ;;  %v2013_v7 = vld [vmem:[%s2717_s0 + $0x1c0] sm:$0xff]  }
  0x18   :  { %1718 = vmatprep.subr.bf16.mxu0 %v1965_v25  ;;  %1764 = vmatprep.subr.bf16.mxu1 %v1966_v26  ;;  %v2006_v63 = vld [vmem:[%s2717_s0 + $0x1b0] sm:$0xff]   ;;  %v2009_v3 = vld [vmem:[%s2717_s0 + $0x1b8] sm:$0xff]   ;;  %v2016_v9 = vld [vmem:[%s2717_s0 + $0x1c8] sm:$0xff]  }
  0x19   :  { %v2309_v5 = vld [vmem:[%s2718_s1 + $0x50] ss:$12 sps:$4 sm:$0xff]   ;;  %v34_v12 = vld [vmem:[%s2719_s2] sm:$0xff]  ;;  %v2024_v15 = vld [vmem:[%s2717_s0 + $0x1a8] sm:$0xff]  }
  0x1a   :  { %v2017_v10 = vld [vmem:[%s2717_s0 + $0x210] sm:$0xff]   ;;  %v2020_v14 = vld [vmem:[%s2717_s0 + $0x218] sm:$0xff]   ;;  %399 = vperm.xlu0 %1939, %v34_v12   ;;  %v35_v16 = vld [vmem:[%s2719_s2 + $0x8] sm:$0xff] }
  0x1b   :  { %1719 = vmatpush3.bf16.msra.mxu0 %v1967_v27  ;;  %1765 = vmatpush3.bf16.msra.mxu1 %v1968_v28  ;;  %v2018_v11 = vld [vmem:[%s2717_s0 + $0x1d0] sm:$0xff]   ;;  %v2021_v17 = vld [vmem:[%s2717_s0 + $0x1d8] sm:$0xff]   ;;  %v2022_v20 = vld [vmem:[%s2717_s0 + $0x220] sm:$0xff]  }
  0x1c   :  { %1720 = vmatprep.subr.bf16.mxu0 %v1969_v29  ;;  %1766 = vmatprep.subr.bf16.mxu1 %v1970_v30  ;;  %v36_v13 = vld [vmem:[%s2719_s2 + $0x10] sm:$0xff]  ;;  %v37_v19 = vld [vmem:[%s2719_s2 + $0x18] sm:$0xff]  ;;  %v38_v21 = vld [vmem:[%s2719_s2 + $0x20] sm:$0xff] }
  0x1d   :  { %409 = vperm.xlu1 %1940, %v36_v13   ;;  %v2027_v18 = vld [vmem:[%s2717_s0 + $0x230] sm:$0xff]   ;;  %v2023_v22 = vld [vmem:[%s2717_s0 + $0x1e0] sm:$0xff]   ;;  %v2025_v23 = vld [vmem:[%s2717_s0 + $0x228] sm:$0xff]  }
  0x1e   :  { %404 = vperm.xlu0 %1939, %v35_v16   ;;  %v39_v24 = vld [vmem:[%s2719_s2 + $0x28] sm:$0xff]  ;;  %v40_v25 = vld [vmem:[%s2719_s2 + $0x30] sm:$0xff]  ;;  %v41_v27 = vld [vmem:[%s2719_s2 + $0x38] sm:$0xff] }
  0x1f   :  { %1721 = vmatpush3.bf16.msra.mxu0 %v1971_v31  ;;  %1767 = vmatpush3.bf16.msra.mxu1 %v1972_v32  ;;  %v2026_v26 = vld [vmem:[%s2717_s0 + $0x1e8] sm:$0xff]   ;;  %v42_v28 = vld [vmem:[%s2720_s3] sm:$0xff]  ;;  %v2028_v29 = vld [vmem:[%s2717_s0 + $0x238] sm:$0xff]  }
  0x20   :  { %1798 = vmatprep.subr.bf16.mxu1 %v1976_v35  ;;  %1890 = vmatprep.subr.bf16.mxu0 %v1978_v37  ;;  %v43_v30 = vld [vmem:[%s2720_s3 + $0x8] sm:$0xff]  ;;  %v44_v31 = vld [vmem:[%s2720_s3 + $0x10] sm:$0xff]  ;;  %v45_v32 = vld [vmem:[%s2720_s3 + $0x18] sm:$0xff] }
  0x21   :  { %414 = vperm.xlu1 %1940, %v37_v19   ;;  %v48_v35 = vld [vmem:[%s2720_s3 + $0x30] sm:$0xff] }
  0x22   :  { %300 = vmatmul.mubr.bf16.vlgmr.msra.gmra.mrb[0].mxu0 %v2159_v34  ;;  %695 = vmatmul.mubr.bf16.vlgmr.msra.gmra.mrb[0].mxu1 %v2159_v34 }
  0x23   :  { %1799 = vmatpush3.bf16.msra.mxu1 %v1977_v36  ;;  %1891 = vmatpush3.bf16.msra.mxu0 %v1978_v37  ;;  %v49_v36 = vld [vmem:[%s2720_s3 + $0x38] sm:$0xff] }
  0x24   :  { %1800 = vmatprep.subr.bf16.mxu1 %v1979_v38  ;;  %307 = vmatprep.mubr.bf16.mxu0 %v2183_v40 }
  0x25   :  { %702 = vmatprep.mubr.bf16.mxu1 %v2183_v40  ;;  %1892 = vmatprep.subr.bf16.mxu0 %v1993_v49 }
  0x26   :  { %419 = vperm.xlu0 %1939, %v38_v21   ;;  %424 = vperm.xlu1 %1940, %v39_v24  }
  0x27   :  { %1801 = vmatpush3.bf16.msra.mxu1 %v1980_v39  ;;  %1893 = vmatpush3.bf16.msra.mxu0 %v1993_v49 }
  0x28   :  { %1802 = vmatprep.subr.bf16.mxu1 %v1984_v42  ;;  %1902 = vmatprep.subr.bf16.mxu0 %v2007_v59 }
  0x2a   :  { %308 = vmatmul.mubr.bf16.gmra.mrb[4].mxu0 %v2188_v41  ;;  %703 = vmatmul.mubr.bf16.gmra.mrb[4].mxu1 %v2188_v41 }
  0x2b   :  { %1803 = vmatpush3.bf16.msra.mxu1 %v1985_v43  ;;  %315 = vmatprep.mubr.bf16.mxu0 %v2209_v46 }
  0x2c   :  { %1804 = vmatprep.subr.bf16.mxu1 %v1986_v44  ;;  %710 = vmatprep.mubr.bf16.mxu1 %v2209_v46 }
  0x2d   :  { %429 = vperm.xlu0 %1939, %v40_v25   ;;  %434 = vperm.xlu1 %1940, %v41_v27  }
  0x2f   :  { %1805 = vmatpush3.bf16.msra.mxu1 %v1987_v45 }
  0x30   :  { %1806 = vmatprep.subr.bf16.mxu1 %v1991_v48 }
  0x31   :  { %447 = vperm.xlu0 %1939, %v42_v28   ;;  %452 = vperm.xlu1 %1940, %v43_v30  }
  0x32   :  { %316 = vmatmul.mubr.bf16.gmra.mrb[8].mxu0 %v2214_v47  ;;  %711 = vmatmul.mubr.bf16.gmra.mrb[8].mxu1 %v2214_v47 }
  0x33   :  { %323 = vmatprep.mubr.bf16.mxu0 %v2233_v52  ;;  %1807 = vmatpush3.bf16.msra.mxu1 %v1992_v50 }
  0x34   :  { %718 = vmatprep.mubr.bf16.mxu1 %v2233_v52  ;;  %1808 = vmatprep.subr.bf16.mxu1 %v1994_v51 }
  0x35   :  { %457 = vperm.xlu0 %1939, %v44_v31   ;;  %462 = vperm.xlu1 %1940, %v45_v32  }
  0x37   :  { %1809 = vmatpush3.bf16.msra.mxu1 %v1995_v53 }
  0x38   :  { %1810 = vmatprep.subr.bf16.mxu1 %v1999_v54 }
  0x3a   :  { %324 = vmatmul.mubr.bf16.gmra.mrb[12].mxu0 %v2248_v55  ;;  %719 = vmatmul.mubr.bf16.gmra.mrb[12].mxu1 %v2248_v55 }
  0x3b   :  { %1894 = vmatprep.mubr.msk.bf16.mxu0 %vm254_vm0, %v2253_v56  ;;  %1811 = vmatpush3.bf16.msra.mxu1 %v2000_v57 }
  0x3c   :  { %1017 = vmatprep.mubr.bf16.mxu1 %v2154_v33  ;;  %1812 = vmatprep.subr.bf16.mxu1 %v2001_v58 }
  0x3f   :  { %1813 = vmatpush3.bf16.msra.mxu1 %v2002_v60 }
  0x40   :  { %1844 = vmatprep.subr.bf16.mxu1 %v2005_v61 }
  0x42   :  { %1895 = vmatmul.mubr.msk.bf16.vlgmr.msra.gmra.mrb[16].mxu0 %vm254_vm0, %v2278_v62  ;;  %1018 = vmatmul.mubr.bf16.vlgmr.msra.gmra.mrb[16].mxu1 %v2159_v34 }
  0x43   :  { %1903 = vmatpush3.bf16.msra.mxu0 %v2007_v59  ;;  %1845 = vmatpush3.bf16.msra.mxu1 %v2006_v63 }
  0x44   :  { %1898 = vmatprep.mubr.msk.bf16.mxu0 %vm254_vm0, %v2286_v0  ;;  %1846 = vmatprep.subr.bf16.mxu1 %v2008_v1 }
  0x45   :  { %1025 = vmatprep.mubr.bf16.mxu1 %v2183_v40  ;;  %1904 = vmatprep.subr.bf16.mxu0 %v2014_v2 }
  0x47   :  { %1905 = vmatpush3.bf16.msra.mxu0 %v2014_v2  ;;  %1847 = vmatpush3.bf16.msra.mxu1 %v2009_v3 }
  0x48   :  { %1848 = vmatprep.subr.bf16.mxu1 %v2012_v4  ;;  %1914 = vmatprep.subr.bf16.mxu0 %v2019_v6 }
  0x4a   :  { %1899 = vmatmul.mubr.msk.bf16.gmra.mrb[20].mxu0 %vm254_vm0, %v2309_v5  ;;  %1026 = vmatmul.mubr.bf16.gmra.mrb[20].mxu1 %v2188_v41 }
  0x4b   :  { %1906 = vmatprep.mubr.msk.bf16.mxu0 %vm254_vm0, %v2253_v56  ;;  %1849 = vmatpush3.bf16.msra.mxu1 %v2013_v7 }
  0x4c   :  { %1033 = vmatprep.mubr.bf16.mxu1 %v2209_v46  ;;  %1850 = vmatprep.subr.bf16.mxu1 %v2015_v8 }
  0x4f   :  { %1851 = vmatpush3.bf16.msra.mxu1 %v2016_v9 }
  0x50   :  { %1852 = vmatprep.subr.bf16.mxu1 %v2017_v10 }
  0x52   :  { %1907 = vmatmul.mubr.msk.bf16.vlgmr.msra.gmra.mrb[24].mxu0 %vm254_vm0, %v2278_v62  ;;  %1034 = vmatmul.mubr.bf16.gmra.mrb[24].mxu1 %v2214_v47 }
  0x53   :  { %1915 = vmatpush3.bf16.msra.mxu0 %v2019_v6  ;;  %1853 = vmatpush3.bf16.msra.mxu1 %v2018_v11 }
  0x54   :  { %1910 = vmatprep.mubr.msk.bf16.mxu0 %vm254_vm0, %v2286_v0  ;;  %1854 = vmatprep.subr.bf16.mxu1 %v2020_v14 }
  0x55   :  { %1041 = vmatprep.mubr.bf16.mxu1 %v2233_v52  ;;  %1916 = vmatprep.subr.bf16.mxu0 %v2024_v15 }
  0x57   :  { %1917 = vmatpush3.bf16.msra.mxu0 %v2024_v15  ;;  %1855 = vmatpush3.bf16.msra.mxu1 %v2021_v17 }
  0x58   :  { %1926 = vmatprep.subr.bf16.mxu0 %v2027_v18  ;;  %1856 = vmatprep.subr.bf16.mxu1 %v2022_v20 }
  0x5a   :  { %1911 = vmatmul.mubr.msk.bf16.gmra.mrb[28].mxu0 %vm254_vm0, %v2309_v5  ;;  %1042 = vmatmul.mubr.bf16.gmra.mrb[28].mxu1 %v2248_v55 }
  0x5b   :  { %1918 = vmatprep.mubr.msk.bf16.mxu0 %vm254_vm0, %v2253_v56  ;;  %1857 = vmatpush3.bf16.msra.mxu1 %v2023_v22 }
  0x5c   :  { %1332 = vmatprep.mubr.bf16.mxu1 %v2154_v33  ;;  %1858 = vmatprep.subr.bf16.mxu1 %v2025_v23  ;;  %v46_v33 = vld [vmem:[%s2720_s3 + $0x20] sm:$0xff] }
  0x5d   :  { %467 = vperm.xlu0 %1939, %v46_v33  }
  0x5f   :  { %1859 = vmatpush3.bf16.msra.mxu1 %v2026_v26 }
  0x61   :  { %477 = vperm.xlu0 %1939, %v48_v35  }
  0x62   :  { %1919 = vmatmul.mubr.msk.bf16.vlgmr.msra.gmra.mrb[32].mxu0 %vm254_vm0, %v2278_v62  ;;  %1333 = vmatmul.mubr.bf16.vlgmr.msra.gmra.mrb[32].mxu1 %v2159_v34  ;;  %v47_v34 = vld [vmem:[%s2720_s3 + $0x28] sm:$0xff] }
  0x63   :  { %1927 = vmatpush3.bf16.msra.mxu0 %v2027_v18  ;;  %1922 = vmatprep.mubr.msk.bf16.mxu0 %vm254_vm0, %v2286_v0 }
  0x64   :  { %1340 = vmatprep.mubr.bf16.mxu1 %v2183_v40  ;;  %1928 = vmatprep.subr.bf16.mxu0 %v2028_v29 }
  0x65   :  { %472 = vperm.xlu1 %1940, %v47_v34  }
  0x67   :  { %1929 = vmatpush3.bf16.msra.mxu0 %v2028_v29 }
  0x69   :  { %482 = vperm.xlu1 %1940, %v49_v36  }
  0x6a   :  { %1923 = vmatmul.mubr.msk.bf16.gmra.mrb[36].mxu0 %vm254_vm0, %v2309_v5  ;;  %1341 = vmatmul.mubr.bf16.gmra.mrb[36].mxu1 %v2188_v41 }
  0x6b   :  { %1930 = vmatprep.mubr.msk.bf16.mxu0 %vm254_vm0, %v2253_v56  ;;  %1348 = vmatprep.mubr.bf16.mxu1 %v2209_v46 }
  0x72   :  { %1931 = vmatmul.mubr.msk.bf16.vlgmr.msra.gmra.mrb[40].mxu0 %vm254_vm0, %v2278_v62  ;;  %1349 = vmatmul.mubr.bf16.gmra.mrb[40].mxu1 %v2214_v47 }
  0x73   :  { %1934 = vmatprep.mubr.msk.bf16.mxu0 %vm254_vm0, %v2286_v0  ;;  %1356 = vmatprep.mubr.bf16.mxu1 %v2233_v52 }
  0x7a   :  { %1935 = vmatmul.mubr.msk.bf16.gmra.mrb[44].mxu0 %vm254_vm0, %v2309_v5  ;;  %1357 = vmatmul.mubr.bf16.gmra.mrb[44].mxu1 %v2248_v55 }
  0x99   :  { %v2443_v37 = vpop.permute.xlu0 %399 }
  0x9c   :  { %v2445_v38 = vpop.permute.xlu1 %409 }
  0x9d   :  { %v2447_v39 = vpop.permute.xlu0 %404 }
  0xa0   :  { %v2449_v41 = vpop.permute.xlu1 %414 }
  0xa5   :  { %v2455_v53 = vpop.permute.xlu0 %419  ;;  %v2457_v55 = vpop.permute.xlu1 %424 }
  0xac   :  { %v2463_v3 = vpop.permute.xlu0 %429  ;;  %v2465_v5 = vpop.permute.xlu1 %434 }
  0xb0   :  { %v2471_v17 = vpop.permute.xlu0 %447  ;;  %v2473_v19 = vpop.permute.xlu1 %452 }
  0xb4   :  { %v2479_v31 = vpop.permute.xlu0 %457  ;;  %v2481_v33 = vpop.permute.xlu1 %462 }
  0xf5   :  { %v1722_v40 = vpop.f32.mrb[0].mxu0  ;;  %v1768_v42 = vpop.f32.mrb[0].mxu1 }
  0xf6   :  { %v1723_v43 = vpop.f32.mrb[1].mxu0  ;;  %v1769_v45 = vpop.f32.mrb[1].mxu1 }
  0xf7   :  { %v1724_v44 = vadd.f32 %v1723_v43, %v1722_v40  ;;  %v1725_v46 = vpop.f32.mrb[2].mxu0  ;;  %v2451_v47 = vadd.f32 %v1769_v45, %v1768_v42  ;;  %v1771_v48 = vpop.f32.mrb[2].mxu1 }
  0xf8   :  { %v1726_v49 = vpop.f32.mrb[3].mxu0  ;;  %v1772_v51 = vpop.f32.mrb[3].mxu1 }
  0xf9   :  { %v1727_v50 = vadd.f32 %v1726_v49, %v1725_v46  ;;  %v2453_v52 = vadd.f32 %v1772_v51, %v1771_v48 }
  0xfd   :  { %v1728_v54 = vpop.f32.mrb[4].mxu0  ;;  %v1774_v56 = vpop.f32.mrb[4].mxu1 }
  0xfe   :  { %v1729_v57 = vpop.f32.mrb[5].mxu0  ;;  %v1775_v59 = vpop.f32.mrb[5].mxu1 }
  0xff   :  { %v1730_v58 = vadd.f32 %v1729_v57, %v1728_v54  ;;  %v1731_v60 = vpop.f32.mrb[6].mxu0  ;;  %v2459_v61 = vadd.f32 %v1775_v59, %v1774_v56  ;;  %v1777_v62 = vpop.f32.mrb[6].mxu1 }
 0x100   :  { %v1732_v63 = vpop.f32.mrb[7].mxu0  ;;  %v1778_v1 = vpop.f32.mrb[7].mxu1 }
 0x101   :  { %v1733_v0 = vadd.f32 %v1732_v63, %v1731_v60  ;;  %v2461_v2 = vadd.f32 %v1778_v1, %v1777_v62  ;;  %v2493_v63 = vpop.permute.xlu1 %472 }
 0x105   :  { %v1734_v4 = vpop.f32.mrb[8].mxu0  ;;  %v1780_v6 = vpop.f32.mrb[8].mxu1 }
 0x106   :  { %v1735_v7 = vpop.f32.mrb[9].mxu0  ;;  %v1781_v9 = vpop.f32.mrb[9].mxu1 }
 0x107   :  { %v1736_v8 = vadd.f32 %v1735_v7, %v1734_v4  ;;  %v1737_v10 = vpop.f32.mrb[10].mxu0  ;;  %v2467_v11 = vadd.f32 %v1781_v9, %v1780_v6  ;;  %v1783_v12 = vpop.f32.mrb[10].mxu1 }
 0x108   :  { %v1738_v13 = vpop.f32.mrb[11].mxu0  ;;  %v1784_v15 = vpop.f32.mrb[11].mxu1 }
 0x109   :  { %v1739_v14 = vadd.f32 %v1738_v13, %v1737_v10  ;;  %v2469_v16 = vadd.f32 %v1784_v15, %v1783_v12 }
 0x10d   :  { %v1740_v18 = vpop.f32.mrb[12].mxu0  ;;  %v1786_v20 = vpop.f32.mrb[12].mxu1 }
 0x10e   :  { %v1741_v21 = vpop.f32.mrb[13].mxu0  ;;  %v1787_v23 = vpop.f32.mrb[13].mxu1 }
 0x10f   :  { %v1742_v22 = vadd.f32 %v1741_v21, %v1740_v18  ;;  %v1743_v24 = vpop.f32.mrb[14].mxu0  ;;  %v2475_v25 = vadd.f32 %v1787_v23, %v1786_v20  ;;  %v1789_v26 = vpop.f32.mrb[14].mxu1 }
 0x110   :  { %v1744_v27 = vpop.f32.mrb[15].mxu0  ;;  %v1790_v29 = vpop.f32.mrb[15].mxu1 }
 0x111   :  { %v1745_v28 = vadd.f32 %v1744_v27, %v1743_v24  ;;  %v2477_v30 = vadd.f32 %v1790_v29, %v1789_v26 }
 0x115   :  { %v1896_v32 = vpop.f32.mrb[16].mxu0  ;;  %v1814_v35 = vpop.f32.mrb[16].mxu1 }
 0x116   :  { %v375_v34 = vadd.f32 %v1896_v32, %v1730_v58  ;;  %v366_v36 = vpop.f32.mrb[17].mxu0  ;;  %v1815_v42 = vpop.f32.mrb[17].mxu1 }
 0x117   :  { %v367_v40 = vadd.f32 %v1724_v44, %v366_v36  ;;  %v1897_v43 = vpop.f32.mrb[18].mxu0  ;;  %v2483_v45 = vadd.f32 %v1815_v42, %v1814_v35  ;;  %v1817_v48 = vpop.f32.mrb[18].mxu1 }
 0x118   :  { %v378_v46 = vadd.f32 %v1897_v43, %v1733_v0  ;;  %v369_v49 = vpop.f32.mrb[19].mxu0  ;;  %v1818_v54 = vpop.f32.mrb[19].mxu1  ;;  %v439_v56 = vmul.f32 %v2445_v38, %v375_v34 }
 0x119   :  { %v370_v51 = vadd.f32 %v1727_v50, %v369_v49  ;;  %v437_v57 = vmul.f32 %v2443_v37, %v367_v40  ;;  %v2487_v59 = vadd.f32 %v1818_v54, %v1817_v48  ;;  %v2491_v44 = vpop.permute.xlu0 %467  ;;  %v2508_v36 = vpop.permute.xlu1 %482 }
 0x11a   :  { %v440_v58 = vmul.f32 %v2449_v41, %v378_v46  ;;  %v487_v50 = vadd.f32 %v2479_v31, %v439_v56 }
 0x11b   :  { %v438_v60 = vmul.f32 %v2447_v39, %v370_v51  ;;  %v485_v0 = vadd.f32 %v2471_v17, %v437_v57 }
 0x11c   :  { %v488_v9 = vadd.f32 %v2481_v33, %v440_v58  ;;  %vm495_vm1 = vcmp.ge.f32.partialorder %v487_v50, 0.0 }
 0x11d   :  { %v1900_v62 = vpop.f32.mrb[20].mxu0  ;;  %v1820_v4 = vpop.f32.mrb[20].mxu1  ;;  %v486_v7 = vadd.f32 %v2473_v19, %v438_v60  ;;  %v501_v27 = vmul.f32 0.01, %v485_v0  ;;  %vm493_vm2 = vcmp.ge.f32.partialorder %v485_v0, 0.0 }
 0x11e   :  { %v391_v1 = vadd.f32 %v1900_v62, %v1742_v22  ;;  %v382_v6 = vpop.f32.mrb[21].mxu0  ;;  %v1821_v12 = vpop.f32.mrb[21].mxu1  ;;  %v503_v22 = vmul.f32 0.01, %v487_v50  ;;  %v504_v34 = vmul.f32 0.01, %v488_v9 }
 0x11f   :  { %v383_v10 = vadd.f32 %v1736_v8, %v382_v6  ;;  %v1901_v13 = vpop.f32.mrb[22].mxu0  ;;  %v2499_v15 = vadd.f32 %v1821_v12, %v1820_v4  ;;  %v1823_v20 = vpop.f32.mrb[22].mxu1  ;;  %v502_v8 = vmul.f32 0.01, %v486_v7  ;;  %vm494_vm3 = vcmp.ge.f32.partialorder %v486_v7, 0.0 }
 0x120   :  { %v394_v18 = vadd.f32 %v1901_v13, %v1745_v28  ;;  %v385_v21 = vpop.f32.mrb[23].mxu0  ;;  %v443_v23 = vmul.f32 %v2463_v3, %v391_v1  ;;  %v1824_v26 = vpop.f32.mrb[23].mxu1  ;;  %vm496_vm4 = vcmp.ge.f32.partialorder %v488_v9, 0.0  ;;  %v2510_v40 = vsel %vm493_vm2, %v485_v0, %v501_v27 }
 0x121   :  { %v386_v24 = vadd.f32 %v1739_v14, %v385_v21  ;;  %v2502_v29 = vadd.f32 %v1824_v26, %v1823_v20  ;;  %v2504_v32 = vpop.permute.xlu0 %477  ;;  %v441_v35 = vmul.f32 %v2455_v53, %v383_v10  ;;  %v2512_v42 = vsel %vm495_vm1, %v487_v50, %v503_v22 }
 0x122   :  { %v491_v28 = vadd.f32 %v2504_v32, %v443_v23  ;;  %v444_v43 = vmul.f32 %v2465_v5, %v394_v18  ;;  %v2516_v51 = vsel %vm494_vm3, %v486_v7, %v502_v8  ;;  %v2518_v54 = vsel %vm496_vm4, %v488_v9, %v504_v34 }
 0x123   :  { %v2521_v56 = vadd.f32 %v2491_v44, %v441_v35  ;;  %v442_v62 = vmul.f32 %v2457_v55, %v386_v24 }
 0x124   :  { %vm499_vm5 = vcmp.ge.f32.partialorder %v491_v28, 0.0  ;;  %v507_v6 = vmul.f32 0.01, %v491_v28 }
 0x125   :  { %v1908_v14 = vpop.f32.mrb[24].mxu0  ;;  %v1826_v48 = vpop.f32.mrb[24].mxu1  ;;  %vm497_vm6 = vcmp.ge.f32.partialorder %v2521_v56, 0.0 }
 0x126   :  { %v770_v46 = vadd.f32 %v1908_v14, %v2459_v61  ;;  %v761_v49 = vpop.f32.mrb[25].mxu0  ;;  %v1827_v58 = vpop.f32.mrb[25].mxu1  ;;  %v2547_v26 = vsel %vm499_vm5, %v491_v28, %v507_v6 }
 0x127   :  { %v762_v57 = vadd.f32 %v2451_v47, %v761_v49  ;;  %v1909_v60 = vpop.f32.mrb[26].mxu0  ;;  %v2526_v50 = vadd.f32 %v1827_v58, %v1826_v48  ;;  %v1829_v1 = vpop.f32.mrb[26].mxu1  ;;  %v2532_v47 = vadd.f32 %v2508_v36, %v444_v43 }
 0x128   :  { %v794_v0 = vmul.f32 %v770_v46, %v2445_v38  ;;  %v773_v61 = vadd.f32 %v1909_v60, %v2461_v2  ;;  %v764_v4 = vpop.f32.mrb[27].mxu0  ;;  %v1830_v10 = vpop.f32.mrb[27].mxu1  ;;  %v505_v2 = vmul.f32 0.01, %v2521_v56 }
 0x129   :  { %v792_v7 = vmul.f32 %v762_v57, %v2443_v37  ;;  %v765_v9 = vadd.f32 %v2453_v52, %v764_v4  ;;  %v2536_v18 = vadd.f32 %v1830_v10, %v1829_v1  ;;  %v2543_v52 = vadd.f32 %v2493_v63, %v442_v62 }
 0x12a   :  { %v802_v12 = vadd.f32 %v794_v0, %v2479_v31  ;;  %v795_v13 = vmul.f32 %v773_v61, %v2449_v41  ;;  %vm500_vm11 = vcmp.ge.f32.partialorder %v2532_v47, 0.0 }
 0x12b   :  { %v800_v20 = vadd.f32 %v792_v7, %v2471_v17  ;;  %v793_v21 = vmul.f32 %v765_v9, %v2447_v39  ;;  %vm498_vm13 = vcmp.ge.f32.partialorder %v2543_v52, 0.0 }
 0x12c   :  { %vm810_vm7 = vcmp.ge.f32.partialorder %v802_v12, 0.0  ;;  %v818_v23 = vmul.f32 0.01, %v802_v12  ;;  %v803_v24 = vadd.f32 %v795_v13, %v2481_v33 }
 0x12d   :  { %vm808_vm8 = vcmp.ge.f32.partialorder %v800_v20, 0.0  ;;  %v816_v27 = vmul.f32 0.01, %v800_v20  ;;  %v801_v22 = vadd.f32 %v793_v21, %v2473_v19  ;;  %v1912_v8 = vpop.f32.mrb[28].mxu0  ;;  %v1832_v43 = vpop.f32.mrb[28].mxu1 }
 0x12e   :  { %v2550_v34 = vsel %vm810_vm7, %v802_v12, %v818_v23  ;;  %vm811_vm9 = vcmp.ge.f32.partialorder %v803_v24, 0.0  ;;  %v819_v35 = vmul.f32 0.01, %v803_v24  ;;  %v786_v14 = vadd.f32 %v1912_v8, %v2475_v25  ;;  %v777_v46 = vpop.f32.mrb[29].mxu0  ;;  %v1833_v57 = vpop.f32.mrb[29].mxu1 }
 0x12f   :  { %v2555_v49 = vsel %vm808_vm8, %v800_v20, %v816_v27  ;;  %vm809_vm10 = vcmp.ge.f32.partialorder %v801_v22, 0.0  ;;  %v817_v28 = vmul.f32 0.01, %v801_v22  ;;  %v1913_v58 = vpop.f32.mrb[30].mxu0  ;;  %v778_v25 = vadd.f32 %v2467_v11, %v777_v46  ;;  %v1835_v61 = vpop.f32.mrb[30].mxu1 }
 0x130   :  { %v2559_v62 = vsel %vm811_vm9, %v803_v24, %v819_v35  ;;  %v798_v0 = vmul.f32 %v786_v14, %v2463_v3  ;;  %v780_v1 = vpop.f32.mrb[31].mxu0  ;;  %v1834_v7 = vadd.f32 %v1833_v57, %v1832_v43  ;;  %v789_v9 = vadd.f32 %v1913_v58, %v2477_v30  ;;  %v1836_v10 = vpop.f32.mrb[31].mxu1 }
 0x131   :  { %v2565_v6 = vsel %vm809_vm10, %v801_v22, %v817_v28  ;;  %v796_v20 = vmul.f32 %v778_v25, %v2455_v53  ;;  %v781_v11 = vadd.f32 %v2469_v16, %v780_v1  ;;  %v508_v21 = vmul.f32 0.01, %v2532_v47 }
 0x132   :  { %v806_v13 = vadd.f32 %v798_v0, %v2504_v32  ;;  %v799_v23 = vmul.f32 %v789_v9, %v2465_v5  ;;  %v1837_v24 = vadd.f32 %v1836_v10, %v1835_v61  ;;  %v2581_v8 = vsel %vm497_vm6, %v2521_v56, %v505_v2 }
 0x133   :  { %v804_v30 = vadd.f32 %v796_v20, %v2491_v44  ;;  %v797_v22 = vmul.f32 %v781_v11, %v2457_v55  ;;  %v506_v16 = vmul.f32 0.01, %v2543_v52  ;;  %v2598_v11 = vsel %vm500_vm11, %v2532_v47, %v508_v21 }
 0x134   :  { %vm814_vm12 = vcmp.ge.f32.partialorder %v806_v13, 0.0  ;;  %v822_v27 = vmul.f32 0.01, %v806_v13  ;;  %v807_v35 = vadd.f32 %v799_v23, %v2508_v36 }
 0x135   :  { %v1920_v14 = vpop.f32.mrb[32].mxu0  ;;  %vm812_vm14 = vcmp.ge.f32.partialorder %v804_v30, 0.0  ;;  %v820_v46 = vmul.f32 0.01, %v804_v30  ;;  %v805_v28 = vadd.f32 %v797_v22, %v2493_v63  ;;  %v1860_v57 = vpop.f32.mrb[32].mxu1 }
 0x136   :  { %v2586_v43 = vsel %vm814_vm12, %v806_v13, %v822_v27  ;;  %v1084_v58 = vpop.f32.mrb[33].mxu0  ;;  %vm815_vm15 = vcmp.ge.f32.partialorder %v807_v35, 0.0  ;;  %v823_v56 = vmul.f32 0.01, %v807_v35  ;;  %v1093_v2 = vadd.f32 %v1920_v14, %v2499_v15  ;;  %v1861_v25 = vpop.f32.mrb[33].mxu1 }
 0x137   :  { %v1921_v61 = vpop.f32.mrb[34].mxu0  ;;  %v2592_v1 = vsel %vm812_vm14, %v804_v30, %v820_v46  ;;  %vm813_vm0 = vcmp.ge.f32.partialorder %v805_v28, 0.0  ;;  %v821_v9 = vmul.f32 0.01, %v805_v28  ;;  %v1085_v10 = vadd.f32 %v2483_v45, %v1084_v58  ;;  %v1863_v13 = vpop.f32.mrb[34].mxu1 }
 0x138   :  { %v1087_v20 = vpop.f32.mrb[35].mxu0  ;;  %v2602_v27 = vsel %vm815_vm15, %v807_v35, %v823_v56  ;;  %v1862_v15 = vadd.f32 %v1861_v25, %v1860_v57  ;;  %v1864_v22 = vpop.f32.mrb[35].mxu1  ;;  %v2607_v30 = vsel %vm498_vm13, %v2543_v52, %v506_v16  ;;  %v1096_v47 = vadd.f32 %v1921_v61, %v2502_v29 }
 0x139   :  { %v2611_v14 = vsel %vm813_vm0, %v805_v28, %v821_v9  ;;  %v1117_v35 = vmul.f32 %v1093_v2, %v2445_v38  ;;  %v1088_v46 = vadd.f32 %v2487_v59, %v1087_v20  ;;  %v1865_v57 = vadd.f32 %v1864_v22, %v1863_v13 }
 0x13a   :  { %v1115_v56 = vmul.f32 %v1085_v10, %v2443_v37  ;;  %v1118_v28 = vmul.f32 %v1096_v47, %v2449_v41 }
 0x13b   :  { %v1125_v45 = vadd.f32 %v1117_v35, %v2479_v31  ;;  %v1116_v21 = vmul.f32 %v1088_v46, %v2447_v39 }
 0x13c   :  { %v1123_v20 = vadd.f32 %v1115_v56, %v2471_v17  ;;  %v1126_v35 = vadd.f32 %v1118_v28, %v2481_v33 }
 0x13d   :  { %v1924_v58 = vpop.f32.mrb[36].mxu0  ;;  %v1866_v16 = vpop.f32.mrb[36].mxu1  ;;  %v1141_v22 = vmul.f32 0.01, %v1125_v45  ;;  %vm1133_vm1 = vcmp.ge.f32.partialorder %v1125_v45, 0.0 }
 0x13e   :  { %v1109_v52 = vadd.f32 %v1924_v58, %v1834_v7  ;;  %v1100_v25 = vpop.f32.mrb[37].mxu0  ;;  %v1867_v61 = vpop.f32.mrb[37].mxu1  ;;  %vm1131_vm2 = vcmp.ge.f32.partialorder %v1123_v20, 0.0  ;;  %vm1134_vm3 = vcmp.ge.f32.partialorder %v1126_v35, 0.0 }
 0x13f   :  { %v1101_v29 = vadd.f32 %v2526_v50, %v1100_v25  ;;  %v1925_v9 = vpop.f32.mrb[38].mxu0  ;;  %v1869_v2 = vpop.f32.mrb[38].mxu1  ;;  %v1868_v59 = vadd.f32 %v1867_v61, %v1866_v16  ;;  %v1124_v50 = vadd.f32 %v1116_v21, %v2473_v19  ;;  %v1139_v25 = vmul.f32 0.01, %v1123_v20 }
 0x140   :  { %v1103_v0 = vpop.f32.mrb[39].mxu0  ;;  %v1870_v13 = vpop.f32.mrb[39].mxu1  ;;  %v1112_v10 = vadd.f32 %v1925_v9, %v1837_v24  ;;  %v1149_v61 = vsel %vm1133_vm1, %v1125_v45, %v1141_v22  ;;  %v1121_v9 = vmul.f32 %v1109_v52, %v2463_v3 }
 0x141   :  { %v1104_v7 = vadd.f32 %v2536_v18, %v1103_v0  ;;  %v1871_v58 = vadd.f32 %v1870_v13, %v1869_v2  ;;  %v1119_v46 = vmul.f32 %v1101_v29, %v2455_v53  ;;  %v1142_v0 = vmul.f32 0.01, %v1126_v35 }
 0x142   :  { %vm1132_vm4 = vcmp.ge.f32.partialorder %v1124_v50, 0.0  ;;  %v1140_v28 = vmul.f32 0.01, %v1124_v50  ;;  %v1122_v22 = vmul.f32 %v1112_v10, %v2465_v5 }
 0x143   :  { %v1127_v45 = vadd.f32 %v1119_v46, %v2491_v44 }
 0x145   :  { %v1932_v47 = vpop.f32.mrb[40].mxu0  ;;  %v1872_v23 = vpop.f32.mrb[40].mxu1  ;;  %vm1135_vm7 = vcmp.ge.f32.partialorder %v1127_v45, 0.0 }
 0x146   :  { %v1408_v12 = vadd.f32 %v1932_v47, %v1868_v59  ;;  %v1399_v16 = vpop.f32.mrb[41].mxu0  ;;  %v1873_v24 = vpop.f32.mrb[41].mxu1  ;;  %v1147_v47 = vsel %vm1131_vm2, %v1123_v20, %v1139_v25 }
 0x147   :  { %v1400_v56 = vadd.f32 %v1862_v15, %v1399_v16  ;;  %v1933_v18 = vpop.f32.mrb[42].mxu0  ;;  %v1874_v2 = vadd.f32 %v1873_v24, %v1872_v23  ;;  %v1875_v29 = vpop.f32.mrb[42].mxu1  ;;  %v2639_v23 = vadd.f32 %v1121_v9, %v2504_v32 }
 0x148   :  { %v1432_v21 = vmul.f32 %v1408_v12, %v2445_v38  ;;  %v1411_v4 = vadd.f32 %v1933_v18, %v1871_v58  ;;  %v1402_v59 = vpop.f32.mrb[43].mxu0  ;;  %v1876_v15 = vpop.f32.mrb[43].mxu1  ;;  %v1150_v12 = vsel %vm1134_vm3, %v1126_v35, %v1142_v0  ;;  %v1143_v58 = vmul.f32 0.01, %v1127_v45 }
 0x149   :  { %v1430_v13 = vmul.f32 %v1400_v56, %v2443_v37  ;;  %v1403_v16 = vadd.f32 %v1865_v57, %v1402_v59  ;;  %v1877_v38 = vadd.f32 %v1876_v15, %v1875_v29  ;;  %v1148_v37 = vsel %vm1132_vm4, %v1124_v50, %v1140_v28 }
 0x14a   :  { %v1440_v60 = vadd.f32 %v1432_v21, %v2479_v31  ;;  %v1433_v52 = vmul.f32 %v1411_v4, %v2449_v41  ;;  %v1120_v31 = vmul.f32 %v1104_v7, %v2457_v55  ;;  %v2646_v50 = vadd.f32 %v1122_v22, %v2508_v36 }
 0x14b   :  { %v1438_v48 = vadd.f32 %v1430_v13, %v2471_v17  ;;  %v1431_v20 = vmul.f32 %v1403_v16, %v2447_v39  ;;  %vm1137_vm8 = vcmp.ge.f32.partialorder %v2639_v23, 0.0  ;;  %v2723_v29 = vmax.f32 %v2510_v40, %v2555_v49 }
 0x14c   :  { %vm1448_vm5 = vcmp.ge.f32.partialorder %v1440_v60, 0.0  ;;  %v1456_v10 = vmul.f32 0.01, %v1440_v60  ;;  %v1441_v17 = vadd.f32 %v1433_v52, %v2481_v33  ;;  %v1145_v49 = vmul.f32 0.01, %v2639_v23 }
 0x14d   :  { %vm1446_vm6 = vcmp.ge.f32.partialorder %v1438_v48, 0.0  ;;  %v1454_v57 = vmul.f32 0.01, %v1438_v48  ;;  %v1439_v41 = vadd.f32 %v1431_v20, %v2473_v19  ;;  %v1878_v4 = vpop.f32.mrb[44].mxu1  ;;  %v1936_v35 = vpop.f32.mrb[44].mxu0  ;;  %v1128_v20 = vadd.f32 %v1120_v31, %v2493_v63 }
 0x14e   :  { %v1464_v25 = vsel %vm1448_vm5, %v1440_v60, %v1456_v10  ;;  %v1879_v39 = vpop.f32.mrb[45].mxu1  ;;  %v1415_v24 = vpop.f32.mrb[45].mxu0  ;;  %vm1449_vm9 = vcmp.ge.f32.partialorder %v1441_v17, 0.0  ;;  %v1457_v7 = vmul.f32 0.01, %v1441_v17  ;;  %v2722_v60 = vmax.f32 %v2512_v42, %v2550_v34 }
 0x14f   :  { %v1462_v46 = vsel %vm1446_vm6, %v1438_v48, %v1454_v57  ;;  %v1472_v56 = vmax.f32 %v1149_v61, %v1464_v25  ;;  %v1881_v0 = vpop.f32.mrb[46].mxu1  ;;  %v1937_v33 = vpop.f32.mrb[46].mxu0  ;;  %vm1447_vm10 = vcmp.ge.f32.partialorder %v1439_v41, 0.0  ;;  %v1455_v19 = vmul.f32 0.01, %v1439_v41 }
 0x150   :  { %v1470_v18 = vmax.f32 %v1147_v47, %v1462_v46  ;;  %v1880_v28 = vadd.f32 %v1879_v39, %v1878_v4  ;;  %v1416_v9 = vadd.f32 %v1874_v2, %v1415_v24  ;;  %v1882_v21 = vpop.f32.mrb[47].mxu1  ;;  %v1418_v13 = vpop.f32.mrb[47].mxu0  ;;  %v1465_v61 = vsel %vm1449_vm9, %v1441_v17, %v1457_v7 }
 0x151   :  { %v1480_v48 = vmax.f32 %v2722_v60, %v1472_v56  ;;  %v1883_v47 = vadd.f32 %v1882_v21, %v1881_v0  ;;  %v1473_v22 = vmax.f32 %v1150_v12, %v1465_v61  ;;  %v1463_v15 = vsel %vm1447_vm10, %v1439_v41, %v1455_v19 }
 0x152   :  { %v1478_v59 = vmax.f32 %v2723_v29, %v1470_v18  ;;  %v1424_v16 = vadd.f32 %v1936_v35, %v1880_v28  ;;  %v1434_v52 = vmul.f32 %v1416_v9, %v2455_v53  ;;  %v1471_v42 = vmax.f32 %v1148_v37, %v1463_v15 }
 0x153   :  { %1488 = vst [vmem:[%s2721_s4 + $0x10] sm:$0xff] %v1480_v48  ;;  %v1427_v40 = vadd.f32 %v1937_v33, %v1883_v47  ;;  %v1419_v34 = vadd.f32 %v1877_v38, %v1418_v13  ;;  %v2724_v2 = vmax.f32 %v2518_v54, %v2559_v62  ;;  %v1151_v57 = vsel %vm1135_vm7, %v1127_v45, %v1143_v58 }
 0x154   :  { %1486 = vst [vmem:[%s2721_s4] sm:$0xff] %v1478_v59  ;;  %v1436_v53 = vmul.f32 %v1424_v16, %v2463_v3  ;;  %v1442_v10 = vadd.f32 %v1434_v52, %v2491_v44  ;;  %v2725_v31 = vmax.f32 %v2516_v51, %v2565_v6  ;;  %vm1138_vm11 = vcmp.ge.f32.partialorder %v2646_v50, 0.0 }
 0x155   :  { %v1481_v12 = vmax.f32 %v2724_v2, %v1473_v22  ;;  %v1437_v37 = vmul.f32 %v1427_v40, %v2465_v5  ;;  %v1435_v38 = vmul.f32 %v1419_v34, %v2457_v55  ;;  %v1146_v54 = vmul.f32 0.01, %v2646_v50 }
 0x156   :  { %v1479_v17 = vmax.f32 %v2725_v31, %v1471_v42  ;;  %v1444_v3 = vadd.f32 %v1436_v53, %v2504_v32  ;;  %vm1450_vm12 = vcmp.ge.f32.partialorder %v1442_v10, 0.0  ;;  %v1458_v44 = vmul.f32 0.01, %v1442_v10 }
 0x157   :  { %1489 = vst [vmem:[%s2721_s4 + $0x18] sm:$0xff] %v1481_v12  ;;  %vm1136_vm13 = vcmp.ge.f32.partialorder %v1128_v20, 0.0  ;;  %v1445_v5 = vadd.f32 %v1437_v37, %v2508_v36  ;;  %v1443_v55 = vadd.f32 %v1435_v38, %v2493_v63  ;;  %v1144_v51 = vmul.f32 0.01, %v1128_v20 }
 0x158   :  { %1487 = vst [vmem:[%s2721_s4 + $0x8] sm:$0xff] %v1479_v17  ;;  %vm1452_vm14 = vcmp.ge.f32.partialorder %v1444_v3, 0.0  ;;  %v1460_v62 = vmul.f32 0.01, %v1444_v3  ;;  %v1466_v6 = vsel %vm1450_vm12, %v1442_v10, %v1458_v44  ;;  %v1153_v41 = vsel %vm1137_vm8, %v2639_v23, %v1145_v49 }
 0x159   :  { %v1474_v45 = vmax.f32 %v1151_v57, %v1466_v6  ;;  %vm1453_vm15 = vcmp.ge.f32.partialorder %v1445_v5, 0.0  ;;  %v1461_v32 = vmul.f32 0.01, %v1445_v5  ;;  %vm1451_vm0 = vcmp.ge.f32.partialorder %v1443_v55, 0.0 }
 0x15a   :  { %v1468_v4 = vsel %vm1452_vm14, %v1444_v3, %v1460_v62  ;;  %v1459_v35 = vmul.f32 0.01, %v1443_v55  ;;  %v1154_v36 = vsel %vm1138_vm11, %v2646_v50, %v1146_v54  ;;  %v2726_v63 = vmax.f32 %v2581_v8, %v2592_v1 }
 0x15b   :  { %v1476_v58 = vmax.f32 %v1153_v41, %v1468_v4  ;;  %v1469_v46 = vsel %vm1453_vm15, %v1445_v5, %v1461_v32  ;;  %v1152_v39 = vsel %vm1136_vm13, %v1128_v20, %v1144_v51  ;;  %v2727_v18 = vmax.f32 %v2547_v26, %v2586_v43 }
 0x15c   :  { %v1482_v25 = vmax.f32 %v2726_v63, %v1474_v45  ;;  %v1477_v24 = vmax.f32 %v1154_v36, %v1469_v46  ;;  %v1467_v56 = vsel %vm1451_vm0, %v1443_v55, %v1459_v35  ;;  %v2728_v50 = vmax.f32 %v2598_v11, %v2602_v27 }
 0x15d   :  { %v1484_v23 = vmax.f32 %v2727_v18, %v1476_v58  ;;  %v1475_v7 = vmax.f32 %v1152_v39, %v1467_v56  ;;  %v2729_v8 = vmax.f32 %v2607_v30, %v2611_v14 }
 0x15e   :  { %1490 = vst [vmem:[%s2721_s4 + $0x20] sm:$0xff] %v1482_v25  ;;  %v1485_v0 = vmax.f32 %v2728_v50, %v1477_v24 }
 0x15f   :  { %1492 = vst [vmem:[%s2721_s4 + $0x30] sm:$0xff] %v1484_v23  ;;  %v1483_v1 = vmax.f32 %v2729_v8, %v1475_v7 }
 0x160   :  { %1493 = vst [vmem:[%s2721_s4 + $0x38] sm:$0xff] %v1485_v0 }
 0x161   :  { %1491 = vst [vmem:[%s2721_s4 + $0x28] sm:$0xff] %v1483_v1 }

// kernel: cnn_forward.5
= control target key start
LH: loop header
LB: loop body
LE: loop exit
PB: predicated region body
PF: predicated region fallthrough
CT: control target
= control target key end

     0   :  { %v6110_v1 = vmov 0   ;;  %vm2893_vm0 = vcmask 523264   ;;  %s7695_s0 = inlined_call_operand.vmem [shape: bf16[3136,128], index: 0, kind: input, shape index: {}]   ;;  %s7696_s1 = inlined_call_operand.vmem [shape: bf16[128,3136], index: 1, kind: input, shape index: {}]   ;;  %s7697_s2 = inlined_call_operand.vmem [shape: f32[128,1], index: 2, kind: input, shape index: {}]   ;;  %s7698_s4 = inlined_call_operand.vmem [shape: f32[10,1], index: 4, kind: input, shape index: {}]   ;;  %s7699_s3 = inlined_call_operand.vmem [shape: f32[10,128], index: 3, kind: input, shape index: {}]   ;;  %s7700_s5 = inlined_call_operand.vmem [shape: f32[10,128], index: 5, kind: output, shape index: {}]  }
   0x1   :  { %v5618_v0 = vld [vmem:[%s7695_s0 + $0x40] sm:$0xff]   ;;  %5616 = vset.pattern.permute.xlu0 %v6110_v1  ;;  %5617 = vset.pattern.permute.xlu1 %v6110_v1  ;;  %v5622_v5 = vld [vmem:[%s7695_s0 + $0x48] sm:$0xff]   ;;  %v5626_v9 = vld [vmem:[%s7695_s0 + $0x50] sm:$0xff]  }
   0x2   :  { %v5619_v2 = vld [vmem:[%s7695_s0] sm:$0xff]   ;;  %4726 = vmatprep.subr.bf16.mxu0 %v5618_v0  ;;  %v5623_v6 = vld [vmem:[%s7695_s0 + $0x8] sm:$0xff]   ;;  %v5627_v10 = vld [vmem:[%s7695_s0 + $0x10] sm:$0xff]  }
   0x3   :  { %v5620_v3 = vld [vmem:[%s7695_s0 + $0xc0] sm:$0xff]   ;;  %4727 = vmatpush3.bf16.msra.mxu0 %v5619_v2  ;;  %v5624_v7 = vld [vmem:[%s7695_s0 + $0xc8] sm:$0xff]   ;;  %v5628_v11 = vld [vmem:[%s7695_s0 + $0xd0] sm:$0xff]  }
   0x4   :  { %v5621_v4 = vld [vmem:[%s7695_s0 + $0x80] sm:$0xff]   ;;  %4790 = vmatprep.subr.bf16.mxu1 %v5620_v3  ;;  %4728 = vmatprep.subr.bf16.mxu0 %v5622_v5  ;;  %v5625_v8 = vld [vmem:[%s7695_s0 + $0x88] sm:$0xff]   ;;  %v5629_v12 = vld [vmem:[%s7695_s0 + $0x90] sm:$0xff]  }
   0x5   :  { %4791 = vmatpush3.bf16.msra.mxu1 %v5621_v4  ;;  %v5630_v13 = vld [vmem:[%s7695_s0 + $0x58] sm:$0xff]   ;;  %v5634_v17 = vld [vmem:[%s7695_s0 + $0x60] sm:$0xff]   ;;  %v5638_v21 = vld [vmem:[%s7695_s0 + $0x68] sm:$0xff]  }
   0x6   :  { %4792 = vmatprep.subr.bf16.mxu1 %v5624_v7  ;;  %v5631_v14 = vld [vmem:[%s7695_s0 + $0x18] sm:$0xff]   ;;  %v5635_v18 = vld [vmem:[%s7695_s0 + $0x20] sm:$0xff]   ;;  %v5639_v22 = vld [vmem:[%s7695_s0 + $0x28] sm:$0xff]  }
   0x7   :  { %4729 = vmatpush3.bf16.msra.mxu0 %v5623_v6  ;;  %v5632_v15 = vld [vmem:[%s7695_s0 + $0xd8] sm:$0xff]   ;;  %v5636_v19 = vld [vmem:[%s7695_s0 + $0xe0] sm:$0xff]   ;;  %v5640_v23 = vld [vmem:[%s7695_s0 + $0xe8] sm:$0xff]  }
   0x8   :  { %4730 = vmatprep.subr.bf16.mxu0 %v5626_v9  ;;  %v5633_v16 = vld [vmem:[%s7695_s0 + $0x98] sm:$0xff]   ;;  %v5637_v20 = vld [vmem:[%s7695_s0 + $0xa0] sm:$0xff]   ;;  %v5641_v24 = vld [vmem:[%s7695_s0 + $0xa8] sm:$0xff]  }
   0x9   :  { %4793 = vmatpush3.bf16.msra.mxu1 %v5625_v8  ;;  %v5642_v25 = vld [vmem:[%s7695_s0 + $0x70] sm:$0xff]   ;;  %v5646_v29 = vld [vmem:[%s7695_s0 + $0x78] sm:$0xff]   ;;  %v5649_v32 = vld [vmem:[%s7696_s1] ss:$100 sps:$4 sm:$0xff]  }
   0xa   :  { %4794 = vmatprep.subr.bf16.mxu1 %v5628_v11  ;;  %v5643_v26 = vld [vmem:[%s7695_s0 + $0x30] sm:$0xff]   ;;  %v5647_v30 = vld [vmem:[%s7695_s0 + $0x38] sm:$0xff]   ;;  %v5651_v33 = vld [vmem:[%s7696_s1 + $0x4] ss:$100 sps:$4 sm:$0xff]  }
   0xb   :  { %4731 = vmatpush3.bf16.msra.mxu0 %v5627_v10  ;;  %v5644_v27 = vld [vmem:[%s7695_s0 + $0xf0] sm:$0xff]   ;;  %v5648_v31 = vld [vmem:[%s7695_s0 + $0xf8] sm:$0xff]   ;;  %2950 = vmatprep.mubr.bf16.mxu0 %v5651_v33  ;;  %v5653_v35 = vld [vmem:[%s7696_s1 + $0x8] ss:$100 sps:$4 sm:$0xff]  }
   0xc   :  { %4732 = vmatprep.subr.bf16.mxu0 %v5630_v13  ;;  %v5645_v28 = vld [vmem:[%s7695_s0 + $0xb0] sm:$0xff]   ;;  %v5652_v34 = vld [vmem:[%s7695_s0 + $0xb8] sm:$0xff]   ;;  %v5658_v39 = vld [vmem:[%s7696_s1 + $0xc8] ss:$100 sps:$4 sm:$0xff]  }
   0xd   :  { %4795 = vmatpush3.bf16.msra.mxu1 %v5629_v12  ;;  %v5655_v36 = vld [vmem:[%s7696_s1 + $0xc] ss:$100 sps:$4 sm:$0xff]   ;;  %v5659_v38 = vld [vmem:[%s7696_s1 + $0xd4] ss:$100 sps:$4 sm:$0xff]   ;;  %v5665_v42 = vld [vmem:[%s7696_s1 + $0x19c] ss:$100 sps:$4 sm:$0xff]  }
   0xe   :  { %4796 = vmatprep.subr.bf16.mxu1 %v5632_v15  ;;  %v5656_v37 = vld [vmem:[%s7696_s1 + $0xcc] ss:$100 sps:$4 sm:$0xff]   ;;  %3047 = vmatprep.mubr.bf16.mxu1 %v5655_v36  ;;  %v5662_v40 = vld [vmem:[%s7696_s1 + $0x194] ss:$100 sps:$4 sm:$0xff]   ;;  %v5677_v43 = vld [vmem:[%s7695_s0 + $0x140] sm:$0xff]  }
   0xf   :  { %4733 = vmatpush3.bf16.msra.mxu0 %v5631_v14  ;;  %v5661_v41 = vld [vmem:[%s7696_s1 + $0xd0] ss:$100 sps:$4 sm:$0xff]   ;;  %v5680_v45 = vld [vmem:[%s7695_s0 + $0x100] sm:$0xff]   ;;  %v5667_v47 = vld [vmem:[%s7696_s1 + $0x198] ss:$100 sps:$4 sm:$0xff]  }
  0x10   :  { %4734 = vmatprep.subr.bf16.mxu0 %v5634_v17  ;;  %v5664_v44 = vld [vmem:[%s7696_s1 + $0x190] ss:$100 sps:$4 sm:$0xff]   ;;  %v5668_v46 = vld [vmem:[%s7696_s1 + $0x25c] ss:$100 sps:$4 sm:$0xff]   ;;  %v5671_v49 = vld [vmem:[%s7696_s1 + $0x264] ss:$100 sps:$4 sm:$0xff]  }
  0x11   :  { %4797 = vmatpush3.bf16.msra.mxu1 %v5633_v16  ;;  %v5682_v48 = vld [vmem:[%s7695_s0 + $0x1c0] sm:$0xff]   ;;  %v5684_v51 = vld [vmem:[%s7695_s0 + $0x148] sm:$0xff]   ;;  %v5670_v54 = vld [vmem:[%s7696_s1 + $0x258] ss:$100 sps:$4 sm:$0xff]  }
  0x12   :  { %4798 = vmatprep.subr.bf16.mxu1 %v5636_v19  ;;  %v5683_v50 = vld [vmem:[%s7695_s0 + $0x180] sm:$0xff]   ;;  %v5685_v52 = vld [vmem:[%s7695_s0 + $0x108] sm:$0xff]   ;;  %v5691_v56 = vld [vmem:[%s7695_s0 + $0x150] sm:$0xff]  }
  0x13   :  { %4735 = vmatpush3.bf16.msra.mxu0 %v5635_v18  ;;  %v5686_v53 = vld [vmem:[%s7695_s0 + $0x1c8] sm:$0xff]   ;;  %v5673_v57 = vld [vmem:[%s7696_s1 + $0x260] ss:$100 sps:$4 sm:$0xff]   ;;  %v5694_v60 = vld [vmem:[%s7695_s0 + $0x110] sm:$0xff]  }
  0x14   :  { %4736 = vmatprep.subr.bf16.mxu0 %v5638_v21  ;;  %v5689_v55 = vld [vmem:[%s7695_s0 + $0x188] sm:$0xff]   ;;  %v5696_v61 = vld [vmem:[%s7695_s0 + $0x1d0] sm:$0xff]   ;;  %v5698_v63 = vld [vmem:[%s7695_s0 + $0x158] sm:$0xff]  }
  0x15   :  { %4799 = vmatpush3.bf16.msra.mxu1 %v5637_v20  ;;  %v5674_v58 = vld [vmem:[%s7696_s1 + $0x324] ss:$100 sps:$4 sm:$0xff]   ;;  %v5678_v59 = vld [vmem:[%s7696_s1 + $0x32c] ss:$100 sps:$4 sm:$0xff]   ;;  %v5699_v1 = vld [vmem:[%s7695_s0 + $0x118] sm:$0xff]  }
  0x16   :  { %4800 = vmatprep.subr.bf16.mxu1 %v5640_v23  ;;  %v5697_v62 = vld [vmem:[%s7695_s0 + $0x190] sm:$0xff]   ;;  %v5676_v0 = vld [vmem:[%s7696_s1 + $0x320] ss:$100 sps:$4 sm:$0xff]   ;;  %v5700_v2 = vld [vmem:[%s7695_s0 + $0x1d8] sm:$0xff]  }
  0x17   :  { %4737 = vmatpush3.bf16.msra.mxu0 %v5639_v22  ;;  %v5687_v3 = vld [vmem:[%s7696_s1 + $0x3ec] ss:$100 sps:$4 sm:$0xff]   ;;  %v5703_v4 = vld [vmem:[%s7695_s0 + $0x198] sm:$0xff]   ;;  %v5705_v6 = vld [vmem:[%s7695_s0 + $0x160] sm:$0xff]  }
  0x18   :  { %4738 = vmatprep.subr.bf16.mxu0 %v5642_v25  ;;  %v5681_v5 = vld [vmem:[%s7696_s1 + $0x328] ss:$100 sps:$4 sm:$0xff]   ;;  %v5692_v7 = vld [vmem:[%s7696_s1 + $0x3f4] ss:$100 sps:$4 sm:$0xff]   ;;  %v5708_v8 = vld [vmem:[%s7695_s0 + $0x120] sm:$0xff]  }
  0x19   :  { %4801 = vmatpush3.bf16.msra.mxu1 %v5641_v24  ;;  %v5690_v9 = vld [vmem:[%s7696_s1 + $0x3e8] ss:$100 sps:$4 sm:$0xff]   ;;  %v5710_v10 = vld [vmem:[%s7695_s0 + $0x1e0] sm:$0xff]   ;;  %v5701_v11 = vld [vmem:[%s7696_s1 + $0x4b4] ss:$100 sps:$4 sm:$0xff]  }
  0x1a   :  { %4802 = vmatprep.subr.bf16.mxu1 %v5644_v27  ;;  %v5711_v12 = vld [vmem:[%s7695_s0 + $0x1a0] sm:$0xff]   ;;  %v5712_v13 = vld [vmem:[%s7695_s0 + $0x168] sm:$0xff]   ;;  %v5695_v16 = vld [vmem:[%s7696_s1 + $0x3f0] ss:$100 sps:$4 sm:$0xff]  }
  0x1b   :  { %4739 = vmatpush3.bf16.msra.mxu0 %v5643_v26  ;;  %v5713_v14 = vld [vmem:[%s7695_s0 + $0x128] sm:$0xff]   ;;  %v5706_v17 = vld [vmem:[%s7696_s1 + $0x4bc] ss:$100 sps:$4 sm:$0xff]   ;;  %v5719_v19 = vld [vmem:[%s7695_s0 + $0x170] sm:$0xff]  }
  0x1c   :  { %4740 = vmatprep.subr.bf16.mxu0 %v5646_v29  ;;  %v5714_v15 = vld [vmem:[%s7695_s0 + $0x1e8] sm:$0xff]   ;;  %v5704_v20 = vld [vmem:[%s7696_s1 + $0x4b0] ss:$100 sps:$4 sm:$0xff]   ;;  %v5715_v22 = vld [vmem:[%s7696_s1 + $0x57c] ss:$100 sps:$4 sm:$0xff]  }
  0x1d   :  { %4803 = vmatpush3.bf16.msra.mxu1 %v5645_v28  ;;  %v5717_v18 = vld [vmem:[%s7695_s0 + $0x1a8] sm:$0xff]   ;;  %v5722_v21 = vld [vmem:[%s7695_s0 + $0x130] sm:$0xff]   ;;  %v5709_v23 = vld [vmem:[%s7696_s1 + $0x4b8] ss:$100 sps:$4 sm:$0xff]  }
  0x1e   :  { %4804 = vmatprep.subr.bf16.mxu1 %v5648_v31  ;;  %v5724_v24 = vld [vmem:[%s7695_s0 + $0x1f0] sm:$0xff]   ;;  %v5720_v25 = vld [vmem:[%s7696_s1 + $0x584] ss:$100 sps:$4 sm:$0xff]   ;;  %v5726_v27 = vld [vmem:[%s7695_s0 + $0x178] sm:$0xff]  }
  0x1f   :  { %4741 = vmatpush3.bf16.msra.mxu0 %v5647_v30  ;;  %v5725_v26 = vld [vmem:[%s7695_s0 + $0x1b0] sm:$0xff]   ;;  %v5727_v28 = vld [vmem:[%s7695_s0 + $0x138] sm:$0xff]   ;;  %v5723_v33 = vld [vmem:[%s7696_s1 + $0x580] ss:$100 sps:$4 sm:$0xff]  }
  0x20   :  { %4854 = vmatprep.subr.bf16.mxu0 %v5677_v43  ;;  %v5728_v29 = vld [vmem:[%s7695_s0 + $0x1f8] sm:$0xff]   ;;  %v5729_v36 = vld [vmem:[%s7696_s1 + $0x10] ss:$100 sps:$4 sm:$0xff]  }
  0x21   :  { %4805 = vmatpush3.bf16.msra.mxu1 %v5652_v34  ;;  %v5732_v30 = vld [vmem:[%s7695_s0 + $0x1b8] sm:$0xff]  }
  0x22   :  { %2951 = vmatmul.mubr.bf16.vlgmr.msra.gmra.mrb[0].mxu0 %v5649_v32  ;;  %4918 = vmatprep.subr.bf16.mxu1 %v5682_v48  ;;  %v5718_v31 = vld [vmem:[%s7696_s1 + $0x578] ss:$100 sps:$4 sm:$0xff]   ;;  %v5763_v48 = vld [vmem:[%s7695_s0 + $0x280] sm:$0xff]  }
  0x23   :  { %2958 = vmatprep.mubr.bf16.mxu0 %v5656_v37  ;;  %4855 = vmatpush3.bf16.msra.mxu0 %v5680_v45  ;;  %v5731_v32 = vld [vmem:[%s7696_s1 + $0x14] ss:$100 sps:$4 sm:$0xff]   ;;  %v5735_v34 = vld [vmem:[%s7696_s1 + $0x1c] ss:$100 sps:$4 sm:$0xff]   ;;  %v622_v37 = vld [vmem:[%s7697_s2 + $0x8] sm:$0xff] }
  0x24   :  { %3048 = vmatmul.mubr.bf16.vlgmr.msra.gmra.mrb[0].mxu1 %v5653_v35  ;;  %4856 = vmatprep.subr.bf16.mxu0 %v5684_v51  ;;  %v621_v35 = vld [vmem:[%s7697_s2] sm:$0xff]  ;;  %v624_v43 = vld [vmem:[%s7697_s2 + $0x18] sm:$0xff]  ;;  %v5745_v51 = vld [vmem:[%s7696_s1 + $0x1ac] ss:$100 sps:$4 sm:$0xff]  }
  0x25   :  { %3055 = vmatprep.mubr.bf16.mxu1 %v5659_v38  ;;  %4919 = vmatpush3.bf16.msra.mxu1 %v5683_v50  ;;  %v5736_v38 = vld [vmem:[%s7696_s1 + $0xdc] ss:$100 sps:$4 sm:$0xff]   ;;  %v5764_v50 = vld [vmem:[%s7695_s0 + $0x248] sm:$0xff]  }
  0x26   :  { %4920 = vmatprep.subr.bf16.mxu1 %v5686_v53  ;;  %639 = vperm.xlu0 %5616, %v621_v35   ;;  %v5760_v45 = vld [vmem:[%s7695_s0 + $0x200] sm:$0xff]   ;;  %v5766_v53 = vld [vmem:[%s7695_s0 + $0x2c8] sm:$0xff]   ;;  %v5808_v35 = vld [vmem:[%s7695_s0 + $0x2f8] sm:$0xff]  }
  0x27   :  { %4857 = vmatpush3.bf16.msra.mxu0 %v5685_v52  ;;  %v5765_v52 = vld [vmem:[%s7695_s0 + $0x208] sm:$0xff]  }
  0x28   :  { %4858 = vmatprep.subr.bf16.mxu0 %v5691_v56  ;;  %v5769_v56 = vld [vmem:[%s7695_s0 + $0x288] sm:$0xff]  }
  0x29   :  { %4921 = vmatpush3.bf16.msra.mxu1 %v5689_v55  ;;  %v5744_v55 = vld [vmem:[%s7696_s1 + $0x1a0] ss:$100 sps:$4 sm:$0xff]  }
  0x2a   :  { %2959 = vmatmul.mubr.bf16.gmra.mrb[4].mxu0 %v5658_v39  ;;  %4922 = vmatprep.subr.bf16.mxu1 %v5696_v61  ;;  %v623_v39 = vld [vmem:[%s7697_s2 + $0x10] sm:$0xff] }
  0x2b   :  { %2966 = vmatprep.mubr.bf16.mxu0 %v5662_v40  ;;  %4859 = vmatpush3.bf16.msra.mxu0 %v5694_v60  ;;  %v5733_v40 = vld [vmem:[%s7696_s1 + $0x18] ss:$100 sps:$4 sm:$0xff]   ;;  %v5747_v60 = vld [vmem:[%s7696_s1 + $0x1a8] ss:$100 sps:$4 sm:$0xff]   ;;  %v5774_v61 = vld [vmem:[%s7695_s0 + $0x210] sm:$0xff]  }
  0x2c   :  { %3056 = vmatmul.mubr.bf16.gmra.mrb[4].mxu1 %v5661_v41  ;;  %4860 = vmatprep.subr.bf16.mxu0 %v5698_v63  ;;  %v5739_v41 = vld [vmem:[%s7696_s1 + $0xe4] ss:$100 sps:$4 sm:$0xff]   ;;  %v5776_v63 = vld [vmem:[%s7695_s0 + $0x2d0] sm:$0xff]  }
  0x2d   :  { %3063 = vmatprep.mubr.bf16.mxu1 %v5665_v42  ;;  %4923 = vmatpush3.bf16.msra.mxu1 %v5697_v62  ;;  %v5757_v42 = vld [vmem:[%s7695_s0 + $0x240] sm:$0xff]   ;;  %v5751_v62 = vld [vmem:[%s7696_s1 + $0x274] ss:$100 sps:$4 sm:$0xff]  }
  0x2e   :  { %4924 = vmatprep.subr.bf16.mxu1 %v5700_v2  ;;  %649 = vperm.xlu1 %5617, %v623_v39   ;;  %v5779_v2 = vld [vmem:[%s7695_s0 + $0x218] sm:$0xff]  }
  0x2f   :  { %4861 = vmatpush3.bf16.msra.mxu0 %v5699_v1  ;;  %644 = vperm.xlu0 %5616, %v622_v37   ;;  %v5778_v1 = vld [vmem:[%s7695_s0 + $0x258] sm:$0xff]   ;;  %v5784_v37 = vld [vmem:[%s7696_s1 + $0x4c0] ss:$100 sps:$4 sm:$0xff]  }
  0x30   :  { %4862 = vmatprep.subr.bf16.mxu0 %v5705_v6  ;;  %v5753_v6 = vld [vmem:[%s7696_s1 + $0x270] ss:$100 sps:$4 sm:$0xff]   ;;  %v632_v39 = vld [vmem:[%s7697_s2 + $0x58] sm:$0xff] }
  0x31   :  { %4925 = vmatpush3.bf16.msra.mxu1 %v5703_v4  ;;  %v627_v4 = vld [vmem:[%s7697_s2 + $0x30] sm:$0xff] }
  0x32   :  { %2967 = vmatmul.mubr.bf16.gmra.mrb[8].mxu0 %v5664_v44  ;;  %4926 = vmatprep.subr.bf16.mxu1 %v5710_v10  ;;  %v5738_v44 = vld [vmem:[%s7696_s1 + $0xd8] ss:$100 sps:$4 sm:$0xff]  }
  0x33   :  { %2974 = vmatprep.mubr.bf16.mxu0 %v5668_v46  ;;  %4863 = vmatpush3.bf16.msra.mxu0 %v5708_v8  ;;  %v5742_v46 = vld [vmem:[%s7696_s1 + $0x1a4] ss:$100 sps:$4 sm:$0xff]   ;;  %v5783_v8 = vld [vmem:[%s7695_s0 + $0x298] sm:$0xff]  }
  0x34   :  { %3064 = vmatmul.mubr.bf16.gmra.mrb[8].mxu1 %v5667_v47  ;;  %4864 = vmatprep.subr.bf16.mxu0 %v5712_v13  ;;  %v5762_v47 = vld [vmem:[%s7695_s0 + $0x2c0] sm:$0xff]   ;;  %v628_v10 = vld [vmem:[%s7697_s2 + $0x38] sm:$0xff]  ;;  %v5756_v13 = vld [vmem:[%s7696_s1 + $0x330] ss:$100 sps:$4 sm:$0xff]  }
  0x35   :  { %3071 = vmatprep.mubr.bf16.mxu1 %v5671_v49  ;;  %4927 = vmatpush3.bf16.msra.mxu1 %v5711_v12  ;;  %v5741_v49 = vld [vmem:[%s7696_s1 + $0xe0] ss:$100 sps:$4 sm:$0xff]  }
  0x36   :  { %4928 = vmatprep.subr.bf16.mxu1 %v5714_v15  ;;  %654 = vperm.xlu1 %5617, %v624_v43   ;;  %v5788_v12 = vld [vmem:[%s7695_s0 + $0x220] sm:$0xff]   ;;  %v5800_v43 = vld [vmem:[%s7696_s1 + $0x594] ss:$100 sps:$4 sm:$0xff]  }
  0x37   :  { %4865 = vmatpush3.bf16.msra.mxu0 %v5713_v14  ;;  %v5790_v14 = vld [vmem:[%s7695_s0 + $0x2e0] sm:$0xff]  }
  0x38   :  { %4866 = vmatprep.subr.bf16.mxu0 %v5719_v19  ;;  %v5767_v15 = vld [vmem:[%s7696_s1 + $0x3fc] ss:$100 sps:$4 sm:$0xff]   ;;  %v5793_v19 = vld [vmem:[%s7695_s0 + $0x228] sm:$0xff]  }
  0x39   :  { %4929 = vmatpush3.bf16.msra.mxu1 %v5717_v18  ;;  %v5761_v18 = vld [vmem:[%s7696_s1 + $0x338] ss:$100 sps:$4 sm:$0xff]  }
  0x3a   :  { %2975 = vmatmul.mubr.bf16.gmra.mrb[12].mxu0 %v5670_v54  ;;  %4930 = vmatprep.subr.bf16.mxu1 %v5724_v24  ;;  %v625_v54 = vld [vmem:[%s7697_s2 + $0x20] sm:$0xff]  ;;  %v5799_v24 = vld [vmem:[%s7695_s0 + $0x270] sm:$0xff]  }
  0x3b   :  { %2982 = vmatprep.mubr.bf16.mxu0 %v5674_v58  ;;  %4867 = vmatpush3.bf16.msra.mxu0 %v5722_v21  ;;  %v626_v58 = vld [vmem:[%s7697_s2 + $0x28] sm:$0xff]  ;;  %v629_v21 = vld [vmem:[%s7697_s2 + $0x40] sm:$0xff] }
  0x3c   :  { %3072 = vmatmul.mubr.bf16.gmra.mrb[12].mxu1 %v5673_v57  ;;  %4868 = vmatprep.subr.bf16.mxu0 %v5726_v27  ;;  %v5771_v57 = vld [vmem:[%s7695_s0 + $0x250] sm:$0xff]   ;;  %v5781_v27 = vld [vmem:[%s7696_s1 + $0x4c4] ss:$100 sps:$4 sm:$0xff]  }
  0x3d   :  { %3079 = vmatprep.mubr.bf16.mxu1 %v5678_v59  ;;  %4931 = vmatpush3.bf16.msra.mxu1 %v5725_v26  ;;  %v5748_v59 = vld [vmem:[%s7696_s1 + $0x26c] ss:$100 sps:$4 sm:$0xff]   ;;  %v5770_v26 = vld [vmem:[%s7696_s1 + $0x3f8] ss:$100 sps:$4 sm:$0xff]  }
  0x3e   :  { %4932 = vmatprep.subr.bf16.mxu1 %v5728_v29  ;;  %659 = vperm.xlu0 %5616, %v625_v54   ;;  %v5775_v29 = vld [vmem:[%s7696_s1 + $0x400] ss:$100 sps:$4 sm:$0xff]  }
  0x3f   :  { %4869 = vmatpush3.bf16.msra.mxu0 %v5727_v28  ;;  %664 = vperm.xlu1 %5617, %v626_v58   ;;  %v5802_v28 = vld [vmem:[%s7695_s0 + $0x230] sm:$0xff]   ;;  %v5840_v54 = vld [vmem:[%s7695_s0 + $0x300] sm:$0xff]  }
  0x40   :  { %4982 = vmatprep.subr.bf16.mxu0 %v5757_v42  ;;  %v5789_v42 = vld [vmem:[%s7696_s1 + $0x4c8] ss:$100 sps:$4 sm:$0xff]   ;;  %v5843_v58 = vld [vmem:[%s7695_s0 + $0x380] sm:$0xff]  }
  0x41   :  { %4933 = vmatpush3.bf16.msra.mxu1 %v5732_v30  ;;  %v5804_v30 = vld [vmem:[%s7695_s0 + $0x2f0] sm:$0xff]  }
  0x42   :  { %2983 = vmatmul.mubr.bf16.gmra.mrb[16].mxu0 %v5676_v0  ;;  %5046 = vmatprep.subr.bf16.mxu1 %v5762_v47  ;;  %v5777_v0 = vld [vmem:[%s7695_s0 + $0x290] sm:$0xff]   ;;  %v5798_v47 = vld [vmem:[%s7696_s1 + $0x588] ss:$100 sps:$4 sm:$0xff]  }
  0x43   :  { %2990 = vmatprep.mubr.bf16.mxu0 %v5687_v3  ;;  %v5780_v3 = vld [vmem:[%s7695_s0 + $0x2d8] sm:$0xff]   ;;  %669 = vperm.xlu0 %5616, %v627_v4   ;;  %v5854_v4 = vld [vmem:[%s7695_s0 + $0x310] sm:$0xff]  }
  0x44   :  { %3080 = vmatmul.mubr.bf16.gmra.mrb[16].mxu1 %v5681_v5  ;;  %v5750_v5 = vld [vmem:[%s7696_s1 + $0x268] ss:$100 sps:$4 sm:$0xff]   ;;  %674 = vperm.xlu1 %5617, %v628_v10   ;;  %v5860_v10 = vld [vmem:[%s7695_s0 + $0x3d8] sm:$0xff]  }
  0x45   :  { %3087 = vmatprep.mubr.bf16.mxu1 %v5692_v7  ;;  %v5754_v7 = vld [vmem:[%s7696_s1 + $0x334] ss:$100 sps:$4 sm:$0xff]  }
  0x47   :  { %679 = vperm.xlu0 %5616, %v629_v21   ;;  %v5872_v21 = vld [vmem:[%s7695_s0 + $0x368] sm:$0xff]  }
  0x4a   :  { %2991 = vmatmul.mubr.bf16.gmra.mrb[20].mxu0 %v5690_v9  ;;  %v5785_v9 = vld [vmem:[%s7695_s0 + $0x260] sm:$0xff]  }
  0x4b   :  { %2998 = vmatprep.mubr.bf16.mxu0 %v5701_v11  ;;  %v5758_v11 = vld [vmem:[%s7696_s1 + $0x33c] ss:$100 sps:$4 sm:$0xff]  }
  0x4c   :  { %3088 = vmatmul.mubr.bf16.gmra.mrb[20].mxu1 %v5695_v16  ;;  %v5791_v16 = vld [vmem:[%s7695_s0 + $0x2a0] sm:$0xff]  }
  0x4d   :  { %3095 = vmatprep.mubr.bf16.mxu1 %v5706_v17  ;;  %v5792_v17 = vld [vmem:[%s7695_s0 + $0x268] sm:$0xff]  }
  0x52   :  { %2999 = vmatmul.mubr.bf16.gmra.mrb[24].mxu0 %v5704_v20  ;;  %v5794_v20 = vld [vmem:[%s7695_s0 + $0x2e8] sm:$0xff]  }
  0x53   :  { %3006 = vmatprep.mubr.bf16.mxu0 %v5715_v22  ;;  %v5772_v22 = vld [vmem:[%s7696_s1 + $0x404] ss:$100 sps:$4 sm:$0xff]  }
  0x54   :  { %3096 = vmatmul.mubr.bf16.gmra.mrb[24].mxu1 %v5709_v23  ;;  %v5797_v23 = vld [vmem:[%s7695_s0 + $0x2a8] sm:$0xff]  }
  0x55   :  { %3103 = vmatprep.mubr.bf16.mxu1 %v5720_v25  ;;  %v630_v25 = vld [vmem:[%s7697_s2 + $0x48] sm:$0xff] }
  0x56   :  { %684 = vperm.xlu1 %5617, %v630_v25   ;;  %v5838_v25 = vld [vmem:[%s7696_s1 + $0x34c] ss:$100 sps:$4 sm:$0xff]  }
  0x5a   :  { %3007 = vmatmul.mubr.bf16.gmra.mrb[28].mxu0 %v5718_v31  ;;  %v5786_v31 = vld [vmem:[%s7696_s1 + $0x4cc] ss:$100 sps:$4 sm:$0xff]   ;;  %694 = vperm.xlu1 %5617, %v632_v39  }
  0x5b   :  { %3144 = vmatprep.mubr.bf16.mxu0 %v5731_v32  ;;  %v5805_v32 = vld [vmem:[%s7695_s0 + $0x2b0] sm:$0xff]   ;;  %v5850_v39 = vld [vmem:[%s7696_s1 + $0x408] ss:$100 sps:$4 sm:$0xff]  }
  0x5c   :  { %3104 = vmatmul.mubr.bf16.gmra.mrb[28].mxu1 %v5723_v33  ;;  %v5806_v33 = vld [vmem:[%s7695_s0 + $0x278] sm:$0xff]  }
  0x5d   :  { %3241 = vmatprep.mubr.bf16.mxu1 %v5735_v34  ;;  %v5807_v34 = vld [vmem:[%s7695_s0 + $0x238] sm:$0xff]  }
  0x62   :  { %3145 = vmatmul.mubr.bf16.vlgmr.msra.gmra.mrb[32].mxu0 %v5729_v36  ;;  %v631_v36 = vld [vmem:[%s7697_s2 + $0x50] sm:$0xff] }
  0x63   :  { %3152 = vmatprep.mubr.bf16.mxu0 %v5736_v38  ;;  %4983 = vmatpush3.bf16.msra.mxu0 %v5760_v45  ;;  %v5812_v38 = vld [vmem:[%s7695_s0 + $0x2b8] sm:$0xff]   ;;  %v635_v45 = vld [vmem:[%s7697_s2 + $0x70] sm:$0xff] }
  0x64   :  { %3242 = vmatmul.mubr.bf16.vlgmr.msra.gmra.mrb[32].mxu1 %v5733_v40  ;;  %4984 = vmatprep.subr.bf16.mxu0 %v5764_v50  ;;  %v5795_v40 = vld [vmem:[%s7696_s1 + $0x58c] ss:$100 sps:$4 sm:$0xff]  }
  0x65   :  { %3249 = vmatprep.mubr.bf16.mxu1 %v5739_v41  ;;  %5047 = vmatpush3.bf16.msra.mxu1 %v5763_v48  ;;  %v633_v41 = vld [vmem:[%s7697_s2 + $0x60] sm:$0xff]  ;;  %v5815_v50 = vld [vmem:[%s7696_s1 + $0x2c] ss:$100 sps:$4 sm:$0xff]  }
  0x66   :  { %5048 = vmatprep.subr.bf16.mxu1 %v5766_v53  ;;  %689 = vperm.xlu0 %5616, %v631_v36   ;;  %v5811_v48 = vld [vmem:[%s7696_s1 + $0x24] ss:$100 sps:$4 sm:$0xff]   ;;  %v5816_v53 = vld [vmem:[%s7696_s1 + $0xec] ss:$100 sps:$4 sm:$0xff]   ;;  %v5887_v36 = vld [vmem:[%s7695_s0 + $0x338] sm:$0xff]  }
  0x67   :  { %4985 = vmatpush3.bf16.msra.mxu0 %v5765_v52  ;;  %v5809_v52 = vld [vmem:[%s7696_s1 + $0x20] ss:$100 sps:$4 sm:$0xff]  }
  0x68   :  { %4986 = vmatprep.subr.bf16.mxu0 %v5771_v57  ;;  %v5819_v57 = vld [vmem:[%s7696_s1 + $0xf4] ss:$100 sps:$4 sm:$0xff]  }
  0x69   :  { %5049 = vmatpush3.bf16.msra.mxu1 %v5769_v56  ;;  %v5842_v56 = vld [vmem:[%s7695_s0 + $0x3c0] sm:$0xff]  }
  0x6a   :  { %3153 = vmatmul.mubr.bf16.gmra.mrb[36].mxu0 %v5738_v44  ;;  %5050 = vmatprep.subr.bf16.mxu1 %v5776_v63  ;;  %v634_v44 = vld [vmem:[%s7697_s2 + $0x68] sm:$0xff] }
  0x6b   :  { %3160 = vmatprep.mubr.bf16.mxu0 %v5742_v46  ;;  %4987 = vmatpush3.bf16.msra.mxu0 %v5774_v61  ;;  %v636_v46 = vld [vmem:[%s7697_s2 + $0x78] sm:$0xff]  ;;  %v5846_v61 = vld [vmem:[%s7695_s0 + $0x3c8] sm:$0xff]  }
  0x6c   :  { %3250 = vmatmul.mubr.bf16.gmra.mrb[36].mxu1 %v5741_v49  ;;  %4988 = vmatprep.subr.bf16.mxu0 %v5778_v1  ;;  %v5803_v49 = vld [vmem:[%s7696_s1 + $0x590] ss:$100 sps:$4 sm:$0xff]   ;;  %v5849_v63 = vld [vmem:[%s7695_s0 + $0x388] sm:$0xff]  }
  0x6d   :  { %3257 = vmatprep.mubr.bf16.mxu1 %v5745_v51  ;;  %5051 = vmatpush3.bf16.msra.mxu1 %v5777_v0  ;;  %v5837_v51 = vld [vmem:[%s7695_s0 + $0x340] sm:$0xff]   ;;  %v5851_v0 = vld [vmem:[%s7695_s0 + $0x350] sm:$0xff]  }
  0x6e   :  { %5052 = vmatprep.subr.bf16.mxu1 %v5780_v3  ;;  %699 = vperm.xlu0 %5616, %v633_v41   ;;  %v5821_v1 = vld [vmem:[%s7696_s1 + $0xf0] ss:$100 sps:$4 sm:$0xff]   ;;  %v5825_v3 = vld [vmem:[%s7696_s1 + $0x1bc] ss:$100 sps:$4 sm:$0xff]  }
  0x6f   :  { %4989 = vmatpush3.bf16.msra.mxu0 %v5779_v2  ;;  %704 = vperm.xlu1 %5617, %v634_v44   ;;  %v5822_v2 = vld [vmem:[%s7696_s1 + $0x1b4] ss:$100 sps:$4 sm:$0xff]   ;;  %v5875_v44 = vld [vmem:[%s7696_s1 + $0x59c] ss:$100 sps:$4 sm:$0xff]  }
  0x70   :  { %4990 = vmatprep.subr.bf16.mxu0 %v5785_v9  ;;  %v5859_v9 = vld [vmem:[%s7695_s0 + $0x318] sm:$0xff]   ;;  %v5855_v41 = vld [vmem:[%s7696_s1 + $0x410] ss:$100 sps:$4 sm:$0xff]  }
  0x71   :  { %5053 = vmatpush3.bf16.msra.mxu1 %v5783_v8  ;;  %v5824_v8 = vld [vmem:[%s7696_s1 + $0x1b0] ss:$100 sps:$4 sm:$0xff]  }
  0x72   :  { %3161 = vmatmul.mubr.bf16.gmra.mrb[40].mxu0 %v5744_v55  ;;  %5054 = vmatprep.subr.bf16.mxu1 %v5790_v14  ;;  %v5813_v55 = vld [vmem:[%s7696_s1 + $0x28] ss:$100 sps:$4 sm:$0xff]   ;;  %v5865_v14 = vld [vmem:[%s7695_s0 + $0x360] sm:$0xff]  }
  0x73   :  { %3168 = vmatprep.mubr.bf16.mxu0 %v5748_v59  ;;  %4991 = vmatpush3.bf16.msra.mxu0 %v5788_v12  ;;  %v5844_v59 = vld [vmem:[%s7695_s0 + $0x348] sm:$0xff]   ;;  %v5863_v12 = vld [vmem:[%s7695_s0 + $0x398] sm:$0xff]  }
  0x74   :  { %3258 = vmatmul.mubr.bf16.gmra.mrb[40].mxu1 %v5747_v60  ;;  %4992 = vmatprep.subr.bf16.mxu0 %v5792_v17  ;;  %v5845_v60 = vld [vmem:[%s7695_s0 + $0x308] sm:$0xff]   ;;  %v5830_v17 = vld [vmem:[%s7696_s1 + $0x278] ss:$100 sps:$4 sm:$0xff]  }
  0x75   :  { %3265 = vmatprep.mubr.bf16.mxu1 %v5751_v62  ;;  %5055 = vmatpush3.bf16.msra.mxu1 %v5791_v16  ;;  %v5818_v62 = vld [vmem:[%s7696_s1 + $0xe8] ss:$100 sps:$4 sm:$0xff]   ;;  %v5868_v16 = vld [vmem:[%s7695_s0 + $0x320] sm:$0xff]  }
  0x76   :  { %5056 = vmatprep.subr.bf16.mxu1 %v5794_v20  ;;  %709 = vperm.xlu0 %5616, %v635_v45   ;;  %v5871_v20 = vld [vmem:[%s7695_s0 + $0x3a0] sm:$0xff]   ;;  %v5869_v45 = vld [vmem:[%s7696_s1 + $0x4d8] ss:$100 sps:$4 sm:$0xff]  }
  0x77   :  { %4993 = vmatpush3.bf16.msra.mxu0 %v5793_v19  ;;  %714 = vperm.xlu1 %5617, %v636_v46   ;;  %v5834_v19 = vld [vmem:[%s7696_s1 + $0x344] ss:$100 sps:$4 sm:$0xff]  }
  0x78   :  { %4994 = vmatprep.subr.bf16.mxu0 %v5799_v24  ;;  %v5833_v24 = vld [vmem:[%s7696_s1 + $0x280] ss:$100 sps:$4 sm:$0xff]  }
  0x79   :  { %5057 = vmatpush3.bf16.msra.mxu1 %v5797_v23  ;;  %v5874_v23 = vld [vmem:[%s7695_s0 + $0x3e8] sm:$0xff]   ;;  %v5917_v46 = vld [vmem:[%s7695_s0 + $0x440] sm:$0xff]  }
  0x7a   :  { %3169 = vmatmul.mubr.bf16.gmra.mrb[44].mxu0 %v5750_v5  ;;  %5058 = vmatprep.subr.bf16.mxu1 %v5804_v30  ;;  %v5856_v5 = vld [vmem:[%s7695_s0 + $0x3d0] sm:$0xff]  }
  0x7b   :  { %3176 = vmatprep.mubr.bf16.mxu0 %v5754_v7  ;;  %4995 = vmatpush3.bf16.msra.mxu0 %v5802_v28  ;;  %v5858_v7 = vld [vmem:[%s7695_s0 + $0x358] sm:$0xff]   ;;  %v5836_v28 = vld [vmem:[%s7696_s1 + $0x340] ss:$100 sps:$4 sm:$0xff]   ;;  %v5847_v30 = vld [vmem:[%s7696_s1 + $0x40c] ss:$100 sps:$4 sm:$0xff]  }
  0x7c   :  { %3266 = vmatmul.mubr.bf16.gmra.mrb[44].mxu1 %v5753_v6  ;;  %4996 = vmatprep.subr.bf16.mxu0 %v5806_v33  ;;  %v5857_v6 = vld [vmem:[%s7695_s0 + $0x390] sm:$0xff]  }
  0x7d   :  { %3273 = vmatprep.mubr.bf16.mxu1 %v5758_v11  ;;  %5059 = vmatpush3.bf16.msra.mxu1 %v5805_v32  ;;  %v5828_v11 = vld [vmem:[%s7696_s1 + $0x27c] ss:$100 sps:$4 sm:$0xff]   ;;  %v5884_v32 = vld [vmem:[%s7695_s0 + $0x3f0] sm:$0xff]  }
  0x7e   :  { %5060 = vmatprep.subr.bf16.mxu1 %v5808_v35  ;;  %v5852_v33 = vld [vmem:[%s7696_s1 + $0x414] ss:$100 sps:$4 sm:$0xff]  }
  0x7f   :  { %4997 = vmatpush3.bf16.msra.mxu0 %v5807_v34  ;;  %v5885_v34 = vld [vmem:[%s7695_s0 + $0x3b0] sm:$0xff]   ;;  %v5886_v35 = vld [vmem:[%s7695_s0 + $0x378] sm:$0xff]  }
  0x80   :  { %5110 = vmatprep.subr.bf16.mxu0 %v5837_v51  ;;  %v5883_v51 = vld [vmem:[%s7696_s1 + $0x5a0] ss:$100 sps:$4 sm:$0xff]  }
  0x81   :  { %5061 = vmatpush3.bf16.msra.mxu1 %v5812_v38  ;;  %v5892_v38 = vld [vmem:[%s7695_s0 + $0x3b8] sm:$0xff]  }
  0x82   :  { %3177 = vmatmul.mubr.bf16.gmra.mrb[48].mxu0 %v5756_v13  ;;  %5174 = vmatprep.subr.bf16.mxu1 %v5842_v56  ;;  %v5827_v13 = vld [vmem:[%s7696_s1 + $0x1b8] ss:$100 sps:$4 sm:$0xff]   ;;  %v5920_v56 = vld [vmem:[%s7695_s0 + $0x400] sm:$0xff]  }
  0x83   :  { %3184 = vmatprep.mubr.bf16.mxu0 %v5767_v15  ;;  %v5831_v15 = vld [vmem:[%s7696_s1 + $0x284] ss:$100 sps:$4 sm:$0xff]  }
  0x84   :  { %3274 = vmatmul.mubr.bf16.gmra.mrb[48].mxu1 %v5761_v18  ;;  %v5870_v18 = vld [vmem:[%s7695_s0 + $0x3e0] sm:$0xff]  }
  0x85   :  { %3281 = vmatprep.mubr.bf16.mxu1 %v5772_v22  ;;  %v5873_v22 = vld [vmem:[%s7695_s0 + $0x328] sm:$0xff]  }
  0x8a   :  { %3185 = vmatmul.mubr.bf16.gmra.mrb[52].mxu0 %v5770_v26  ;;  %v5877_v26 = vld [vmem:[%s7695_s0 + $0x3a8] sm:$0xff]  }
  0x8b   :  { %3192 = vmatprep.mubr.bf16.mxu0 %v5781_v27  ;;  %v5879_v27 = vld [vmem:[%s7695_s0 + $0x370] sm:$0xff]  }
  0x8c   :  { %3282 = vmatmul.mubr.bf16.gmra.mrb[52].mxu1 %v5775_v29  ;;  %v5882_v29 = vld [vmem:[%s7695_s0 + $0x330] sm:$0xff]  }
  0x8d   :  { %3289 = vmatprep.mubr.bf16.mxu1 %v5786_v31  ;;  %v5841_v31 = vld [vmem:[%s7696_s1 + $0x348] ss:$100 sps:$4 sm:$0xff]  }
  0x92   :  { %3193 = vmatmul.mubr.bf16.gmra.mrb[56].mxu0 %v5784_v37  ;;  %v5888_v37 = vld [vmem:[%s7695_s0 + $0x3f8] sm:$0xff]  }
  0x93   :  { %3200 = vmatprep.mubr.bf16.mxu0 %v5795_v40  ;;  %v5861_v40 = vld [vmem:[%s7696_s1 + $0x4d4] ss:$100 sps:$4 sm:$0xff]  }
  0x94   :  { %3290 = vmatmul.mubr.bf16.gmra.mrb[56].mxu1 %v5789_v42  ;;  %v5866_v42 = vld [vmem:[%s7696_s1 + $0x4dc] ss:$100 sps:$4 sm:$0xff]  }
  0x95   :  { %3297 = vmatprep.mubr.bf16.mxu1 %v5800_v43  ;;  %v5864_v43 = vld [vmem:[%s7696_s1 + $0x4d0] ss:$100 sps:$4 sm:$0xff]  }
  0x9a   :  { %3201 = vmatmul.mubr.bf16.gmra.mrb[60].mxu0 %v5798_v47  ;;  %v5880_v47 = vld [vmem:[%s7696_s1 + $0x5a4] ss:$100 sps:$4 sm:$0xff]  }
  0x9b   :  { %3338 = vmatprep.mubr.bf16.mxu0 %v5811_v48  ;;  %v5922_v48 = vld [vmem:[%s7695_s0 + $0x4c0] sm:$0xff]  }
  0x9c   :  { %3298 = vmatmul.mubr.bf16.gmra.mrb[60].mxu1 %v5803_v49  ;;  %v5878_v49 = vld [vmem:[%s7696_s1 + $0x598] ss:$100 sps:$4 sm:$0xff]  }
  0x9d   :  { %3435 = vmatprep.mubr.bf16.mxu1 %v5815_v50  ;;  %v5891_v50 = vld [vmem:[%s7696_s1 + $0x34] ss:$100 sps:$4 sm:$0xff]  }
  0xa2   :  { %3339 = vmatmul.mubr.bf16.vlgmr.msra.gmra.mrb[64].mxu0 %v5809_v52  ;;  %v5895_v52 = vld [vmem:[%s7696_s1 + $0x3c] ss:$100 sps:$4 sm:$0xff]  }
  0xa3   :  { %3346 = vmatprep.mubr.bf16.mxu0 %v5816_v53  ;;  %5111 = vmatpush3.bf16.msra.mxu0 %v5840_v54  ;;  %v5889_v53 = vld [vmem:[%s7696_s1 + $0x30] ss:$100 sps:$4 sm:$0xff]   ;;  %v5896_v54 = vld [vmem:[%s7696_s1 + $0xfc] ss:$100 sps:$4 sm:$0xff]  }
  0xa4   :  { %5112 = vmatprep.subr.bf16.mxu0 %v5844_v59  ;;  %3436 = vmatmul.mubr.bf16.vlgmr.msra.gmra.mrb[64].mxu1 %v5813_v55  ;;  %v5893_v55 = vld [vmem:[%s7696_s1 + $0x38] ss:$100 sps:$4 sm:$0xff]   ;;  %v5923_v59 = vld [vmem:[%s7695_s0 + $0x480] sm:$0xff]  }
  0xa5   :  { %3443 = vmatprep.mubr.bf16.mxu1 %v5819_v57  ;;  %5175 = vmatpush3.bf16.msra.mxu1 %v5843_v58  ;;  %v5899_v57 = vld [vmem:[%s7696_s1 + $0x104] ss:$100 sps:$4 sm:$0xff]  }
  0xa6   :  { %5176 = vmatprep.subr.bf16.mxu1 %v5846_v61  ;;  %v5924_v58 = vld [vmem:[%s7695_s0 + $0x448] sm:$0xff]  }
  0xa7   :  { %5113 = vmatpush3.bf16.msra.mxu0 %v5845_v60  ;;  %v5925_v60 = vld [vmem:[%s7695_s0 + $0x408] sm:$0xff]  }
  0xa8   :  { %5114 = vmatprep.subr.bf16.mxu0 %v5851_v0  ;;  %v5926_v61 = vld [vmem:[%s7695_s0 + $0x4c8] sm:$0xff]  }
  0xa9   :  { %5177 = vmatpush3.bf16.msra.mxu1 %v5849_v63  ;;  %v5898_v63 = vld [vmem:[%s7696_s1 + $0xf8] ss:$100 sps:$4 sm:$0xff]   ;;  %v5902_v0 = vld [vmem:[%s7696_s1 + $0x1c4] ss:$100 sps:$4 sm:$0xff]  }
  0xaa   :  { %3347 = vmatmul.mubr.bf16.gmra.mrb[68].mxu0 %v5818_v62  ;;  %5178 = vmatprep.subr.bf16.mxu1 %v5856_v5  ;;  %v5931_v62 = vld [vmem:[%s7695_s0 + $0x450] sm:$0xff]  }
  0xab   :  { %3354 = vmatprep.mubr.bf16.mxu0 %v5822_v2  ;;  %5115 = vmatpush3.bf16.msra.mxu0 %v5854_v4  ;;  %v5901_v2 = vld [vmem:[%s7696_s1 + $0x100] ss:$100 sps:$4 sm:$0xff]   ;;  %v5905_v4 = vld [vmem:[%s7696_s1 + $0x1cc] ss:$100 sps:$4 sm:$0xff]  }
  0xac   :  { %3444 = vmatmul.mubr.bf16.gmra.mrb[68].mxu1 %v5821_v1  ;;  %5116 = vmatprep.subr.bf16.mxu0 %v5858_v7  ;;  %v5929_v1 = vld [vmem:[%s7695_s0 + $0x488] sm:$0xff]   ;;  %v5936_v5 = vld [vmem:[%s7695_s0 + $0x4d0] sm:$0xff]  }
  0xad   :  { %3451 = vmatprep.mubr.bf16.mxu1 %v5825_v3  ;;  %5179 = vmatpush3.bf16.msra.mxu1 %v5857_v6  ;;  %v5934_v3 = vld [vmem:[%s7695_s0 + $0x410] sm:$0xff]   ;;  %v5938_v6 = vld [vmem:[%s7695_s0 + $0x458] sm:$0xff]  }
  0xae   :  { %5180 = vmatprep.subr.bf16.mxu1 %v5860_v10  ;;  %v5937_v7 = vld [vmem:[%s7695_s0 + $0x490] sm:$0xff]   ;;  %v5904_v10 = vld [vmem:[%s7696_s1 + $0x1c0] ss:$100 sps:$4 sm:$0xff]  }
  0xaf   :  { %5117 = vmatpush3.bf16.msra.mxu0 %v5859_v9  ;;  %v5940_v9 = vld [vmem:[%s7695_s0 + $0x4d8] sm:$0xff]  }
  0xb0   :  { %5118 = vmatprep.subr.bf16.mxu0 %v5865_v14  ;;  %v5948_v14 = vld [vmem:[%s7695_s0 + $0x420] sm:$0xff]  }
  0xb1   :  { %5181 = vmatpush3.bf16.msra.mxu1 %v5863_v12  ;;  %v5908_v12 = vld [vmem:[%s7696_s1 + $0x28c] ss:$100 sps:$4 sm:$0xff]  }
  0xb2   :  { %3355 = vmatmul.mubr.bf16.gmra.mrb[72].mxu0 %v5824_v8  ;;  %5182 = vmatprep.subr.bf16.mxu1 %v5870_v18  ;;  %v5939_v8 = vld [vmem:[%s7695_s0 + $0x418] sm:$0xff]   ;;  %v640_v18 = vpop.permute.xlu0 %639 }
  0xb3   :  { %3362 = vmatprep.mubr.bf16.mxu0 %v5828_v11  ;;  %5119 = vmatpush3.bf16.msra.mxu0 %v5868_v16  ;;  %v5945_v11 = vld [vmem:[%s7695_s0 + $0x460] sm:$0xff]  }
  0xb4   :  { %3452 = vmatmul.mubr.bf16.gmra.mrb[72].mxu1 %v5827_v13  ;;  %5120 = vmatprep.subr.bf16.mxu0 %v5872_v21  ;;  %v5943_v13 = vld [vmem:[%s7695_s0 + $0x498] sm:$0xff]   ;;  %v5950_v16 = vld [vmem:[%s7695_s0 + $0x4e0] sm:$0xff]   ;;  %v5953_v21 = vld [vmem:[%s7695_s0 + $0x428] sm:$0xff]  }
  0xb5   :  { %3459 = vmatprep.mubr.bf16.mxu1 %v5831_v15  ;;  %5183 = vmatpush3.bf16.msra.mxu1 %v5871_v20  ;;  %v5907_v15 = vld [vmem:[%s7696_s1 + $0x1c8] ss:$100 sps:$4 sm:$0xff]   ;;  %v5951_v20 = vld [vmem:[%s7695_s0 + $0x4a0] sm:$0xff]  }
  0xb6   :  { %5184 = vmatprep.subr.bf16.mxu1 %v5874_v23  ;;  %v5910_v23 = vld [vmem:[%s7696_s1 + $0x288] ss:$100 sps:$4 sm:$0xff]  }
  0xb7   :  { %5121 = vmatpush3.bf16.msra.mxu0 %v5873_v22  ;;  %v5954_v22 = vld [vmem:[%s7695_s0 + $0x4e8] sm:$0xff]  }
  0xb8   :  { %5122 = vmatprep.subr.bf16.mxu0 %v5879_v27  ;;  %v5957_v27 = vld [vmem:[%s7695_s0 + $0x4a8] sm:$0xff]  }
  0xb9   :  { %5185 = vmatpush3.bf16.msra.mxu1 %v5877_v26  ;;  %v5914_v26 = vld [vmem:[%s7696_s1 + $0x354] ss:$100 sps:$4 sm:$0xff]  }
  0xba   :  { %3363 = vmatmul.mubr.bf16.gmra.mrb[76].mxu0 %v5830_v17  ;;  %5186 = vmatprep.subr.bf16.mxu1 %v5884_v32  ;;  %v5952_v17 = vld [vmem:[%s7695_s0 + $0x468] sm:$0xff]   ;;  %v645_v32 = vpop.permute.xlu0 %644 }
  0xbb   :  { %3370 = vmatprep.mubr.bf16.mxu0 %v5834_v19  ;;  %5123 = vmatpush3.bf16.msra.mxu0 %v5882_v29  ;;  %v5911_v19 = vld [vmem:[%s7696_s1 + $0x294] ss:$100 sps:$4 sm:$0xff]  }
  0xbc   :  { %3460 = vmatmul.mubr.bf16.gmra.mrb[76].mxu1 %v5833_v24  ;;  %5124 = vmatprep.subr.bf16.mxu0 %v5886_v35  ;;  %v5959_v24 = vld [vmem:[%s7695_s0 + $0x470] sm:$0xff]  }
  0xbd   :  { %3467 = vmatprep.mubr.bf16.mxu1 %v5838_v25  ;;  %5187 = vmatpush3.bf16.msra.mxu1 %v5885_v34  ;;  %v5962_v29 = vld [vmem:[%s7695_s0 + $0x430] sm:$0xff]  }
  0xbe   :  { %5188 = vmatprep.subr.bf16.mxu1 %v5888_v37  ;;  %v5964_v34 = vld [vmem:[%s7695_s0 + $0x4f0] sm:$0xff]   ;;  %v5966_v37 = vld [vmem:[%s7695_s0 + $0x478] sm:$0xff]  }
  0xbf   :  { %5125 = vmatpush3.bf16.msra.mxu0 %v5887_v36 }
  0xc0   :  { %5238 = vmatprep.subr.bf16.mxu0 %v5917_v46  ;;  %v5967_v46 = vld [vmem:[%s7695_s0 + $0x438] sm:$0xff]  }
  0xc1   :  { %5189 = vmatpush3.bf16.msra.mxu1 %v5892_v38 }
  0xc2   :  { %3371 = vmatmul.mubr.bf16.gmra.mrb[80].mxu0 %v5836_v28  ;;  %5302 = vmatprep.subr.bf16.mxu1 %v5922_v48 }
  0xc3   :  { %3378 = vmatprep.mubr.bf16.mxu0 %v5847_v30 }
  0xc4   :  { %3468 = vmatmul.mubr.bf16.gmra.mrb[80].mxu1 %v5841_v31 }
  0xc5   :  { %3475 = vmatprep.mubr.bf16.mxu1 %v5852_v33  ;;  %v5913_v33 = vld [vmem:[%s7696_s1 + $0x290] ss:$100 sps:$4 sm:$0xff]  }
  0xca   :  { %3379 = vmatmul.mubr.bf16.gmra.mrb[84].mxu0 %v5850_v39 }
  0xcb   :  { %3386 = vmatprep.mubr.bf16.mxu0 %v5861_v40 }
  0xcc   :  { %3476 = vmatmul.mubr.bf16.gmra.mrb[84].mxu1 %v5855_v41  ;;  %v650_v41 = vpop.permute.xlu1 %649 }
  0xcd   :  { %3483 = vmatprep.mubr.bf16.mxu1 %v5866_v42  ;;  %v5918_v42 = vld [vmem:[%s7696_s1 + $0x35c] ss:$100 sps:$4 sm:$0xff]  }
  0xd2   :  { %3387 = vmatmul.mubr.bf16.gmra.mrb[88].mxu0 %v5864_v43  ;;  %v5965_v43 = vld [vmem:[%s7695_s0 + $0x4b0] sm:$0xff]  }
  0xd3   :  { %3394 = vmatprep.mubr.bf16.mxu0 %v5875_v44 }
  0xd4   :  { %3484 = vmatmul.mubr.bf16.gmra.mrb[88].mxu1 %v5869_v45 }
  0xd5   :  { %3491 = vmatprep.mubr.bf16.mxu1 %v5880_v47 }
  0xda   :  { %3395 = vmatmul.mubr.bf16.gmra.mrb[92].mxu0 %v5878_v49  ;;  %v5968_v49 = vld [vmem:[%s7695_s0 + $0x4f8] sm:$0xff]  }
  0xdb   :  { %3532 = vmatprep.mubr.bf16.mxu0 %v5891_v50 }
  0xdc   :  { %3492 = vmatmul.mubr.bf16.gmra.mrb[92].mxu1 %v5883_v51 }
  0xdd   :  { %3629 = vmatprep.mubr.bf16.mxu1 %v5895_v52 }
  0xe2   :  { %3533 = vmatmul.mubr.bf16.vlgmr.msra.gmra.mrb[96].mxu0 %v5889_v53 }
  0xe3   :  { %3540 = vmatprep.mubr.bf16.mxu0 %v5896_v54  ;;  %5239 = vmatpush3.bf16.msra.mxu0 %v5920_v56  ;;  %v5972_v56 = vld [vmem:[%s7695_s0 + $0x4b8] sm:$0xff]  }
  0xe4   :  { %5240 = vmatprep.subr.bf16.mxu0 %v5924_v58  ;;  %3630 = vmatmul.mubr.bf16.vlgmr.msra.gmra.mrb[96].mxu1 %v5893_v55  ;;  %v5916_v55 = vld [vmem:[%s7696_s1 + $0x350] ss:$100 sps:$4 sm:$0xff]  }
  0xe5   :  { %3637 = vmatprep.mubr.bf16.mxu1 %v5899_v57  ;;  %5303 = vmatpush3.bf16.msra.mxu1 %v5923_v59  ;;  %v655_v59 = vpop.permute.xlu1 %654 }
  0xe6   :  { %5304 = vmatprep.subr.bf16.mxu1 %v5926_v61 }
  0xe7   :  { %5241 = vmatpush3.bf16.msra.mxu0 %v5925_v60  ;;  %v5927_v60 = vld [vmem:[%s7696_s1 + $0x41c] ss:$100 sps:$4 sm:$0xff]  }
  0xe8   :  { %5242 = vmatprep.subr.bf16.mxu0 %v5931_v62 }
  0xe9   :  { %5305 = vmatpush3.bf16.msra.mxu1 %v5929_v1 }
  0xea   :  { %3541 = vmatmul.mubr.bf16.gmra.mrb[100].mxu0 %v5898_v63  ;;  %5306 = vmatprep.subr.bf16.mxu1 %v5936_v5  ;;  %v5932_v5 = vld [vmem:[%s7696_s1 + $0x424] ss:$100 sps:$4 sm:$0xff]  }
  0xeb   :  { %3548 = vmatprep.mubr.bf16.mxu0 %v5902_v0  ;;  %5243 = vmatpush3.bf16.msra.mxu0 %v5934_v3 }
  0xec   :  { %5244 = vmatprep.subr.bf16.mxu0 %v5938_v6  ;;  %3638 = vmatmul.mubr.bf16.gmra.mrb[100].mxu1 %v5901_v2  ;;  %v5921_v2 = vld [vmem:[%s7696_s1 + $0x358] ss:$100 sps:$4 sm:$0xff]  }
  0xed   :  { %3645 = vmatprep.mubr.bf16.mxu1 %v5905_v4  ;;  %5307 = vmatpush3.bf16.msra.mxu1 %v5937_v7 }
  0xee   :  { %5308 = vmatprep.subr.bf16.mxu1 %v5940_v9 }
  0xef   :  { %5245 = vmatpush3.bf16.msra.mxu0 %v5939_v8 }
  0xf0   :  { %5246 = vmatprep.subr.bf16.mxu0 %v5945_v11  ;;  %v5930_v11 = vld [vmem:[%s7696_s1 + $0x418] ss:$100 sps:$4 sm:$0xff]  }
  0xf1   :  { %5309 = vmatpush3.bf16.msra.mxu1 %v5943_v13 }
  0xf2   :  { %3549 = vmatmul.mubr.bf16.gmra.mrb[104].mxu0 %v5904_v10  ;;  %5310 = vmatprep.subr.bf16.mxu1 %v5950_v16 }
  0xf3   :  { %3556 = vmatprep.mubr.bf16.mxu0 %v5908_v12  ;;  %5247 = vmatpush3.bf16.msra.mxu0 %v5948_v14  ;;  %v5997_v12 = vld [vmem:[%s7695_s0 + $0x540] sm:$0xff]  }
  0xf4   :  { %5248 = vmatprep.subr.bf16.mxu0 %v5952_v17  ;;  %3646 = vmatmul.mubr.bf16.gmra.mrb[104].mxu1 %v5907_v15  ;;  %v660_v15 = vpop.permute.xlu0 %659 }
  0xf5   :  { %v4742_v25 = vpop.f32.mrb[0].mxu0  ;;  %3653 = vmatprep.mubr.bf16.mxu1 %v5911_v19  ;;  %5311 = vmatpush3.bf16.msra.mxu1 %v5951_v20  ;;  %v5935_v19 = vld [vmem:[%s7696_s1 + $0x420] ss:$100 sps:$4 sm:$0xff]  }
  0xf6   :  { %v4743_v28 = vpop.f32.mrb[1].mxu0  ;;  %5312 = vmatprep.subr.bf16.mxu1 %v5954_v22  ;;  %v5941_v20 = vld [vmem:[%s7696_s1 + $0x4e4] ss:$100 sps:$4 sm:$0xff]  }
  0xf7   :  { %v4744_v30 = vadd.f32 %v4743_v28, %v4742_v25  ;;  %v4745_v31 = vpop.f32.mrb[2].mxu0  ;;  %5249 = vmatpush3.bf16.msra.mxu0 %v5953_v21  ;;  %v4806_v35 = vpop.f32.mrb[0].mxu1 }
  0xf8   :  { %v4746_v36 = vpop.f32.mrb[3].mxu0  ;;  %5250 = vmatprep.subr.bf16.mxu0 %v5959_v24  ;;  %v4807_v40 = vpop.f32.mrb[1].mxu1 }
  0xf9   :  { %v2953_v38 = vadd.f32 %v4744_v30, %v640_v18  ;;  %v4747_v39 = vadd.f32 %v4746_v36, %v4745_v31  ;;  %v4808_v44 = vadd.f32 %v4807_v40, %v4806_v35  ;;  %v4809_v45 = vpop.f32.mrb[2].mxu1  ;;  %5313 = vmatpush3.bf16.msra.mxu1 %v5957_v27  ;;  %v665_v18 = vpop.permute.xlu1 %664  ;;  %v5946_v27 = vld [vmem:[%s7696_s1 + $0x4ec] ss:$100 sps:$4 sm:$0xff]  }
  0xfa   :  { %3557 = vmatmul.mubr.bf16.gmra.mrb[108].mxu0 %v5910_v23  ;;  %v4810_v48 = vpop.f32.mrb[3].mxu1  ;;  %5314 = vmatprep.subr.bf16.mxu1 %v5964_v34  ;;  %v6002_v23 = vld [vmem:[%s7695_s0 + $0x5c0] sm:$0xff]  }
  0xfb   :  { %v2956_v47 = vadd.f32 %v4747_v39, %v645_v32  ;;  %3564 = vmatprep.mubr.bf16.mxu0 %v5914_v26  ;;  %5251 = vmatpush3.bf16.msra.mxu0 %v5962_v29  ;;  %v7008_v50 = vadd.f32 %v4808_v44, %v2953_v38  ;;  %v4811_v51 = vadd.f32 %v4810_v48, %v4809_v45  ;;  %v5944_v34 = vld [vmem:[%s7696_s1 + $0x4e0] ss:$100 sps:$4 sm:$0xff]   ;;  %v670_v38 = vpop.permute.xlu0 %669  ;;  %v5955_v39 = vld [vmem:[%s7696_s1 + $0x5ac] ss:$100 sps:$4 sm:$0xff]  }
  0xfc   :  { %5252 = vmatprep.subr.bf16.mxu0 %v5966_v37  ;;  %3654 = vmatmul.mubr.bf16.gmra.mrb[108].mxu1 %v5913_v33  ;;  %v5949_v48 = vld [vmem:[%s7696_s1 + $0x4e8] ss:$100 sps:$4 sm:$0xff]  }
  0xfd   :  { %v4748_v52 = vpop.f32.mrb[4].mxu0  ;;  %v7010_v53 = vadd.f32 %v4811_v51, %v2956_v47  ;;  %3661 = vmatprep.mubr.bf16.mxu1 %v5918_v42  ;;  %5315 = vmatpush3.bf16.msra.mxu1 %v5965_v43  ;;  %v675_v42 = vpop.permute.xlu1 %674 }
  0xfe   :  { %v4749_v54 = vpop.f32.mrb[5].mxu0  ;;  %5316 = vmatprep.subr.bf16.mxu1 %v5968_v49 }
  0xff   :  { %v4750_v57 = vadd.f32 %v4749_v54, %v4748_v52  ;;  %v4751_v58 = vpop.f32.mrb[6].mxu0  ;;  %5253 = vmatpush3.bf16.msra.mxu0 %v5967_v46  ;;  %v4812_v61 = vpop.f32.mrb[4].mxu1  ;;  %v5960_v52 = vld [vmem:[%s7696_s1 + $0x5b4] ss:$100 sps:$4 sm:$0xff]  }
 0x100   :  { %v4752_v62 = vpop.f32.mrb[7].mxu0  ;;  %v4813_v1 = vpop.f32.mrb[5].mxu1  ;;  %5366 = vmatprep.subr.bf16.mxu0 %v5997_v12  ;;  %v5975_v12 = vld [vmem:[%s7696_s1 + $0x4c] ss:$100 sps:$4 sm:$0xff]  }
 0x101   :  { %v2961_v63 = vadd.f32 %v4750_v57, %v650_v41  ;;  %v4753_v0 = vadd.f32 %v4752_v62, %v4751_v58  ;;  %v4814_v3 = vadd.f32 %v4813_v1, %v4812_v61  ;;  %v4815_v4 = vpop.f32.mrb[6].mxu1  ;;  %5317 = vmatpush3.bf16.msra.mxu1 %v5972_v56  ;;  %v5958_v58 = vld [vmem:[%s7696_s1 + $0x5a8] ss:$100 sps:$4 sm:$0xff]  }
 0x102   :  { %3565 = vmatmul.mubr.bf16.gmra.mrb[112].mxu0 %v5916_v55  ;;  %v4816_v7 = vpop.f32.mrb[7].mxu1  ;;  %5430 = vmatprep.subr.bf16.mxu1 %v6002_v23  ;;  %v5976_v23 = vld [vmem:[%s7696_s1 + $0x10c] ss:$100 sps:$4 sm:$0xff]  }
 0x103   :  { %v2964_v6 = vadd.f32 %v4753_v0, %v655_v59  ;;  %3572 = vmatprep.mubr.bf16.mxu0 %v5927_v60  ;;  %v7027_v8 = vadd.f32 %v4814_v3, %v2961_v63  ;;  %v4817_v9 = vadd.f32 %v4816_v7, %v4815_v4  ;;  %v5971_v60 = vld [vmem:[%s7696_s1 + $0x44] ss:$100 sps:$4 sm:$0xff]   ;;  %v680_v63 = vpop.permute.xlu0 %679 }
 0x104   :  { %3662 = vmatmul.mubr.bf16.gmra.mrb[112].mxu1 %v5921_v2  ;;  %v685_v2 = vpop.permute.xlu1 %684 }
 0x105   :  { %v4754_v10 = vpop.f32.mrb[8].mxu0  ;;  %v7035_v13 = vadd.f32 %v4817_v9, %v2964_v6  ;;  %3669 = vmatprep.mubr.bf16.mxu1 %v5932_v5  ;;  %v5963_v9 = vld [vmem:[%s7696_s1 + $0x5b0] ss:$100 sps:$4 sm:$0xff]  }
 0x106   :  { %v4755_v14 = vpop.f32.mrb[9].mxu0 }
 0x107   :  { %v4756_v16 = vadd.f32 %v4755_v14, %v4754_v10  ;;  %v4757_v17 = vpop.f32.mrb[10].mxu0  ;;  %v4818_v21 = vpop.f32.mrb[8].mxu1 }
 0x108   :  { %v4758_v22 = vpop.f32.mrb[11].mxu0  ;;  %v4819_v26 = vpop.f32.mrb[9].mxu1 }
 0x109   :  { %v2969_v24 = vadd.f32 %v4756_v16, %v660_v15  ;;  %v4759_v25 = vadd.f32 %v4758_v22, %v4757_v17  ;;  %v4820_v28 = vadd.f32 %v4819_v26, %v4818_v21  ;;  %v4821_v29 = vpop.f32.mrb[10].mxu1  ;;  %v690_v22 = vpop.permute.xlu0 %689 }
 0x10a   :  { %3573 = vmatmul.mubr.bf16.gmra.mrb[116].mxu0 %v5930_v11  ;;  %v4822_v31 = vpop.f32.mrb[11].mxu1 }
 0x10b   :  { %v2972_v30 = vadd.f32 %v4759_v25, %v665_v18  ;;  %3580 = vmatprep.mubr.bf16.mxu0 %v5941_v20  ;;  %v7049_v32 = vadd.f32 %v4820_v28, %v2969_v24  ;;  %v4823_v33 = vadd.f32 %v4822_v31, %v4821_v29  ;;  %v6000_v24 = vld [vmem:[%s7695_s0 + $0x500] sm:$0xff]   ;;  %v5973_v28 = vld [vmem:[%s7696_s1 + $0x48] ss:$100 sps:$4 sm:$0xff]  }
 0x10c   :  { %3670 = vmatmul.mubr.bf16.gmra.mrb[116].mxu1 %v5935_v19  ;;  %v5969_v19 = vld [vmem:[%s7696_s1 + $0x40] ss:$100 sps:$4 sm:$0xff]   ;;  %v6004_v29 = vld [vmem:[%s7695_s0 + $0x548] sm:$0xff]  }
 0x10d   :  { %v4760_v35 = vpop.f32.mrb[12].mxu0  ;;  %v7054_v36 = vadd.f32 %v4823_v33, %v2972_v30  ;;  %3677 = vmatprep.mubr.bf16.mxu1 %v5946_v27  ;;  %v695_v27 = vpop.permute.xlu1 %694  ;;  %v5979_v33 = vld [vmem:[%s7696_s1 + $0x114] ss:$100 sps:$4 sm:$0xff]  }
 0x10e   :  { %v4761_v37 = vpop.f32.mrb[13].mxu0 }
 0x10f   :  { %v4762_v40 = vadd.f32 %v4761_v37, %v4760_v35  ;;  %v4763_v41 = vpop.f32.mrb[14].mxu0  ;;  %v4824_v43 = vpop.f32.mrb[12].mxu1 }
 0x110   :  { %v4764_v44 = vpop.f32.mrb[15].mxu0  ;;  %v4825_v47 = vpop.f32.mrb[13].mxu1 }
 0x111   :  { %v2977_v45 = vadd.f32 %v4762_v40, %v670_v38  ;;  %v4765_v46 = vadd.f32 %v4764_v44, %v4763_v41  ;;  %v4826_v49 = vadd.f32 %v4825_v47, %v4824_v43  ;;  %v4827_v51 = vpop.f32.mrb[14].mxu1  ;;  %v6003_v38 = vld [vmem:[%s7695_s0 + $0x580] sm:$0xff]   ;;  %v6005_v41 = vld [vmem:[%s7695_s0 + $0x508] sm:$0xff]  }
 0x112   :  { %3581 = vmatmul.mubr.bf16.gmra.mrb[120].mxu0 %v5944_v34  ;;  %v4828_v55 = vpop.f32.mrb[15].mxu1  ;;  %v6006_v44 = vld [vmem:[%s7695_s0 + $0x5c8] sm:$0xff]  }
 0x113   :  { %v2980_v54 = vadd.f32 %v4765_v46, %v675_v42  ;;  %3588 = vmatprep.mubr.bf16.mxu0 %v5955_v39  ;;  %v7065_v56 = vadd.f32 %v4826_v49, %v2977_v45  ;;  %v4829_v57 = vadd.f32 %v4828_v55, %v4827_v51  ;;  %v5978_v47 = vld [vmem:[%s7696_s1 + $0x108] ss:$100 sps:$4 sm:$0xff]   ;;  %v5982_v51 = vld [vmem:[%s7696_s1 + $0x1d4] ss:$100 sps:$4 sm:$0xff]   ;;  %v700_v55 = vpop.permute.xlu0 %699 }
 0x114   :  { %3678 = vmatmul.mubr.bf16.gmra.mrb[120].mxu1 %v5949_v48  ;;  %v6011_v48 = vld [vmem:[%s7695_s0 + $0x550] sm:$0xff]  }
 0x115   :  { %v4766_v59 = vpop.f32.mrb[16].mxu0  ;;  %v7073_v61 = vadd.f32 %v4829_v57, %v2980_v54  ;;  %3685 = vmatprep.mubr.bf16.mxu1 %v5960_v52  ;;  %v6009_v57 = vld [vmem:[%s7695_s0 + $0x588] sm:$0xff]  }
 0x116   :  { %v4767_v62 = vpop.f32.mrb[17].mxu0 }
 0x117   :  { %v4768_v0 = vadd.f32 %v4767_v62, %v4766_v59  ;;  %v4769_v1 = vpop.f32.mrb[18].mxu0  ;;  %v4830_v3 = vpop.f32.mrb[16].mxu1 }
 0x118   :  { %v4770_v4 = vpop.f32.mrb[19].mxu0  ;;  %v4831_v7 = vpop.f32.mrb[17].mxu1 }
 0x119   :  { %v2985_v5 = vadd.f32 %v4768_v0, %v680_v63  ;;  %v4771_v6 = vadd.f32 %v4770_v4, %v4769_v1  ;;  %v4832_v10 = vadd.f32 %v4831_v7, %v4830_v3  ;;  %v4833_v11 = vpop.f32.mrb[18].mxu1  ;;  %v705_v62 = vpop.permute.xlu1 %704  ;;  %v5981_v63 = vld [vmem:[%s7696_s1 + $0x110] ss:$100 sps:$4 sm:$0xff]   ;;  %v6018_v4 = vld [vmem:[%s7695_s0 + $0x558] sm:$0xff]  }
 0x11a   :  { %3589 = vmatmul.mubr.bf16.gmra.mrb[124].mxu0 %v5958_v58  ;;  %v4834_v15 = vpop.f32.mrb[19].mxu1  ;;  %v6014_v58 = vld [vmem:[%s7695_s0 + $0x510] sm:$0xff]  }
 0x11b   :  { %v2988_v14 = vadd.f32 %v4771_v6, %v685_v2  ;;  %3726 = vmatprep.mubr.bf16.mxu0 %v5971_v60  ;;  %v7081_v16 = vadd.f32 %v4832_v10, %v2985_v5  ;;  %v4835_v17 = vadd.f32 %v4834_v15, %v4833_v11  ;;  %v5985_v2 = vld [vmem:[%s7696_s1 + $0x1dc] ss:$100 sps:$4 sm:$0xff]   ;;  %v6016_v3 = vld [vmem:[%s7695_s0 + $0x5d0] sm:$0xff]  }
 0x11c   :  { %3686 = vmatmul.mubr.bf16.gmra.mrb[124].mxu1 %v5963_v9  ;;  %v6017_v9 = vld [vmem:[%s7695_s0 + $0x590] sm:$0xff]  }
 0x11d   :  { %v4772_v18 = vpop.f32.mrb[20].mxu0  ;;  %v7086_v20 = vadd.f32 %v4835_v17, %v2988_v14  ;;  %3823 = vmatprep.mubr.bf16.mxu1 %v5975_v12  ;;  %v6019_v12 = vld [vmem:[%s7695_s0 + $0x518] sm:$0xff]  }
 0x11e   :  { %v4773_v21 = vpop.f32.mrb[21].mxu0  ;;  %v6020_v14 = vld [vmem:[%s7695_s0 + $0x5d8] sm:$0xff]  }
 0x11f   :  { %v4774_v25 = vadd.f32 %v4773_v21, %v4772_v18  ;;  %v4775_v26 = vpop.f32.mrb[22].mxu0  ;;  %v4836_v30 = vpop.f32.mrb[20].mxu1  ;;  %v6025_v18 = vld [vmem:[%s7695_s0 + $0x560] sm:$0xff]  }
 0x120   :  { %v4776_v31 = vpop.f32.mrb[23].mxu0  ;;  %v4837_v37 = vpop.f32.mrb[21].mxu1 }
 0x121   :  { %v2993_v34 = vadd.f32 %v4774_v25, %v690_v22  ;;  %v4777_v35 = vadd.f32 %v4776_v31, %v4775_v26  ;;  %v4838_v39 = vadd.f32 %v4837_v37, %v4836_v30  ;;  %v4839_v40 = vpop.f32.mrb[22].mxu1  ;;  %v5984_v22 = vld [vmem:[%s7696_s1 + $0x1d0] ss:$100 sps:$4 sm:$0xff]   ;;  %v715_v31 = vpop.permute.xlu1 %714 }
 0x122   :  { %3727 = vmatmul.mubr.bf16.vlgmr.msra.gmra.mrb[128].mxu0 %v5969_v19  ;;  %v4840_v43 = vpop.f32.mrb[23].mxu1 }
 0x123   :  { %v2996_v42 = vadd.f32 %v4777_v35, %v695_v27  ;;  %3734 = vmatprep.mubr.bf16.mxu0 %v5976_v23  ;;  %5367 = vmatpush3.bf16.msra.mxu0 %v6000_v24  ;;  %v7112_v45 = vadd.f32 %v4838_v39, %v2993_v34  ;;  %v4841_v46 = vadd.f32 %v4840_v43, %v4839_v40  ;;  %v5988_v24 = vld [vmem:[%s7696_s1 + $0x29c] ss:$100 sps:$4 sm:$0xff]   ;;  %v710_v27 = vpop.permute.xlu0 %709  ;;  %v6032_v39 = vld [vmem:[%s7695_s0 + $0x568] sm:$0xff]  }
 0x124   :  { %5368 = vmatprep.subr.bf16.mxu0 %v6004_v29  ;;  %3824 = vmatmul.mubr.bf16.vlgmr.msra.gmra.mrb[128].mxu1 %v5973_v28  ;;  %v6023_v28 = vld [vmem:[%s7695_s0 + $0x598] sm:$0xff]   ;;  %v6028_v34 = vld [vmem:[%s7695_s0 + $0x520] sm:$0xff]  }
 0x125   :  { %v4778_v49 = vpop.f32.mrb[24].mxu0  ;;  %v7123_v52 = vadd.f32 %v4841_v46, %v2996_v42  ;;  %3831 = vmatprep.mubr.bf16.mxu1 %v5979_v33  ;;  %5431 = vmatpush3.bf16.msra.mxu1 %v6003_v38  ;;  %v5987_v33 = vld [vmem:[%s7696_s1 + $0x1d8] ss:$100 sps:$4 sm:$0xff]   ;;  %v6030_v38 = vld [vmem:[%s7695_s0 + $0x5e0] sm:$0xff]  }
 0x126   :  { %v4779_v54 = vpop.f32.mrb[25].mxu0  ;;  %5432 = vmatprep.subr.bf16.mxu1 %v6006_v44  ;;  %v5991_v43 = vld [vmem:[%s7696_s1 + $0x2a4] ss:$100 sps:$4 sm:$0xff]  }
 0x127   :  { %v4780_v59 = vadd.f32 %v4779_v54, %v4778_v49  ;;  %v4781_v60 = vpop.f32.mrb[26].mxu0  ;;  %5369 = vmatpush3.bf16.msra.mxu0 %v6005_v41  ;;  %v4842_v0 = vpop.f32.mrb[24].mxu1  ;;  %v6034_v54 = vld [vmem:[%s7695_s0 + $0x5e8] sm:$0xff]  }
 0x128   :  { %v4782_v1 = vpop.f32.mrb[27].mxu0  ;;  %5370 = vmatprep.subr.bf16.mxu0 %v6011_v48  ;;  %v4843_v7 = vpop.f32.mrb[25].mxu1  ;;  %v6033_v48 = vld [vmem:[%s7695_s0 + $0x528] sm:$0xff]  }
 0x129   :  { %v3001_v5 = vadd.f32 %v4780_v59, %v700_v55  ;;  %v4783_v6 = vadd.f32 %v4782_v1, %v4781_v60  ;;  %v4844_v10 = vadd.f32 %v4843_v7, %v4842_v0  ;;  %v4845_v11 = vpop.f32.mrb[26].mxu1  ;;  %5433 = vmatpush3.bf16.msra.mxu1 %v6009_v57  ;;  %v5990_v60 = vld [vmem:[%s7696_s1 + $0x298] ss:$100 sps:$4 sm:$0xff]   ;;  %v6037_v1 = vld [vmem:[%s7695_s0 + $0x5a8] sm:$0xff]  }
 0x12a   :  { %3735 = vmatmul.mubr.bf16.gmra.mrb[132].mxu0 %v5978_v47  ;;  %v4846_v17 = vpop.f32.mrb[27].mxu1  ;;  %5434 = vmatprep.subr.bf16.mxu1 %v6016_v3  ;;  %v6031_v47 = vld [vmem:[%s7695_s0 + $0x5a0] sm:$0xff]  }
 0x12b   :  { %v3004_v15 = vadd.f32 %v4783_v6, %v705_v62  ;;  %3742 = vmatprep.mubr.bf16.mxu0 %v5982_v51  ;;  %5371 = vmatpush3.bf16.msra.mxu0 %v6014_v58  ;;  %v7155_v19 = vadd.f32 %v4844_v10, %v3001_v5  ;;  %v4847_v21 = vadd.f32 %v4846_v17, %v4845_v11  ;;  %v6039_v58 = vld [vmem:[%s7695_s0 + $0x570] sm:$0xff]   ;;  %v5994_v62 = vld [vmem:[%s7696_s1 + $0x364] ss:$100 sps:$4 sm:$0xff]  }
 0x12c   :  { %5372 = vmatprep.subr.bf16.mxu0 %v6018_v4  ;;  %3832 = vmatmul.mubr.bf16.gmra.mrb[132].mxu1 %v5981_v63  ;;  %v6044_v5 = vld [vmem:[%s7695_s0 + $0x5f0] sm:$0xff]  }
 0x12d   :  { %v4784_v23 = vpop.f32.mrb[28].mxu0  ;;  %v7163_v25 = vadd.f32 %v4847_v21, %v3004_v15  ;;  %3839 = vmatprep.mubr.bf16.mxu1 %v5985_v2  ;;  %5435 = vmatpush3.bf16.msra.mxu1 %v6017_v9  ;;  %v6042_v2 = vld [vmem:[%s7695_s0 + $0x530] sm:$0xff]   ;;  %v6046_v9 = vld [vmem:[%s7695_s0 + $0x578] sm:$0xff]  }
 0x12e   :  { %v4785_v26 = vpop.f32.mrb[29].mxu0  ;;  %5436 = vmatprep.subr.bf16.mxu1 %v6020_v14  ;;  %v5993_v14 = vld [vmem:[%s7696_s1 + $0x2a0] ss:$100 sps:$4 sm:$0xff]   ;;  %v5998_v15 = vld [vmem:[%s7696_s1 + $0x36c] ss:$100 sps:$4 sm:$0xff]  }
 0x12f   :  { %v4786_v29 = vadd.f32 %v4785_v26, %v4784_v23  ;;  %v4787_v30 = vpop.f32.mrb[30].mxu0  ;;  %5373 = vmatpush3.bf16.msra.mxu0 %v6019_v12  ;;  %v4848_v35 = vpop.f32.mrb[28].mxu1  ;;  %v6045_v21 = vld [vmem:[%s7695_s0 + $0x5b0] sm:$0xff]  }
 0x130   :  { %v4788_v37 = vpop.f32.mrb[31].mxu0  ;;  %5374 = vmatprep.subr.bf16.mxu0 %v6025_v18  ;;  %v4849_v42 = vpop.f32.mrb[29].mxu1 }
 0x131   :  { %v3009_v40 = vadd.f32 %v4786_v29, %v710_v27  ;;  %v4789_v41 = vadd.f32 %v4788_v37, %v4787_v30  ;;  %v4850_v44 = vadd.f32 %v4849_v42, %v4848_v35  ;;  %v4851_v46 = vpop.f32.mrb[30].mxu1  ;;  %5437 = vmatpush3.bf16.msra.mxu1 %v6023_v28  ;;  %v7239_v29 = vld [vmem:[%s7695_s0 + $0x600] sm:$0xff]   ;;  %v6007_v37 = vld [vmem:[%s7696_s1 + $0x42c] ss:$100 sps:$4 sm:$0xff]  }
 0x132   :  { %3743 = vmatmul.mubr.bf16.gmra.mrb[136].mxu0 %v5984_v22  ;;  %v4852_v51 = vpop.f32.mrb[31].mxu1  ;;  %5438 = vmatprep.subr.bf16.mxu1 %v6030_v38 }
 0x133   :  { %v3012_v49 = vadd.f32 %v4789_v41, %v715_v31  ;;  %3750 = vmatprep.mubr.bf16.mxu0 %v5988_v24  ;;  %5375 = vmatpush3.bf16.msra.mxu0 %v6028_v34  ;;  %v7192_v55 = vadd.f32 %v4850_v44, %v3009_v40  ;;  %v4853_v57 = vadd.f32 %v4852_v51, %v4851_v46  ;;  %v6048_v24 = vld [vmem:[%s7695_s0 + $0x5f8] sm:$0xff]   ;;  %v5996_v31 = vld [vmem:[%s7696_s1 + $0x360] ss:$100 sps:$4 sm:$0xff]  }
 0x134   :  { %5376 = vmatprep.subr.bf16.mxu0 %v6032_v39  ;;  %3840 = vmatmul.mubr.bf16.gmra.mrb[136].mxu1 %v5987_v33  ;;  %v6052_v33 = vld [vmem:[%s7695_s0 + $0x5b8] sm:$0xff]  }
 0x135   :  { %v4870_v59 = vpop.f32.mrb[32].mxu0  ;;  %v7203_v63 = vadd.f32 %v4853_v57, %v3012_v49  ;;  %3847 = vmatprep.mubr.bf16.mxu1 %v5991_v43  ;;  %5439 = vmatpush3.bf16.msra.mxu1 %v6031_v47  ;;  %v6001_v43 = vld [vmem:[%s7696_s1 + $0x368] ss:$100 sps:$4 sm:$0xff]   ;;  %v6012_v47 = vld [vmem:[%s7696_s1 + $0x434] ss:$100 sps:$4 sm:$0xff]  }
 0x136   :  { %v4871_v0 = vpop.f32.mrb[33].mxu0  ;;  %5440 = vmatprep.subr.bf16.mxu1 %v6034_v54  ;;  %v6010_v57 = vld [vmem:[%s7696_s1 + $0x428] ss:$100 sps:$4 sm:$0xff]  }
 0x137   :  { %v4872_v3 = vadd.f32 %v4871_v0, %v4870_v59  ;;  %v4873_v4 = vpop.f32.mrb[34].mxu0  ;;  %5377 = vmatpush3.bf16.msra.mxu0 %v6033_v48  ;;  %v4934_v6 = vpop.f32.mrb[32].mxu1 }
 0x138   :  { %v4874_v7 = vpop.f32.mrb[35].mxu0  ;;  %5378 = vmatprep.subr.bf16.mxu0 %v6039_v58  ;;  %v4935_v12 = vpop.f32.mrb[33].mxu1 }
 0x139   :  { %v3147_v10 = vadd.f32 %v4872_v3, %v7008_v50  ;;  %v4875_v11 = vadd.f32 %v4874_v7, %v4873_v4  ;;  %v4936_v17 = vadd.f32 %v4935_v12, %v4934_v6  ;;  %v4937_v18 = vpop.f32.mrb[34].mxu1  ;;  %5441 = vmatpush3.bf16.msra.mxu1 %v6037_v1  ;;  %v6047_v50 = vld [vmem:[%s7695_s0 + $0x538] sm:$0xff]  }
 0x13a   :  { %3751 = vmatmul.mubr.bf16.gmra.mrb[140].mxu0 %v5990_v60  ;;  %v4938_v23 = vpop.f32.mrb[35].mxu1  ;;  %5442 = vmatprep.subr.bf16.mxu1 %v6044_v5  ;;  %v6021_v60 = vld [vmem:[%s7696_s1 + $0x4f4] ss:$100 sps:$4 sm:$0xff]   ;;  %v6026_v3 = vld [vmem:[%s7696_s1 + $0x4fc] ss:$100 sps:$4 sm:$0xff]  }
 0x13b   :  { %v3150_v22 = vadd.f32 %v4875_v11, %v7010_v53  ;;  %3758 = vmatprep.mubr.bf16.mxu0 %v5994_v62  ;;  %5379 = vmatpush3.bf16.msra.mxu0 %v6042_v2  ;;  %v7234_v26 = vadd.f32 %v4936_v17, %v3147_v10  ;;  %v4939_v27 = vadd.f32 %v4938_v23, %v4937_v18  ;;  %v6015_v2 = vld [vmem:[%s7696_s1 + $0x430] ss:$100 sps:$4 sm:$0xff]  }
 0x13c   :  { %5380 = vmatprep.subr.bf16.mxu0 %v6046_v9  ;;  %3848 = vmatmul.mubr.bf16.gmra.mrb[140].mxu1 %v5993_v14  ;;  %v6024_v17 = vld [vmem:[%s7696_s1 + $0x4f0] ss:$100 sps:$4 sm:$0xff]  }
 0x13d   :  { %v4876_v28 = vpop.f32.mrb[36].mxu0  ;;  %v7241_v53 = vadd.f32 %v4939_v27, %v3150_v22  ;;  %3855 = vmatprep.mubr.bf16.mxu1 %v5998_v15  ;;  %5443 = vmatpush3.bf16.msra.mxu1 %v6045_v21 }
 0x13e   :  { %v4877_v30 = vpop.f32.mrb[37].mxu0  ;;  %5444 = vmatprep.subr.bf16.mxu1 %v6048_v24  ;;  %v6029_v24 = vld [vmem:[%s7696_s1 + $0x4f8] ss:$100 sps:$4 sm:$0xff]  }
 0x13f   :  { %v4878_v34 = vadd.f32 %v4877_v30, %v4876_v28  ;;  %v4879_v35 = vpop.f32.mrb[38].mxu0  ;;  %5381 = vmatpush3.bf16.msra.mxu0 %v6047_v50  ;;  %v4940_v38 = vpop.f32.mrb[36].mxu1 }
 0x140   :  { %v4880_v39 = vpop.f32.mrb[39].mxu0  ;;  %5524 = vmatprep.subr.bf16.mxu0 %v7239_v29  ;;  %v4941_v42 = vpop.f32.mrb[37].mxu1 }
 0x141   :  { %v3155_v40 = vadd.f32 %v4878_v34, %v7027_v8  ;;  %v4881_v41 = vadd.f32 %v4880_v39, %v4879_v35  ;;  %v4942_v44 = vadd.f32 %v4941_v42, %v4940_v38  ;;  %v4943_v46 = vpop.f32.mrb[38].mxu1  ;;  %5445 = vmatpush3.bf16.msra.mxu1 %v6052_v33  ;;  %v6040_v34 = vld [vmem:[%s7696_s1 + $0x5c4] ss:$100 sps:$4 sm:$0xff]   ;;  %v6038_v42 = vld [vmem:[%s7696_s1 + $0x5b8] ss:$100 sps:$4 sm:$0xff]  }
 0x142   :  { %3759 = vmatmul.mubr.bf16.gmra.mrb[144].mxu0 %v5996_v31  ;;  %v4944_v49 = vpop.f32.mrb[39].mxu1 }
 0x143   :  { %v3158_v48 = vadd.f32 %v4881_v41, %v7035_v13  ;;  %3766 = vmatprep.mubr.bf16.mxu0 %v6007_v37  ;;  %v7261_v51 = vadd.f32 %v4942_v44, %v3155_v40  ;;  %v4945_v8 = vadd.f32 %v4944_v49, %v4943_v46 }
 0x144   :  { %3856 = vmatmul.mubr.bf16.gmra.mrb[144].mxu1 %v6001_v43 }
 0x145   :  { %v4882_v54 = vpop.f32.mrb[40].mxu0  ;;  %v7266_v58 = vadd.f32 %v4945_v8, %v3158_v48  ;;  %3863 = vmatprep.mubr.bf16.mxu1 %v6012_v47 }
 0x146   :  { %v4883_v59 = vpop.f32.mrb[41].mxu0 }
 0x147   :  { %v4884_v13 = vadd.f32 %v4883_v59, %v4882_v54  ;;  %v4885_v62 = vpop.f32.mrb[42].mxu0  ;;  %v4946_v0 = vpop.f32.mrb[40].mxu1  ;;  %v6043_v54 = vld [vmem:[%s7696_s1 + $0x5c0] ss:$100 sps:$4 sm:$0xff]  }
 0x148   :  { %v4886_v1 = vpop.f32.mrb[43].mxu0  ;;  %v4947_v6 = vpop.f32.mrb[41].mxu1 }
 0x149   :  { %v3163_v4 = vadd.f32 %v4884_v13, %v7049_v32  ;;  %v4887_v5 = vadd.f32 %v4886_v1, %v4885_v62  ;;  %v4948_v7 = vadd.f32 %v4947_v6, %v4946_v0  ;;  %v4949_v9 = vpop.f32.mrb[42].mxu1 }
 0x14a   :  { %3767 = vmatmul.mubr.bf16.gmra.mrb[148].mxu0 %v6010_v57  ;;  %v4950_v11 = vpop.f32.mrb[43].mxu1 }
 0x14b   :  { %v3166_v10 = vadd.f32 %v4887_v5, %v7054_v36  ;;  %3774 = vmatprep.mubr.bf16.mxu0 %v6021_v60  ;;  %v7279_v12 = vadd.f32 %v4948_v7, %v3163_v4  ;;  %v4951_v14 = vadd.f32 %v4950_v11, %v4949_v9  ;;  %v6035_v36 = vld [vmem:[%s7696_s1 + $0x5bc] ss:$100 sps:$4 sm:$0xff]   ;;  %v6049_v5 = vld [vmem:[%s7696_s1 + $0x50] ss:$100 sps:$4 sm:$0xff]   ;;  %v6090_v11 = vld [vmem:[%s7695_s0 + $0x608] sm:$0xff]  }
 0x14c   :  { %3864 = vmatmul.mubr.bf16.gmra.mrb[148].mxu1 %v6015_v2  ;;  %v6055_v60 = vld [vmem:[%s7696_s1 + $0x5c] ss:$100 sps:$4 sm:$0xff]  }
 0x14d   :  { %v4888_v15 = vpop.f32.mrb[44].mxu0  ;;  %v7284_v18 = vadd.f32 %v4951_v14, %v3166_v10  ;;  %3871 = vmatprep.mubr.bf16.mxu1 %v6026_v3  ;;  %v4229_v2 = vld [vmem:[%s7698_s4] sm:$0xff] }
 0x14e   :  { %v4889_v32 = vpop.f32.mrb[45].mxu0  ;;  %4233 = vperm.xlu0 %5616, %v4229_v2   ;;  %v6056_v7 = vld [vmem:[%s7696_s1 + $0x11c] ss:$100 sps:$4 sm:$0xff]  }
 0x14f   :  { %v4890_v21 = vadd.f32 %v4889_v32, %v4888_v15  ;;  %v4891_v50 = vpop.f32.mrb[46].mxu0  ;;  %v4952_v22 = vpop.f32.mrb[44].mxu1  ;;  %v6053_v32 = vld [vmem:[%s7696_s1 + $0x58] ss:$100 sps:$4 sm:$0xff]  }
 0x150   :  { %v4892_v23 = vpop.f32.mrb[47].mxu0  ;;  %v4953_v30 = vpop.f32.mrb[45].mxu1 }
 0x151   :  { %v3171_v27 = vadd.f32 %v4890_v21, %v7065_v56  ;;  %v4893_v28 = vadd.f32 %v4892_v23, %v4891_v50  ;;  %v4954_v31 = vadd.f32 %v4953_v30, %v4952_v22  ;;  %v4955_v33 = vpop.f32.mrb[46].mxu1  ;;  %v4230_v21 = vld [vmem:[%s7698_s4 + $0x8] sm:$0x3] }
 0x152   :  { %3775 = vmatmul.mubr.bf16.gmra.mrb[152].mxu0 %v6024_v17  ;;  %v4956_v37 = vpop.f32.mrb[47].mxu1  ;;  %v6059_v22 = vld [vmem:[%s7696_s1 + $0x124] ss:$100 sps:$4 sm:$0xff]   ;;  %4238 = vperm.xlu1 %5617, %v4230_v21  }
 0x153   :  { %v3174_v35 = vadd.f32 %v4893_v28, %v7073_v61  ;;  %3782 = vmatprep.mubr.bf16.mxu0 %v6035_v36  ;;  %v7297_v38 = vadd.f32 %v4954_v31, %v3171_v27  ;;  %v4957_v39 = vadd.f32 %v4956_v37, %v4955_v33  ;;  %v6051_v61 = vld [vmem:[%s7696_s1 + $0x54] ss:$100 sps:$4 sm:$0xff]   ;;  %v6070_v21 = vld [vmem:[%s7696_s1 + $0x2a8] ss:$100 sps:$4 sm:$0xff]  }
 0x154   :  { %3872 = vmatmul.mubr.bf16.gmra.mrb[152].mxu1 %v6029_v24  ;;  %v6097_v28 = vld [vmem:[%s7695_s0 + $0x610] sm:$0xff]  }
 0x155   :  { %v4894_v40 = vpop.f32.mrb[48].mxu0  ;;  %v7299_v41 = vadd.f32 %v4957_v39, %v3174_v35  ;;  %3879 = vmatprep.mubr.bf16.mxu1 %v6040_v34  ;;  %v6062_v35 = vld [vmem:[%s7696_s1 + $0x1e4] ss:$100 sps:$4 sm:$0xff]  }
 0x156   :  { %v4895_v56 = vpop.f32.mrb[49].mxu0 }
 0x157   :  { %v4896_v43 = vadd.f32 %v4895_v56, %v4894_v40  ;;  %v4897_v44 = vpop.f32.mrb[50].mxu0  ;;  %v4958_v46 = vpop.f32.mrb[48].mxu1  ;;  %v6101_v40 = vld [vmem:[%s7695_s0 + $0x618] sm:$0xff]  }
 0x158   :  { %v4898_v47 = vpop.f32.mrb[51].mxu0  ;;  %v4959_v8 = vpop.f32.mrb[49].mxu1 }
 0x159   :  { %v3179_v48 = vadd.f32 %v4896_v43, %v7081_v16  ;;  %v4899_v49 = vadd.f32 %v4898_v47, %v4897_v44  ;;  %v4960_v57 = vadd.f32 %v4959_v8, %v4958_v46  ;;  %v4961_v59 = vpop.f32.mrb[50].mxu1  ;;  %v6061_v44 = vld [vmem:[%s7696_s1 + $0x120] ss:$100 sps:$4 sm:$0xff]   ;;  %v6065_v47 = vld [vmem:[%s7696_s1 + $0x1ec] ss:$100 sps:$4 sm:$0xff]  }
 0x15a   :  { %3783 = vmatmul.mubr.bf16.gmra.mrb[156].mxu0 %v6038_v42  ;;  %v4962_v62 = vpop.f32.mrb[51].mxu1 }
 0x15b   :  { %v3182_v13 = vadd.f32 %v4899_v49, %v7086_v20  ;;  %3920 = vmatprep.mubr.bf16.mxu0 %v6051_v61  ;;  %v7315_v0 = vadd.f32 %v4960_v57, %v3179_v48  ;;  %v4963_v16 = vadd.f32 %v4962_v62, %v4961_v59 }
 0x15c   :  { %3880 = vmatmul.mubr.bf16.gmra.mrb[156].mxu1 %v6043_v54 }
 0x15d   :  { %v4900_v1 = vpop.f32.mrb[52].mxu0  ;;  %v7320_v3 = vadd.f32 %v4963_v16, %v3182_v13  ;;  %4017 = vmatprep.mubr.bf16.mxu1 %v6055_v60  ;;  %v6064_v60 = vld [vmem:[%s7696_s1 + $0x1e0] ss:$100 sps:$4 sm:$0xff]  }
 0x15e   :  { %v4901_v4 = vpop.f32.mrb[53].mxu0 }
 0x15f   :  { %v4902_v20 = vadd.f32 %v4901_v4, %v4900_v1  ;;  %v4903_v6 = vpop.f32.mrb[54].mxu0  ;;  %v4964_v9 = vpop.f32.mrb[52].mxu1 }
 0x160   :  { %v4904_v10 = vpop.f32.mrb[55].mxu0  ;;  %v4965_v17 = vpop.f32.mrb[53].mxu1 }
 0x161   :  { %v3187_v14 = vadd.f32 %v4902_v20, %v7112_v45  ;;  %v4905_v15 = vadd.f32 %v4904_v10, %v4903_v6  ;;  %v4966_v50 = vadd.f32 %v4965_v17, %v4964_v9  ;;  %v4967_v36 = vpop.f32.mrb[54].mxu1  ;;  %v6067_v20 = vld [vmem:[%s7696_s1 + $0x1e8] ss:$100 sps:$4 sm:$0xff]   ;;  %v6071_v9 = vld [vmem:[%s7696_s1 + $0x2b4] ss:$100 sps:$4 sm:$0xff]  }
 0x162   :  { %3921 = vmatmul.mubr.bf16.vlgmr.msra.gmra.mrb[160].mxu0 %v6049_v5  ;;  %v4968_v23 = vpop.f32.mrb[55].mxu1 }
 0x163   :  { %v3190_v45 = vadd.f32 %v4905_v15, %v7123_v52  ;;  %3928 = vmatprep.mubr.bf16.mxu0 %v6056_v7  ;;  %5525 = vmatpush3.bf16.msra.mxu0 %v7239_v29  ;;  %v7343_v24 = vadd.f32 %v4966_v50, %v3187_v14  ;;  %v4969_v27 = vadd.f32 %v4968_v23, %v4967_v36  ;;  %v6058_v52 = vld [vmem:[%s7696_s1 + $0x118] ss:$100 sps:$4 sm:$0xff]  }
 0x164   :  { %5526 = vmatprep.subr.bf16.mxu0 %v6090_v11  ;;  %4018 = vmatmul.mubr.bf16.vlgmr.msra.gmra.mrb[160].mxu1 %v6053_v32 }
 0x165   :  { %v4906_v30 = vpop.f32.mrb[56].mxu0  ;;  %v7348_v31 = vadd.f32 %v4969_v27, %v3190_v45  ;;  %4025 = vmatprep.mubr.bf16.mxu1 %v6059_v22 }
 0x166   :  { %v4907_v33 = vpop.f32.mrb[57].mxu0 }
 0x167   :  { %v4908_v34 = vadd.f32 %v4907_v33, %v4906_v30  ;;  %v4909_v29 = vpop.f32.mrb[58].mxu0  ;;  %5527 = vmatpush3.bf16.msra.mxu0 %v6090_v11  ;;  %v4970_v37 = vpop.f32.mrb[56].mxu1  ;;  %v6073_v30 = vld [vmem:[%s7696_s1 + $0x2b0] ss:$100 sps:$4 sm:$0xff]  }
 0x168   :  { %v4910_v39 = vpop.f32.mrb[59].mxu0  ;;  %5528 = vmatprep.subr.bf16.mxu0 %v6097_v28  ;;  %v4971_v43 = vpop.f32.mrb[57].mxu1 }
 0x169   :  { %v3195_v56 = vadd.f32 %v4908_v34, %v7155_v19  ;;  %v4911_v42 = vadd.f32 %v4910_v39, %v4909_v29  ;;  %v4972_v61 = vadd.f32 %v4971_v43, %v4970_v37  ;;  %v4973_v46 = vpop.f32.mrb[58].mxu1  ;;  %v6078_v34 = vld [vmem:[%s7696_s1 + $0x37c] ss:$100 sps:$4 sm:$0xff]  }
 0x16a   :  { %3929 = vmatmul.mubr.bf16.gmra.mrb[164].mxu0 %v6058_v52  ;;  %v4974_v49 = vpop.f32.mrb[59].mxu1 }
 0x16b   :  { %v3198_v48 = vadd.f32 %v4911_v42, %v7163_v25  ;;  %3936 = vmatprep.mubr.bf16.mxu0 %v6062_v35  ;;  %5529 = vmatpush3.bf16.msra.mxu0 %v6097_v28  ;;  %v7367_v8 = vadd.f32 %v4972_v61, %v3195_v56  ;;  %v4975_v19 = vadd.f32 %v4974_v49, %v4973_v46  ;;  %v6068_v25 = vld [vmem:[%s7696_s1 + $0x2ac] ss:$100 sps:$4 sm:$0xff]  }
 0x16c   :  { %5530 = vmatprep.subr.bf16.mxu0 %v6101_v40  ;;  %4026 = vmatmul.mubr.bf16.gmra.mrb[164].mxu1 %v6061_v44  ;;  %v6076_v42 = vld [vmem:[%s7696_s1 + $0x370] ss:$100 sps:$4 sm:$0xff]  }
 0x16d   :  { %v4912_v54 = vpop.f32.mrb[60].mxu0  ;;  %v7369_v57 = vadd.f32 %v4975_v19, %v3198_v48  ;;  %4033 = vmatprep.mubr.bf16.mxu1 %v6065_v47  ;;  %v6080_v19 = vld [vmem:[%s7696_s1 + $0x378] ss:$100 sps:$4 sm:$0xff]  }
 0x16e   :  { %v4913_v59 = vpop.f32.mrb[61].mxu0 }
 0x16f   :  { %v4914_v13 = vadd.f32 %v4913_v59, %v4912_v54  ;;  %v4915_v62 = vpop.f32.mrb[62].mxu0  ;;  %5531 = vmatpush3.bf16.msra.mxu0 %v6101_v40  ;;  %v4976_v16 = vpop.f32.mrb[60].mxu1 }
 0x170   :  { %v4916_v1 = vpop.f32.mrb[63].mxu0  ;;  %v4977_v5 = vpop.f32.mrb[61].mxu1 }
 0x171   :  { %v3203_v2 = vadd.f32 %v4914_v13, %v7192_v55  ;;  %v4917_v4 = vadd.f32 %v4916_v1, %v4915_v62  ;;  %v4978_v6 = vadd.f32 %v4977_v5, %v4976_v16  ;;  %v4979_v7 = vpop.f32.mrb[62].mxu1 }
 0x172   :  { %3937 = vmatmul.mubr.bf16.gmra.mrb[168].mxu0 %v6064_v60  ;;  %v4980_v11 = vpop.f32.mrb[63].mxu1  ;;  %v6084_v60 = vld [vmem:[%s7696_s1 + $0x444] ss:$100 sps:$4 sm:$0xff]  }
 0x173   :  { %v3206_v10 = vadd.f32 %v4917_v4, %v7203_v63  ;;  %3944 = vmatprep.mubr.bf16.mxu0 %v6068_v25  ;;  %v7385_v14 = vadd.f32 %v4978_v6, %v3203_v2  ;;  %v4981_v55 = vadd.f32 %v4980_v11, %v4979_v7  ;;  %v6074_v63 = vld [vmem:[%s7696_s1 + $0x374] ss:$100 sps:$4 sm:$0xff]  }
 0x174   :  { %4034 = vmatmul.mubr.bf16.gmra.mrb[168].mxu1 %v6067_v20  ;;  %v6083_v4 = vld [vmem:[%s7696_s1 + $0x438] ss:$100 sps:$4 sm:$0xff]  }
 0x175   :  { %v4998_v15 = vpop.f32.mrb[64].mxu0  ;;  %v7387_v17 = vadd.f32 %v4981_v55, %v3206_v10  ;;  %4041 = vmatprep.mubr.bf16.mxu1 %v6071_v9  ;;  %v6086_v55 = vld [vmem:[%s7696_s1 + $0x440] ss:$100 sps:$4 sm:$0xff]  }
 0x176   :  { %v4999_v32 = vpop.f32.mrb[65].mxu0 }
 0x177   :  { %v5000_v50 = vadd.f32 %v4999_v32, %v4998_v15  ;;  %v5001_v36 = vpop.f32.mrb[66].mxu0  ;;  %v5062_v22 = vpop.f32.mrb[64].mxu1 }
 0x178   :  { %v5002_v45 = vpop.f32.mrb[67].mxu0  ;;  %v5063_v28 = vpop.f32.mrb[65].mxu1 }
 0x179   :  { %v3341_v23 = vadd.f32 %v5000_v50, %v7234_v26  ;;  %v5003_v27 = vadd.f32 %v5002_v45, %v5001_v36  ;;  %v5064_v33 = vadd.f32 %v5063_v28, %v5062_v22  ;;  %v5065_v52 = vpop.f32.mrb[66].mxu1 }
 0x17a   :  { %3945 = vmatmul.mubr.bf16.gmra.mrb[172].mxu0 %v6070_v21  ;;  %v5066_v35 = vpop.f32.mrb[67].mxu1  ;;  %v6091_v21 = vld [vmem:[%s7696_s1 + $0x50c] ss:$100 sps:$4 sm:$0xff]  }
 0x17b   :  { %v3344_v29 = vadd.f32 %v5003_v27, %v7241_v53  ;;  %3952 = vmatprep.mubr.bf16.mxu0 %v6074_v63  ;;  %v7403_v37 = vadd.f32 %v5064_v33, %v3341_v23  ;;  %v5067_v26 = vadd.f32 %v5066_v35, %v5065_v52  ;;  %v6081_v53 = vld [vmem:[%s7696_s1 + $0x43c] ss:$100 sps:$4 sm:$0xff]  }
 0x17c   :  { %4042 = vmatmul.mubr.bf16.gmra.mrb[172].mxu1 %v6073_v30  ;;  %v6089_v27 = vld [vmem:[%s7696_s1 + $0x500] ss:$100 sps:$4 sm:$0xff]  }
 0x17d   :  { %v5004_v39 = vpop.f32.mrb[68].mxu0  ;;  %v7405_v40 = vadd.f32 %v5067_v26, %v3344_v29  ;;  %4049 = vmatprep.mubr.bf16.mxu1 %v6078_v34  ;;  %v6093_v26 = vld [vmem:[%s7696_s1 + $0x508] ss:$100 sps:$4 sm:$0xff]  }
 0x17e   :  { %v5005_v56 = vpop.f32.mrb[69].mxu0 }
 0x17f   :  { %v5006_v43 = vadd.f32 %v5005_v56, %v5004_v39  ;;  %v5007_v44 = vpop.f32.mrb[70].mxu0  ;;  %v5068_v61 = vpop.f32.mrb[68].mxu1 }
 0x180   :  { %v5008_v46 = vpop.f32.mrb[71].mxu0  ;;  %v5069_v49 = vpop.f32.mrb[69].mxu1 }
 0x181   :  { %v3349_v47 = vadd.f32 %v5006_v43, %v7261_v51  ;;  %v5009_v48 = vadd.f32 %v5008_v46, %v5007_v44  ;;  %v5070_v54 = vadd.f32 %v5069_v49, %v5068_v61  ;;  %v5071_v59 = vpop.f32.mrb[70].mxu1 }
 0x182   :  { %3953 = vmatmul.mubr.bf16.gmra.mrb[176].mxu0 %v6076_v42  ;;  %v5072_v62 = vpop.f32.mrb[71].mxu1  ;;  %v6098_v42 = vld [vmem:[%s7696_s1 + $0x5d4] ss:$100 sps:$4 sm:$0xff]  }
 0x183   :  { %v3352_v13 = vadd.f32 %v5009_v48, %v7266_v58  ;;  %3960 = vmatprep.mubr.bf16.mxu0 %v6081_v53  ;;  %v7421_v25 = vadd.f32 %v5070_v54, %v3349_v47  ;;  %v5073_v51 = vadd.f32 %v5072_v62, %v5071_v59  ;;  %v6087_v58 = vld [vmem:[%s7696_s1 + $0x504] ss:$100 sps:$4 sm:$0xff]  }
 0x184   :  { %4050 = vmatmul.mubr.bf16.gmra.mrb[176].mxu1 %v6080_v19  ;;  %v6096_v48 = vld [vmem:[%s7696_s1 + $0x5c8] ss:$100 sps:$4 sm:$0xff]  }
 0x185   :  { %v5010_v16 = vpop.f32.mrb[72].mxu0  ;;  %v7423_v1 = vadd.f32 %v5073_v51, %v3352_v13  ;;  %4057 = vmatprep.mubr.bf16.mxu1 %v6084_v60  ;;  %v6100_v51 = vld [vmem:[%s7696_s1 + $0x5d0] ss:$100 sps:$4 sm:$0xff]  }
 0x186   :  { %v5011_v2 = vpop.f32.mrb[73].mxu0 }
 0x187   :  { %v5012_v5 = vadd.f32 %v5011_v2, %v5010_v16  ;;  %v5013_v20 = vpop.f32.mrb[74].mxu0  ;;  %v5074_v6 = vpop.f32.mrb[72].mxu1 }
 0x188   :  { %v5014_v7 = vpop.f32.mrb[75].mxu0  ;;  %v5075_v11 = vpop.f32.mrb[73].mxu1 }
 0x189   :  { %v3357_v9 = vadd.f32 %v5012_v5, %v7279_v12  ;;  %v5015_v10 = vadd.f32 %v5014_v7, %v5013_v20  ;;  %v5076_v15 = vadd.f32 %v5075_v11, %v5074_v6  ;;  %v5077_v32 = vpop.f32.mrb[74].mxu1 }
 0x18a   :  { %3961 = vmatmul.mubr.bf16.gmra.mrb[180].mxu0 %v6083_v4  ;;  %v5078_v36 = vpop.f32.mrb[75].mxu1 }
 0x18b   :  { %v3360_v50 = vadd.f32 %v5015_v10, %v7284_v18  ;;  %3968 = vmatprep.mubr.bf16.mxu0 %v6087_v58  ;;  %v7439_v63 = vadd.f32 %v5076_v15, %v3357_v9  ;;  %v5079_v12 = vadd.f32 %v5078_v36, %v5077_v32  ;;  %v6094_v18 = vld [vmem:[%s7696_s1 + $0x5cc] ss:$100 sps:$4 sm:$0xff]  }
 0x18c   :  { %4058 = vmatmul.mubr.bf16.gmra.mrb[180].mxu1 %v6086_v55  ;;  %v6103_v9 = vld [vmem:[%s7696_s1 + $0x128] ss:$100 sps:$4 sm:$0xff]  }
 0x18d   :  { %v5016_v22 = vpop.f32.mrb[76].mxu0  ;;  %v7441_v45 = vadd.f32 %v5079_v12, %v3360_v50  ;;  %4065 = vmatprep.mubr.bf16.mxu1 %v6091_v21 }
 0x18e   :  { %v5017_v23 = vpop.f32.mrb[77].mxu0 }
 0x18f   :  { %v5018_v28 = vadd.f32 %v5017_v23, %v5016_v22  ;;  %v5019_v30 = vpop.f32.mrb[78].mxu0  ;;  %v5080_v33 = vpop.f32.mrb[76].mxu1 }
 0x190   :  { %v5020_v52 = vpop.f32.mrb[79].mxu0  ;;  %v5081_v35 = vpop.f32.mrb[77].mxu1 }
 0x191   :  { %v3365_v34 = vadd.f32 %v5018_v28, %v7297_v38  ;;  %v5021_v29 = vadd.f32 %v5020_v52, %v5019_v30  ;;  %v5082_v39 = vadd.f32 %v5081_v35, %v5080_v33  ;;  %v5083_v56 = vpop.f32.mrb[78].mxu1 }
 0x192   :  { %3969 = vmatmul.mubr.bf16.gmra.mrb[184].mxu0 %v6089_v27  ;;  %v5084_v44 = vpop.f32.mrb[79].mxu1 }
 0x193   :  { %v3368_v43 = vadd.f32 %v5021_v29, %v7299_v41  ;;  %3976 = vmatprep.mubr.bf16.mxu0 %v6094_v18  ;;  %v7457_v53 = vadd.f32 %v5082_v39, %v3365_v34  ;;  %v5085_v38 = vadd.f32 %v5084_v44, %v5083_v56  ;;  %v6102_v41 = vld [vmem:[%s7696_s1 + $0x60] ss:$100 sps:$4 sm:$0xff]  }
 0x194   :  { %4066 = vmatmul.mubr.bf16.gmra.mrb[184].mxu1 %v6093_v26 }
 0x195   :  { %v5022_v61 = vpop.f32.mrb[80].mxu0  ;;  %v7459_v46 = vadd.f32 %v5085_v38, %v3368_v43  ;;  %4073 = vmatprep.mubr.bf16.mxu1 %v6098_v42 }
 0x196   :  { %v5023_v47 = vpop.f32.mrb[81].mxu0 }
 0x197   :  { %v5024_v49 = vadd.f32 %v5023_v47, %v5022_v61  ;;  %v5025_v19 = vpop.f32.mrb[82].mxu0  ;;  %v5086_v54 = vpop.f32.mrb[80].mxu1 }
 0x198   :  { %v5026_v59 = vpop.f32.mrb[83].mxu0  ;;  %v5087_v62 = vpop.f32.mrb[81].mxu1 }
 0x199   :  { %v3373_v60 = vadd.f32 %v5024_v49, %v7315_v0  ;;  %v5027_v13 = vadd.f32 %v5026_v59, %v5025_v19  ;;  %v5088_v16 = vadd.f32 %v5087_v62, %v5086_v54  ;;  %v5089_v2 = vpop.f32.mrb[82].mxu1 }
 0x19a   :  { %3977 = vmatmul.mubr.bf16.gmra.mrb[188].mxu0 %v6096_v48  ;;  %v5090_v5 = vpop.f32.mrb[83].mxu1 }
 0x19b   :  { %v3376_v4 = vadd.f32 %v5027_v13, %v7320_v3  ;;  %5532 = vmatprep.mubr.msk.bf16.mxu0 %vm2893_vm0, %v6102_v41  ;;  %v7473_v20 = vadd.f32 %v5088_v16, %v3373_v60  ;;  %v5091_v58 = vadd.f32 %v5090_v5, %v5089_v2  ;;  %v6104_v3 = vld [vmem:[%s7696_s1 + $0x1f0] ss:$100 sps:$4 sm:$0xff]  }
 0x19c   :  { %4074 = vmatmul.mubr.bf16.gmra.mrb[188].mxu1 %v6100_v51 }
 0x19d   :  { %v5028_v6 = vpop.f32.mrb[84].mxu0  ;;  %v7475_v0 = vadd.f32 %v5091_v58, %v3376_v4 }
 0x19e   :  { %v5029_v7 = vpop.f32.mrb[85].mxu0 }
 0x19f   :  { %v5030_v10 = vadd.f32 %v5029_v7, %v5028_v6  ;;  %v5031_v11 = vpop.f32.mrb[86].mxu0  ;;  %v5092_v55 = vpop.f32.mrb[84].mxu1 }
 0x1a0   :  { %v5032_v15 = vpop.f32.mrb[87].mxu0  ;;  %v5093_v50 = vpop.f32.mrb[85].mxu1 }
 0x1a1   :  { %v3381_v32 = vadd.f32 %v5030_v10, %v7343_v24  ;;  %v5033_v21 = vadd.f32 %v5032_v15, %v5031_v11  ;;  %v5094_v36 = vadd.f32 %v5093_v50, %v5092_v55  ;;  %v5095_v12 = vpop.f32.mrb[86].mxu1  ;;  %v6105_v24 = vld [vmem:[%s7696_s1 + $0x2b8] ss:$100 sps:$4 sm:$0xff]  }
 0x1a2   :  { %5533 = vmatmul.mubr.msk.bf16.vlgmr.msra.gmra.mrb[192].mxu0 %vm2893_vm0, %v6103_v9  ;;  %v5096_v23 = vpop.f32.mrb[87].mxu1 }
 0x1a3   :  { %v3384_v22 = vadd.f32 %v5033_v21, %v7348_v31  ;;  %5536 = vmatprep.mubr.msk.bf16.mxu0 %vm2893_vm0, %v6104_v3  ;;  %v7487_v27 = vadd.f32 %v5094_v36, %v3381_v32  ;;  %v5097_v28 = vadd.f32 %v5096_v23, %v5095_v12  ;;  %v6106_v31 = vld [vmem:[%s7696_s1 + $0x380] ss:$100 sps:$4 sm:$0xff]  }
 0x1a5   :  { %v5034_v30 = vpop.f32.mrb[88].mxu0  ;;  %v7489_v18 = vadd.f32 %v5097_v28, %v3384_v22 }
 0x1a6   :  { %v5035_v33 = vpop.f32.mrb[89].mxu0 }
 0x1a7   :  { %v5036_v52 = vadd.f32 %v5035_v33, %v5034_v30  ;;  %v5037_v34 = vpop.f32.mrb[90].mxu0  ;;  %v5098_v29 = vpop.f32.mrb[88].mxu1 }
 0x1a8   :  { %v5038_v35 = vpop.f32.mrb[91].mxu0  ;;  %v5099_v56 = vpop.f32.mrb[89].mxu1 }
 0x1a9   :  { %v3389_v26 = vadd.f32 %v5036_v52, %v7367_v8  ;;  %v5039_v39 = vadd.f32 %v5038_v35, %v5037_v34  ;;  %v5100_v42 = vadd.f32 %v5099_v56, %v5098_v29  ;;  %v5101_v43 = vpop.f32.mrb[90].mxu1  ;;  %v6107_v8 = vld [vmem:[%s7696_s1 + $0x448] ss:$100 sps:$4 sm:$0xff]  }
 0x1aa   :  { %5537 = vmatmul.mubr.msk.bf16.gmra.mrb[196].mxu0 %vm2893_vm0, %v6105_v24  ;;  %v5102_v38 = vpop.f32.mrb[91].mxu1 }
 0x1ab   :  { %v3392_v44 = vadd.f32 %v5039_v39, %v7369_v57  ;;  %5540 = vmatprep.mubr.msk.bf16.mxu0 %vm2893_vm0, %v6106_v31  ;;  %v7501_v61 = vadd.f32 %v5100_v42, %v3389_v26  ;;  %v5103_v47 = vadd.f32 %v5102_v38, %v5101_v43  ;;  %v6108_v57 = vld [vmem:[%s7696_s1 + $0x510] ss:$100 sps:$4 sm:$0xff]  }
 0x1ad   :  { %v5040_v48 = vpop.f32.mrb[92].mxu0  ;;  %v7503_v49 = vadd.f32 %v5103_v47, %v3392_v44 }
 0x1ae   :  { %v5041_v19 = vpop.f32.mrb[93].mxu0 }
 0x1af   :  { %v5042_v41 = vadd.f32 %v5041_v19, %v5040_v48  ;;  %v5043_v54 = vpop.f32.mrb[94].mxu0  ;;  %v5104_v59 = vpop.f32.mrb[92].mxu1 }
 0x1b0   :  { %v5044_v60 = vpop.f32.mrb[95].mxu0  ;;  %v5105_v51 = vpop.f32.mrb[93].mxu1 }
 0x1b1   :  { %v3397_v13 = vadd.f32 %v5042_v41, %v7385_v14  ;;  %v5045_v62 = vadd.f32 %v5044_v60, %v5043_v54  ;;  %v5106_v16 = vadd.f32 %v5105_v51, %v5104_v59  ;;  %v5107_v2 = vpop.f32.mrb[94].mxu1  ;;  %v6109_v14 = vld [vmem:[%s7696_s1 + $0x5d8] ss:$100 sps:$4 sm:$0xff]  }
 0x1b2   :  { %5541 = vmatmul.mubr.msk.bf16.gmra.mrb[200].mxu0 %vm2893_vm0, %v6107_v8  ;;  %v5108_v5 = vpop.f32.mrb[95].mxu1 }
 0x1b3   :  { %v3400_v4 = vadd.f32 %v5045_v62, %v7387_v17  ;;  %5544 = vmatprep.mubr.msk.bf16.mxu0 %vm2893_vm0, %v6108_v57  ;;  %v7515_v58 = vadd.f32 %v5106_v16, %v3397_v13  ;;  %v5109_v6 = vadd.f32 %v5108_v5, %v5107_v2 }
 0x1b5   :  { %v5126_v7 = vpop.f32.mrb[96].mxu0  ;;  %v7517_v9 = vadd.f32 %v5109_v6, %v3400_v4 }
 0x1b6   :  { %v5127_v10 = vpop.f32.mrb[97].mxu0 }
 0x1b7   :  { %v5128_v11 = vadd.f32 %v5127_v10, %v5126_v7  ;;  %v5129_v3 = vpop.f32.mrb[98].mxu0  ;;  %v5190_v55 = vpop.f32.mrb[96].mxu1 }
 0x1b8   :  { %v5130_v15 = vpop.f32.mrb[99].mxu0  ;;  %v5191_v21 = vpop.f32.mrb[97].mxu1 }
 0x1b9   :  { %v3535_v17 = vadd.f32 %v5128_v11, %v7403_v37  ;;  %v5131_v32 = vadd.f32 %v5130_v15, %v5129_v3  ;;  %v5192_v50 = vadd.f32 %v5191_v21, %v5190_v55  ;;  %v5193_v36 = vpop.f32.mrb[98].mxu1 }
 0x1ba   :  { %5545 = vmatmul.mubr.msk.bf16.gmra.mrb[204].mxu0 %vm2893_vm0, %v6109_v14  ;;  %v5194_v22 = vpop.f32.mrb[99].mxu1 }
 0x1bb   :  { %v3538_v12 = vadd.f32 %v5131_v32, %v7405_v40  ;;  %v7525_v23 = vadd.f32 %v5192_v50, %v3535_v17  ;;  %v5195_v28 = vadd.f32 %v5194_v22, %v5193_v36 }
 0x1bd   :  { %v5132_v30 = vpop.f32.mrb[100].mxu0  ;;  %v7527_v33 = vadd.f32 %v5195_v28, %v3538_v12 }
 0x1be   :  { %v5133_v24 = vpop.f32.mrb[101].mxu0 }
 0x1bf   :  { %v5134_v52 = vadd.f32 %v5133_v24, %v5132_v30  ;;  %v5135_v34 = vpop.f32.mrb[102].mxu0  ;;  %v5196_v31 = vpop.f32.mrb[100].mxu1 }
 0x1c0   :  { %v5136_v37 = vpop.f32.mrb[103].mxu0  ;;  %v5197_v26 = vpop.f32.mrb[101].mxu1 }
 0x1c1   :  { %v3543_v29 = vadd.f32 %v5134_v52, %v7421_v25  ;;  %v5137_v35 = vadd.f32 %v5136_v37, %v5135_v34  ;;  %v5198_v39 = vadd.f32 %v5197_v26, %v5196_v31  ;;  %v5199_v56 = vpop.f32.mrb[102].mxu1 }
 0x1c2   :  { %v5200_v42 = vpop.f32.mrb[103].mxu1 }
 0x1c3   :  { %v3546_v40 = vadd.f32 %v5137_v35, %v7423_v1  ;;  %v7531_v43 = vadd.f32 %v5198_v39, %v3543_v29  ;;  %v5201_v44 = vadd.f32 %v5200_v42, %v5199_v56 }
 0x1c5   :  { %v5138_v38 = vpop.f32.mrb[104].mxu0  ;;  %v7533_v47 = vadd.f32 %v5201_v44, %v3546_v40 }
 0x1c6   :  { %v5139_v48 = vpop.f32.mrb[105].mxu0 }
 0x1c7   :  { %v5140_v19 = vadd.f32 %v5139_v48, %v5138_v38  ;;  %v5141_v8 = vpop.f32.mrb[106].mxu0  ;;  %v5202_v41 = vpop.f32.mrb[104].mxu1 }
 0x1c8   :  { %v5142_v54 = vpop.f32.mrb[107].mxu0  ;;  %v5203_v59 = vpop.f32.mrb[105].mxu1 }
 0x1c9   :  { %v3551_v25 = vadd.f32 %v5140_v19, %v7439_v63  ;;  %v5143_v57 = vadd.f32 %v5142_v54, %v5141_v8  ;;  %v5204_v60 = vadd.f32 %v5203_v59, %v5202_v41  ;;  %v5205_v13 = vpop.f32.mrb[106].mxu1 }
 0x1ca   :  { %v5206_v62 = vpop.f32.mrb[107].mxu1 }
 0x1cb   :  { %v3554_v1 = vadd.f32 %v5143_v57, %v7441_v45  ;;  %v7537_v51 = vadd.f32 %v5204_v60, %v3551_v25  ;;  %v5207_v16 = vadd.f32 %v5206_v62, %v5205_v13 }
 0x1cd   :  { %v5144_v2 = vpop.f32.mrb[108].mxu0  ;;  %v7539_v4 = vadd.f32 %v5207_v16, %v3554_v1 }
 0x1ce   :  { %v5145_v5 = vpop.f32.mrb[109].mxu0 }
 0x1cf   :  { %v5146_v6 = vadd.f32 %v5145_v5, %v5144_v2  ;;  %v5147_v7 = vpop.f32.mrb[110].mxu0  ;;  %v5208_v10 = vpop.f32.mrb[108].mxu1 }
 0x1d0   :  { %v5148_v14 = vpop.f32.mrb[111].mxu0  ;;  %v5209_v3 = vpop.f32.mrb[109].mxu1 }
 0x1d1   :  { %v3559_v63 = vadd.f32 %v5146_v6, %v7457_v53  ;;  %v5149_v11 = vadd.f32 %v5148_v14, %v5147_v7  ;;  %v5210_v55 = vadd.f32 %v5209_v3, %v5208_v10  ;;  %v5211_v15 = vpop.f32.mrb[110].mxu1 }
 0x1d2   :  { %v5212_v17 = vpop.f32.mrb[111].mxu1 }
 0x1d3   :  { %v3562_v45 = vadd.f32 %v5149_v11, %v7459_v46  ;;  %v7543_v32 = vadd.f32 %v5210_v55, %v3559_v63  ;;  %v5213_v21 = vadd.f32 %v5212_v17, %v5211_v15 }
 0x1d5   :  { %v5150_v50 = vpop.f32.mrb[112].mxu0  ;;  %v7545_v36 = vadd.f32 %v5213_v21, %v3562_v45 }
 0x1d6   :  { %v5151_v12 = vpop.f32.mrb[113].mxu0 }
 0x1d7   :  { %v5152_v22 = vadd.f32 %v5151_v12, %v5150_v50  ;;  %v5153_v28 = vpop.f32.mrb[114].mxu0  ;;  %v5214_v30 = vpop.f32.mrb[112].mxu1 }
 0x1d8   :  { %v5154_v24 = vpop.f32.mrb[115].mxu0  ;;  %v5215_v34 = vpop.f32.mrb[113].mxu1 }
 0x1d9   :  { %v3567_v53 = vadd.f32 %v5152_v22, %v7473_v20  ;;  %v5155_v52 = vadd.f32 %v5154_v24, %v5153_v28  ;;  %v5216_v31 = vadd.f32 %v5215_v34, %v5214_v30  ;;  %v5217_v37 = vpop.f32.mrb[114].mxu1 }
 0x1da   :  { %v5218_v29 = vpop.f32.mrb[115].mxu1 }
 0x1db   :  { %v3570_v46 = vadd.f32 %v5155_v52, %v7475_v0  ;;  %v7549_v35 = vadd.f32 %v5216_v31, %v3567_v53  ;;  %v5219_v26 = vadd.f32 %v5218_v29, %v5217_v37 }
 0x1dd   :  { %v5156_v39 = vpop.f32.mrb[116].mxu0  ;;  %v7551_v56 = vadd.f32 %v5219_v26, %v3570_v46 }
 0x1de   :  { %v5157_v40 = vpop.f32.mrb[117].mxu0 }
 0x1df   :  { %v5158_v42 = vadd.f32 %v5157_v40, %v5156_v39  ;;  %v5159_v44 = vpop.f32.mrb[118].mxu0  ;;  %v5220_v38 = vpop.f32.mrb[116].mxu1 }
 0x1e0   :  { %v5160_v48 = vpop.f32.mrb[119].mxu0  ;;  %v5221_v8 = vpop.f32.mrb[117].mxu1 }
 0x1e1   :  { %v3575_v20 = vadd.f32 %v5158_v42, %v7487_v27  ;;  %v5161_v19 = vadd.f32 %v5160_v48, %v5159_v44  ;;  %v5222_v41 = vadd.f32 %v5221_v8, %v5220_v38  ;;  %v5223_v54 = vpop.f32.mrb[118].mxu1 }
 0x1e2   :  { %v5224_v25 = vpop.f32.mrb[119].mxu1 }
 0x1e3   :  { %v3578_v0 = vadd.f32 %v5161_v19, %v7489_v18  ;;  %v7555_v57 = vadd.f32 %v5222_v41, %v3575_v20  ;;  %v5225_v59 = vadd.f32 %v5224_v25, %v5223_v54 }
 0x1e5   :  { %v5162_v60 = vpop.f32.mrb[120].mxu0  ;;  %v7557_v13 = vadd.f32 %v5225_v59, %v3578_v0 }
 0x1e6   :  { %v5163_v1 = vpop.f32.mrb[121].mxu0 }
 0x1e7   :  { %v5164_v62 = vadd.f32 %v5163_v1, %v5162_v60  ;;  %v5165_v16 = vpop.f32.mrb[122].mxu0  ;;  %v5226_v2 = vpop.f32.mrb[120].mxu1 }
 0x1e8   :  { %v5166_v5 = vpop.f32.mrb[123].mxu0  ;;  %v5227_v7 = vpop.f32.mrb[121].mxu1 }
 0x1e9   :  { %v3583_v27 = vadd.f32 %v5164_v62, %v7501_v61  ;;  %v5167_v6 = vadd.f32 %v5166_v5, %v5165_v16  ;;  %v5228_v10 = vadd.f32 %v5227_v7, %v5226_v2  ;;  %v5229_v14 = vpop.f32.mrb[122].mxu1 }
 0x1ea   :  { %v5230_v63 = vpop.f32.mrb[123].mxu1 }
 0x1eb   :  { %v3586_v18 = vadd.f32 %v5167_v6, %v7503_v49  ;;  %v7561_v11 = vadd.f32 %v5228_v10, %v3583_v27  ;;  %v5231_v3 = vadd.f32 %v5230_v63, %v5229_v14 }
 0x1ed   :  { %v5168_v55 = vpop.f32.mrb[124].mxu0  ;;  %v7563_v15 = vadd.f32 %v5231_v3, %v3586_v18 }
 0x1ee   :  { %v5169_v45 = vpop.f32.mrb[125].mxu0 }
 0x1ef   :  { %v5170_v17 = vadd.f32 %v5169_v45, %v5168_v55  ;;  %v5171_v21 = vpop.f32.mrb[126].mxu0  ;;  %v5232_v50 = vpop.f32.mrb[124].mxu1 }
 0x1f0   :  { %v5172_v12 = vpop.f32.mrb[127].mxu0  ;;  %v5233_v28 = vpop.f32.mrb[125].mxu1 }
 0x1f1   :  { %v3591_v61 = vadd.f32 %v5170_v17, %v7515_v58  ;;  %v5173_v22 = vadd.f32 %v5172_v12, %v5171_v21  ;;  %v5234_v30 = vadd.f32 %v5233_v28, %v5232_v50  ;;  %v5235_v24 = vpop.f32.mrb[126].mxu1 }
 0x1f2   :  { %v5236_v53 = vpop.f32.mrb[127].mxu1 }
 0x1f3   :  { %v3594_v49 = vadd.f32 %v5173_v22, %v7517_v9  ;;  %v7567_v52 = vadd.f32 %v5234_v30, %v3591_v61  ;;  %v5237_v34 = vadd.f32 %v5236_v53, %v5235_v24 }
 0x1f5   :  { %v5254_v31 = vpop.f32.mrb[128].mxu0  ;;  %v7569_v37 = vadd.f32 %v5237_v34, %v3594_v49 }
 0x1f6   :  { %v5255_v46 = vpop.f32.mrb[129].mxu0 }
 0x1f7   :  { %v5256_v29 = vadd.f32 %v5255_v46, %v5254_v31  ;;  %v5257_v26 = vpop.f32.mrb[130].mxu0  ;;  %v5318_v39 = vpop.f32.mrb[128].mxu1 }
 0x1f8   :  { %v5258_v40 = vpop.f32.mrb[131].mxu0  ;;  %v5319_v44 = vpop.f32.mrb[129].mxu1 }
 0x1f9   :  { %v3729_v58 = vadd.f32 %v5256_v29, %v7525_v23  ;;  %v5259_v42 = vadd.f32 %v5258_v40, %v5257_v26  ;;  %v5320_v38 = vadd.f32 %v5319_v44, %v5318_v39  ;;  %v5321_v48 = vpop.f32.mrb[130].mxu1 }
 0x1fa   :  { %v5322_v20 = vpop.f32.mrb[131].mxu1 }
 0x1fb   :  { %v3732_v9 = vadd.f32 %v5259_v42, %v7527_v33  ;;  %v7573_v19 = vadd.f32 %v5320_v38, %v3729_v58  ;;  %v5323_v8 = vadd.f32 %v5322_v20, %v5321_v48 }
 0x1fd   :  { %v5260_v41 = vpop.f32.mrb[132].mxu0  ;;  %v7575_v54 = vadd.f32 %v5323_v8, %v3732_v9 }
 0x1fe   :  { %v5261_v0 = vpop.f32.mrb[133].mxu0 }
 0x1ff   :  { %v5262_v25 = vadd.f32 %v5261_v0, %v5260_v41  ;;  %v5263_v59 = vpop.f32.mrb[134].mxu0  ;;  %v5324_v60 = vpop.f32.mrb[132].mxu1 }
 0x200   :  { %v5264_v1 = vpop.f32.mrb[135].mxu0  ;;  %v5325_v16 = vpop.f32.mrb[133].mxu1 }
 0x201   :  { %v3737_v23 = vadd.f32 %v5262_v25, %v7531_v43  ;;  %v5265_v62 = vadd.f32 %v5264_v1, %v5263_v59  ;;  %v5326_v2 = vadd.f32 %v5325_v16, %v5324_v60  ;;  %v5327_v5 = vpop.f32.mrb[134].mxu1 }
 0x202   :  { %v5328_v27 = vpop.f32.mrb[135].mxu1 }
 0x203   :  { %v3740_v33 = vadd.f32 %v5265_v62, %v7533_v47  ;;  %v7579_v6 = vadd.f32 %v5326_v2, %v3737_v23  ;;  %v5329_v7 = vadd.f32 %v5328_v27, %v5327_v5  ;;  %v4227_v27 = vld [vmem:[%s7699_s3] sm:$0xff] }
 0x204   :  { %5580 = vmatprep.mubr.f32.mxu1 %v4227_v27 }
 0x205   :  { %v5266_v10 = vpop.f32.mrb[136].mxu0  ;;  %v7581_v14 = vadd.f32 %v5329_v7, %v3740_v33 }
 0x206   :  { %v5267_v18 = vpop.f32.mrb[137].mxu0 }
 0x207   :  { %v5268_v63 = vadd.f32 %v5267_v18, %v5266_v10  ;;  %v5269_v3 = vpop.f32.mrb[138].mxu0  ;;  %v5330_v55 = vpop.f32.mrb[136].mxu1 }
 0x208   :  { %v5270_v45 = vpop.f32.mrb[139].mxu0  ;;  %v5331_v21 = vpop.f32.mrb[137].mxu1 }
 0x209   :  { %v3745_v43 = vadd.f32 %v5268_v63, %v7537_v51  ;;  %v5271_v17 = vadd.f32 %v5270_v45, %v5269_v3  ;;  %v5332_v50 = vadd.f32 %v5331_v21, %v5330_v55  ;;  %v5333_v12 = vpop.f32.mrb[138].mxu1 }
 0x20a   :  { %v5334_v61 = vpop.f32.mrb[139].mxu1 }
 0x20b   :  { %v3748_v47 = vadd.f32 %v5271_v17, %v7539_v4  ;;  %v7585_v22 = vadd.f32 %v5332_v50, %v3745_v43  ;;  %v5335_v28 = vadd.f32 %v5334_v61, %v5333_v12 }
 0x20d   :  { %v5272_v30 = vpop.f32.mrb[140].mxu0  ;;  %v7587_v24 = vadd.f32 %v5335_v28, %v3748_v47 }
 0x20e   :  { %v5273_v49 = vpop.f32.mrb[141].mxu0 }
 0x20f   :  { %v5274_v53 = vadd.f32 %v5273_v49, %v5272_v30  ;;  %v5275_v34 = vpop.f32.mrb[142].mxu0  ;;  %v5336_v31 = vpop.f32.mrb[140].mxu1 }
 0x210   :  { %v5276_v46 = vpop.f32.mrb[143].mxu0  ;;  %v5337_v26 = vpop.f32.mrb[141].mxu1 }
 0x211   :  { %v3753_v51 = vadd.f32 %v5274_v53, %v7543_v32  ;;  %v5277_v29 = vadd.f32 %v5276_v46, %v5275_v34  ;;  %v5338_v39 = vadd.f32 %v5337_v26, %v5336_v31  ;;  %v5339_v40 = vpop.f32.mrb[142].mxu1 }
 0x212   :  { %v5340_v58 = vpop.f32.mrb[143].mxu1 }
 0x213   :  { %v3756_v4 = vadd.f32 %v5277_v29, %v7545_v36  ;;  %v7591_v42 = vadd.f32 %v5338_v39, %v3753_v51  ;;  %v5341_v44 = vadd.f32 %v5340_v58, %v5339_v40 }
 0x215   :  { %v5278_v38 = vpop.f32.mrb[144].mxu0  ;;  %v7593_v48 = vadd.f32 %v5341_v44, %v3756_v4 }
 0x216   :  { %v5279_v9 = vpop.f32.mrb[145].mxu0 }
 0x217   :  { %v5280_v20 = vadd.f32 %v5279_v9, %v5278_v38  ;;  %v5281_v8 = vpop.f32.mrb[146].mxu0  ;;  %v5342_v41 = vpop.f32.mrb[144].mxu1 }
 0x218   :  { %v5282_v0 = vpop.f32.mrb[147].mxu0  ;;  %v5343_v59 = vpop.f32.mrb[145].mxu1 }
 0x219   :  { %v3761_v32 = vadd.f32 %v5280_v20, %v7549_v35  ;;  %v5283_v25 = vadd.f32 %v5282_v0, %v5281_v8  ;;  %v5344_v60 = vadd.f32 %v5343_v59, %v5342_v41  ;;  %v5345_v1 = vpop.f32.mrb[146].mxu1 }
 0x21a   :  { %v5346_v23 = vpop.f32.mrb[147].mxu1 }
 0x21b   :  { %v3764_v36 = vadd.f32 %v5283_v25, %v7551_v56  ;;  %v7597_v62 = vadd.f32 %v5344_v60, %v3761_v32  ;;  %v5347_v16 = vadd.f32 %v5346_v23, %v5345_v1 }
 0x21d   :  { %v5284_v2 = vpop.f32.mrb[148].mxu0  ;;  %v7599_v5 = vadd.f32 %v5347_v16, %v3764_v36 }
 0x21e   :  { %v5285_v33 = vpop.f32.mrb[149].mxu0 }
 0x21f   :  { %v5286_v7 = vadd.f32 %v5285_v33, %v5284_v2  ;;  %v5287_v35 = vpop.f32.mrb[150].mxu0  ;;  %v5348_v10 = vpop.f32.mrb[148].mxu1 }
 0x220   :  { %v5288_v18 = vpop.f32.mrb[151].mxu0  ;;  %v5349_v3 = vpop.f32.mrb[149].mxu1 }
 0x221   :  { %v3769_v63 = vadd.f32 %v5286_v7, %v7555_v57  ;;  %v5289_v56 = vadd.f32 %v5288_v18, %v5287_v35  ;;  %v5350_v55 = vadd.f32 %v5349_v3, %v5348_v10  ;;  %v5351_v45 = vpop.f32.mrb[150].mxu1 }
 0x222   :  { %v5352_v17 = vpop.f32.mrb[151].mxu1 }
 0x223   :  { %v3772_v43 = vadd.f32 %v5289_v56, %v7557_v13  ;;  %v7606_v21 = vadd.f32 %v5350_v55, %v3769_v63  ;;  %v5353_v50 = vadd.f32 %v5352_v17, %v5351_v45 }
 0x225   :  { %v5290_v12 = vpop.f32.mrb[152].mxu0  ;;  %v7608_v47 = vadd.f32 %v5353_v50, %v3772_v43 }
 0x226   :  { %v5291_v61 = vpop.f32.mrb[153].mxu0 }
 0x227   :  { %v5292_v28 = vadd.f32 %v5291_v61, %v5290_v12  ;;  %v5293_v30 = vpop.f32.mrb[154].mxu0  ;;  %v5354_v49 = vpop.f32.mrb[152].mxu1 }
 0x228   :  { %v5294_v53 = vpop.f32.mrb[155].mxu0  ;;  %v5355_v31 = vpop.f32.mrb[153].mxu1 }
 0x229   :  { %v3777_v57 = vadd.f32 %v5292_v28, %v7561_v11  ;;  %v5295_v34 = vadd.f32 %v5294_v53, %v5293_v30  ;;  %v5356_v46 = vadd.f32 %v5355_v31, %v5354_v49  ;;  %v5357_v51 = vpop.f32.mrb[154].mxu1 }
 0x22a   :  { %v5358_v29 = vpop.f32.mrb[155].mxu1 }
 0x22b   :  { %v3780_v13 = vadd.f32 %v5295_v34, %v7563_v15  ;;  %v7612_v26 = vadd.f32 %v5356_v46, %v3777_v57  ;;  %v5359_v39 = vadd.f32 %v5358_v29, %v5357_v51 }
 0x22d   :  { %v5296_v40 = vpop.f32.mrb[156].mxu0  ;;  %v7614_v4 = vadd.f32 %v5359_v39, %v3780_v13 }
 0x22e   :  { %v5297_v58 = vpop.f32.mrb[157].mxu0 }
 0x22f   :  { %v5298_v44 = vadd.f32 %v5297_v58, %v5296_v40  ;;  %v5299_v38 = vpop.f32.mrb[158].mxu0  ;;  %v5360_v9 = vpop.f32.mrb[156].mxu1 }
 0x230   :  { %v5300_v20 = vpop.f32.mrb[159].mxu0  ;;  %v5361_v41 = vpop.f32.mrb[157].mxu1 }
 0x231   :  { %v3785_v11 = vadd.f32 %v5298_v44, %v7567_v52  ;;  %v5301_v8 = vadd.f32 %v5300_v20, %v5299_v38  ;;  %v5362_v0 = vadd.f32 %v5361_v41, %v5360_v9  ;;  %v5363_v32 = vpop.f32.mrb[158].mxu1 }
 0x232   :  { %v5364_v25 = vpop.f32.mrb[159].mxu1 }
 0x233   :  { %v3788_v15 = vadd.f32 %v5301_v8, %v7569_v37  ;;  %v7618_v59 = vadd.f32 %v5362_v0, %v3785_v11  ;;  %v5365_v60 = vadd.f32 %v5364_v25, %v5363_v32 }
 0x235   :  { %v5382_v1 = vpop.f32.mrb[160].mxu0  ;;  %v7620_v36 = vadd.f32 %v5365_v60, %v3788_v15 }
 0x236   :  { %v5383_v23 = vpop.f32.mrb[161].mxu0 }
 0x237   :  { %v5384_v16 = vadd.f32 %v5383_v23, %v5382_v1  ;;  %v5385_v2 = vpop.f32.mrb[162].mxu0  ;;  %v5446_v33 = vpop.f32.mrb[160].mxu1 }
 0x238   :  { %v5386_v27 = vpop.f32.mrb[163].mxu0  ;;  %v5447_v35 = vpop.f32.mrb[161].mxu1 }
 0x239   :  { %v3923_v52 = vadd.f32 %v5384_v16, %v7573_v19  ;;  %v5387_v7 = vadd.f32 %v5386_v27, %v5385_v2  ;;  %v5448_v10 = vadd.f32 %v5447_v35, %v5446_v33  ;;  %v5449_v18 = vpop.f32.mrb[162].mxu1 }
 0x23a   :  { %v5450_v63 = vpop.f32.mrb[163].mxu1 }
 0x23b   :  { %v3926_v37 = vadd.f32 %v5387_v7, %v7575_v54  ;;  %v5451_v56 = vadd.f32 %v5450_v63, %v5449_v18  ;;  %v7624_v3 = vadd.f32 %v5448_v10, %v3923_v52 }
 0x23d   :  { %v5388_v55 = vpop.f32.mrb[164].mxu0  ;;  %v7626_v43 = vadd.f32 %v5451_v56, %v3926_v37 }
 0x23e   :  { %v5389_v45 = vpop.f32.mrb[165].mxu0 }
 0x23f   :  { %v5390_v17 = vadd.f32 %v5389_v45, %v5388_v55  ;;  %v5391_v50 = vpop.f32.mrb[166].mxu0  ;;  %v5452_v12 = vpop.f32.mrb[164].mxu1 }
 0x240   :  { %v5392_v61 = vpop.f32.mrb[167].mxu0  ;;  %v5453_v30 = vpop.f32.mrb[165].mxu1 }
 0x241   :  { %v3931_v19 = vadd.f32 %v5390_v17, %v7579_v6  ;;  %v5393_v28 = vadd.f32 %v5392_v61, %v5391_v50  ;;  %v5454_v49 = vadd.f32 %v5453_v30, %v5452_v12  ;;  %v5455_v53 = vpop.f32.mrb[166].mxu1 }
 0x242   :  { %v5456_v57 = vpop.f32.mrb[167].mxu1 }
 0x243   :  { %v3934_v54 = vadd.f32 %v5393_v28, %v7581_v14  ;;  %v5457_v34 = vadd.f32 %v5456_v57, %v5455_v53  ;;  %v7630_v31 = vadd.f32 %v5454_v49, %v3931_v19 }
 0x245   :  { %v5394_v46 = vpop.f32.mrb[168].mxu0  ;;  %v7632_v13 = vadd.f32 %v5457_v34, %v3934_v54 }
 0x246   :  { %v5395_v51 = vpop.f32.mrb[169].mxu0 }
 0x247   :  { %v5396_v29 = vadd.f32 %v5395_v51, %v5394_v46  ;;  %v5397_v39 = vpop.f32.mrb[170].mxu0  ;;  %v5458_v40 = vpop.f32.mrb[168].mxu1 }
 0x248   :  { %v5398_v58 = vpop.f32.mrb[171].mxu0  ;;  %v5459_v38 = vpop.f32.mrb[169].mxu1 }
 0x249   :  { %v3939_v6 = vadd.f32 %v5396_v29, %v7585_v22  ;;  %v5399_v44 = vadd.f32 %v5398_v58, %v5397_v39  ;;  %v5460_v9 = vadd.f32 %v5459_v38, %v5458_v40  ;;  %v5461_v20 = vpop.f32.mrb[170].mxu1 }
 0x24a   :  { %v5462_v11 = vpop.f32.mrb[171].mxu1 }
 0x24b   :  { %v3942_v14 = vadd.f32 %v5399_v44, %v7587_v24  ;;  %v5463_v8 = vadd.f32 %v5462_v11, %v5461_v20  ;;  %v7636_v41 = vadd.f32 %v5460_v9, %v3939_v6 }
 0x24d   :  { %v5400_v0 = vpop.f32.mrb[172].mxu0  ;;  %v7638_v15 = vadd.f32 %v5463_v8, %v3942_v14 }
 0x24e   :  { %v5401_v32 = vpop.f32.mrb[173].mxu0 }
 0x24f   :  { %v5402_v25 = vadd.f32 %v5401_v32, %v5400_v0  ;;  %v5403_v60 = vpop.f32.mrb[174].mxu0  ;;  %v5464_v1 = vpop.f32.mrb[172].mxu1 }
 0x250   :  { %v5404_v23 = vpop.f32.mrb[175].mxu0  ;;  %v5465_v2 = vpop.f32.mrb[173].mxu1 }
 0x251   :  { %v3947_v22 = vadd.f32 %v5402_v25, %v7591_v42  ;;  %v5405_v16 = vadd.f32 %v5404_v23, %v5403_v60  ;;  %v5466_v33 = vadd.f32 %v5465_v2, %v5464_v1  ;;  %v5467_v27 = vpop.f32.mrb[174].mxu1 }
 0x252   :  { %v5468_v52 = vpop.f32.mrb[175].mxu1 }
 0x253   :  { %v3950_v24 = vadd.f32 %v5405_v16, %v7593_v48  ;;  %v5469_v7 = vadd.f32 %v5468_v52, %v5467_v27  ;;  %v7642_v35 = vadd.f32 %v5466_v33, %v3947_v22 }
 0x255   :  { %v5406_v10 = vpop.f32.mrb[176].mxu0  ;;  %v7644_v37 = vadd.f32 %v5469_v7, %v3950_v24 }
 0x256   :  { %v5407_v18 = vpop.f32.mrb[177].mxu0 }
 0x257   :  { %v5408_v63 = vadd.f32 %v5407_v18, %v5406_v10  ;;  %v5409_v56 = vpop.f32.mrb[178].mxu0  ;;  %v5470_v55 = vpop.f32.mrb[176].mxu1 }
 0x258   :  { %v5410_v45 = vpop.f32.mrb[179].mxu0  ;;  %v5471_v50 = vpop.f32.mrb[177].mxu1 }
 0x259   :  { %v3955_v42 = vadd.f32 %v5408_v63, %v7597_v62  ;;  %v5411_v17 = vadd.f32 %v5410_v45, %v5409_v56  ;;  %v5472_v12 = vadd.f32 %v5471_v50, %v5470_v55  ;;  %v5473_v61 = vpop.f32.mrb[178].mxu1 }
 0x25a   :  { %v5474_v19 = vpop.f32.mrb[179].mxu1 }
 0x25b   :  { %v3958_v48 = vadd.f32 %v5411_v17, %v7599_v5  ;;  %v5475_v28 = vadd.f32 %v5474_v19, %v5473_v61  ;;  %v7648_v30 = vadd.f32 %v5472_v12, %v3955_v42 }
 0x25d   :  { %v5412_v49 = vpop.f32.mrb[180].mxu0  ;;  %v7650_v54 = vadd.f32 %v5475_v28, %v3958_v48 }
 0x25e   :  { %v5413_v53 = vpop.f32.mrb[181].mxu0 }
 0x25f   :  { %v5414_v57 = vadd.f32 %v5413_v53, %v5412_v49  ;;  %v5415_v34 = vpop.f32.mrb[182].mxu0  ;;  %v5476_v46 = vpop.f32.mrb[180].mxu1 }
 0x260   :  { %v5416_v51 = vpop.f32.mrb[183].mxu0  ;;  %v5477_v39 = vpop.f32.mrb[181].mxu1 }
 0x261   :  { %v3963_v62 = vadd.f32 %v5414_v57, %v7606_v21  ;;  %v5417_v29 = vadd.f32 %v5416_v51, %v5415_v34  ;;  %v5478_v40 = vadd.f32 %v5477_v39, %v5476_v46  ;;  %v5479_v58 = vpop.f32.mrb[182].mxu1 }
 0x262   :  { %v5480_v6 = vpop.f32.mrb[183].mxu1 }
 0x263   :  { %v3966_v5 = vadd.f32 %v5417_v29, %v7608_v47  ;;  %v5481_v44 = vadd.f32 %v5480_v6, %v5479_v58  ;;  %v7654_v38 = vadd.f32 %v5478_v40, %v3963_v62 }
 0x265   :  { %v5418_v9 = vpop.f32.mrb[184].mxu0  ;;  %v7656_v14 = vadd.f32 %v5481_v44, %v3966_v5 }
 0x266   :  { %v5419_v20 = vpop.f32.mrb[185].mxu0 }
 0x267   :  { %v5420_v11 = vadd.f32 %v5419_v20, %v5418_v9  ;;  %v5421_v8 = vpop.f32.mrb[186].mxu0  ;;  %v5482_v0 = vpop.f32.mrb[184].mxu1 }
 0x268   :  { %v5422_v32 = vpop.f32.mrb[187].mxu0  ;;  %v5483_v60 = vpop.f32.mrb[185].mxu1 }
 0x269   :  { %v3971_v21 = vadd.f32 %v5420_v11, %v7612_v26  ;;  %v5423_v25 = vadd.f32 %v5422_v32, %v5421_v8  ;;  %v5484_v1 = vadd.f32 %v5483_v60, %v5482_v0  ;;  %v5485_v23 = vpop.f32.mrb[186].mxu1 }
 0x26a   :  { %v5486_v22 = vpop.f32.mrb[187].mxu1 }
 0x26b   :  { %v3974_v47 = vadd.f32 %v5423_v25, %v7614_v4  ;;  %v5487_v16 = vadd.f32 %v5486_v22, %v5485_v23  ;;  %v7660_v2 = vadd.f32 %v5484_v1, %v3971_v21 }
 0x26d   :  { %v5424_v33 = vpop.f32.mrb[188].mxu0  ;;  %v7662_v24 = vadd.f32 %v5487_v16, %v3974_v47 }
 0x26e   :  { %v5425_v27 = vpop.f32.mrb[189].mxu0 }
 0x26f   :  { %v5426_v52 = vadd.f32 %v5425_v27, %v5424_v33  ;;  %v5427_v7 = vpop.f32.mrb[190].mxu0  ;;  %v5488_v10 = vpop.f32.mrb[188].mxu1 }
 0x270   :  { %v5428_v18 = vpop.f32.mrb[191].mxu0  ;;  %v5489_v56 = vpop.f32.mrb[189].mxu1 }
 0x271   :  { %v3979_v26 = vadd.f32 %v5426_v52, %v7618_v59  ;;  %v5429_v63 = vadd.f32 %v5428_v18, %v5427_v7  ;;  %v5490_v55 = vadd.f32 %v5489_v56, %v5488_v10  ;;  %v5491_v45 = vpop.f32.mrb[190].mxu1 }
 0x272   :  { %v5492_v42 = vpop.f32.mrb[191].mxu1 }
 0x273   :  { %v3982_v4 = vadd.f32 %v5429_v63, %v7620_v36  ;;  %v5493_v17 = vadd.f32 %v5492_v42, %v5491_v45  ;;  %v7666_v50 = vadd.f32 %v5490_v55, %v3979_v26 }
 0x275   :  { %v5534_v12 = vpop.f32.mrb[192].mxu0  ;;  %v7669_v19 = vadd.f32 %v5493_v17, %v3982_v4 }
 0x276   :  { %v4125_v61 = vadd.f32 %v5534_v12, %v7630_v31  ;;  %v4116_v48 = vpop.f32.mrb[193].mxu0 }
 0x277   :  { %v4117_v28 = vadd.f32 %v4116_v48, %v7624_v3  ;;  %v5535_v49 = vpop.f32.mrb[194].mxu0 }
 0x278   :  { %v4197_v59 = vmul.f32 0.01, %v4125_v61  ;;  %v4128_v53 = vadd.f32 %v5535_v49, %v7632_v13  ;;  %v4119_v57 = vpop.f32.mrb[195].mxu0  ;;  %vm4181_vm1 = vcmp.ge.f32.partialorder %v4125_v61, 0.0 }
 0x279   :  { %v4195_v34 = vmul.f32 0.01, %v4117_v28  ;;  %v4120_v36 = vadd.f32 %v4119_v57, %v7626_v43  ;;  %vm4179_vm2 = vcmp.ge.f32.partialorder %v4117_v28, 0.0 }
 0x27a   :  { %vm4182_vm3 = vcmp.ge.f32.partialorder %v4128_v53, 0.0  ;;  %v4198_v46 = vmul.f32 0.01, %v4128_v53  ;;  %v4213_v31 = vsel %vm4181_vm1, %v4125_v61, %v4197_v59 }
 0x27b   :  { %vm4180_vm4 = vcmp.ge.f32.partialorder %v4120_v36, 0.0  ;;  %v4196_v51 = vmul.f32 0.01, %v4120_v36  ;;  %v4211_v39 = vsel %vm4179_vm2, %v4117_v28, %v4195_v34 }
 0x27c   :  { %v4214_v62 = vsel %vm4182_vm3, %v4128_v53, %v4198_v46 }
 0x27d   :  { %v5538_v29 = vpop.f32.mrb[196].mxu0  ;;  %v4212_v40 = vsel %vm4180_vm4, %v4120_v36, %v4196_v51  ;;  %v5587_v3 = vpack.c.bf16 %v4214_v62, %v4213_v31  ;;  %v4239_v36 = vpop.permute.xlu1 %4238 }
 0x27e   :  { %v4141_v58 = vadd.f32 %v5538_v29, %v7642_v35  ;;  %v4132_v5 = vpop.f32.mrb[197].mxu0  ;;  %v5583_v13 = vpack.c.bf16 %v4212_v40, %v4211_v39  ;;  %v4234_v51 = vpop.permute.xlu0 %4233 }
 0x27f   :  { %v4133_v6 = vadd.f32 %v4132_v5, %v7636_v41  ;;  %v5539_v44 = vpop.f32.mrb[198].mxu0 }
 0x280   :  { %v4201_v9 = vmul.f32 0.01, %v4141_v58  ;;  %v4144_v43 = vadd.f32 %v5539_v44, %v7644_v37  ;;  %v4135_v20 = vpop.f32.mrb[199].mxu0  ;;  %5584 = vmatprep.subr.bf16.mxu1 %v5583_v13  ;;  %vm4185_vm5 = vcmp.ge.f32.partialorder %v4141_v58, 0.0 }
 0x281   :  { %v4199_v11 = vmul.f32 0.01, %v4133_v6  ;;  %v4136_v8 = vadd.f32 %v4135_v20, %v7638_v15  ;;  %5586 = vmatpush3.bf16.msra.mxu1 %v5583_v13  ;;  %vm4183_vm6 = vcmp.ge.f32.partialorder %v4133_v6, 0.0 }
 0x282   :  { %vm4186_vm7 = vcmp.ge.f32.partialorder %v4144_v43, 0.0  ;;  %v4202_v0 = vmul.f32 0.01, %v4144_v43  ;;  %5588 = vmatprep.subr.bf16.mxu1 %v5587_v3  ;;  %v4217_v32 = vsel %vm4185_vm5, %v4141_v58, %v4201_v9 }
 0x283   :  { %vm4184_vm8 = vcmp.ge.f32.partialorder %v4136_v8, 0.0  ;;  %v4200_v35 = vmul.f32 0.01, %v4136_v8  ;;  %v4215_v25 = vsel %vm4183_vm6, %v4133_v6, %v4199_v11 }
 0x284   :  { %v4218_v21 = vsel %vm4186_vm7, %v4144_v43, %v4202_v0 }
 0x285   :  { %v5542_v41 = vpop.f32.mrb[200].mxu0  ;;  %5590 = vmatpush3.bf16.msra.mxu1 %v5587_v3  ;;  %v4216_v60 = vsel %vm4184_vm8, %v4136_v8, %v4200_v35  ;;  %v5595_v37 = vpack.c.bf16 %v4218_v21, %v4217_v32 }
 0x286   :  { %v4157_v1 = vadd.f32 %v5542_v41, %v7654_v38  ;;  %v4148_v23 = vpop.f32.mrb[201].mxu0  ;;  %v5591_v47 = vpack.c.bf16 %v4216_v60, %v4215_v25 }
 0x287   :  { %v4149_v15 = vadd.f32 %v4148_v23, %v7648_v30  ;;  %v5543_v22 = vpop.f32.mrb[202].mxu0 }
 0x288   :  { %v4205_v16 = vmul.f32 0.01, %v4157_v1  ;;  %v4160_v33 = vadd.f32 %v5543_v22, %v7656_v14  ;;  %v4151_v27 = vpop.f32.mrb[203].mxu0  ;;  %5592 = vmatprep.subr.bf16.mxu1 %v5591_v47  ;;  %vm4189_vm9 = vcmp.ge.f32.partialorder %v4157_v1, 0.0 }
 0x289   :  { %v4203_v52 = vmul.f32 0.01, %v4149_v15  ;;  %v4152_v7 = vadd.f32 %v4151_v27, %v7650_v54  ;;  %5594 = vmatpush3.bf16.msra.mxu1 %v5591_v47  ;;  %vm4187_vm10 = vcmp.ge.f32.partialorder %v4149_v15, 0.0 }
 0x28a   :  { %vm4190_vm11 = vcmp.ge.f32.partialorder %v4160_v33, 0.0  ;;  %v4206_v10 = vmul.f32 0.01, %v4160_v33  ;;  %5596 = vmatprep.subr.bf16.mxu1 %v5595_v37  ;;  %v4221_v18 = vsel %vm4189_vm9, %v4157_v1, %v4205_v16 }
 0x28b   :  { %vm4188_vm12 = vcmp.ge.f32.partialorder %v4152_v7, 0.0  ;;  %v4204_v38 = vmul.f32 0.01, %v4152_v7  ;;  %v4219_v63 = vsel %vm4187_vm10, %v4149_v15, %v4203_v52 }
 0x28c   :  { %v4222_v26 = vsel %vm4190_vm11, %v4160_v33, %v4206_v10 }
 0x28d   :  { %v5546_v30 = vpop.f32.mrb[204].mxu0  ;;  %5598 = vmatpush3.bf16.msra.mxu1 %v5595_v37  ;;  %v4220_v56 = vsel %vm4188_vm12, %v4152_v7, %v4204_v38  ;;  %v5603_v14 = vpack.c.bf16 %v4222_v26, %v4221_v18 }
 0x28e   :  { %v4173_v55 = vadd.f32 %v5546_v30, %v7666_v50  ;;  %v4164_v45 = vpop.f32.mrb[205].mxu0  ;;  %v5599_v4 = vpack.c.bf16 %v4220_v56, %v4219_v63 }
 0x28f   :  { %v4165_v54 = vadd.f32 %v4164_v45, %v7660_v2  ;;  %v5547_v42 = vpop.f32.mrb[206].mxu0 }
 0x290   :  { %v4209_v17 = vmul.f32 0.01, %v4173_v55  ;;  %v4176_v12 = vadd.f32 %v5547_v42, %v7669_v19  ;;  %v4167_v61 = vpop.f32.mrb[207].mxu0  ;;  %5600 = vmatprep.subr.bf16.mxu1 %v5599_v4  ;;  %vm4193_vm13 = vcmp.ge.f32.partialorder %v4173_v55, 0.0 }
 0x291   :  { %v4207_v48 = vmul.f32 0.01, %v4165_v54  ;;  %v4168_v28 = vadd.f32 %v4167_v61, %v7662_v24  ;;  %5602 = vmatpush3.bf16.msra.mxu1 %v5599_v4  ;;  %vm4191_vm14 = vcmp.ge.f32.partialorder %v4165_v54, 0.0  ;;  %v4228_v24 = vld [vmem:[%s7699_s3 + $0x8] sm:$0x3] }
 0x292   :  { %vm4194_vm15 = vcmp.ge.f32.partialorder %v4176_v12, 0.0  ;;  %v4210_v49 = vmul.f32 0.01, %v4176_v12  ;;  %5604 = vmatprep.subr.bf16.mxu1 %v5603_v14  ;;  %v4225_v59 = vsel %vm4193_vm13, %v4173_v55, %v4209_v17 }
 0x293   :  { %vm4192_vm0 = vcmp.ge.f32.partialorder %v4168_v28, 0.0  ;;  %v4208_v50 = vmul.f32 0.01, %v4168_v28  ;;  %v4223_v2 = vsel %vm4191_vm14, %v4165_v54, %v4207_v48 }
 0x294   :  { %v4226_v53 = vsel %vm4194_vm15, %v4176_v12, %v4210_v49 }
 0x295   :  { %5606 = vmatpush3.bf16.msra.mxu1 %v5603_v14  ;;  %v4224_v57 = vsel %vm4192_vm0, %v4168_v28, %v4208_v50  ;;  %v5611_v34 = vpack.c.bf16 %v4226_v53, %v4225_v59 }
 0x296   :  { %v5607_v19 = vpack.c.bf16 %v4224_v57, %v4223_v2 }
 0x298   :  { %5608 = vmatprep.subr.bf16.mxu1 %v5607_v19 }
 0x299   :  { %5610 = vmatpush3.bf16.msra.mxu1 %v5607_v19 }
 0x29a   :  { %5612 = vmatprep.subr.bf16.mxu1 %v5611_v34 }
 0x29d   :  { %5614 = vmatpush3.bf16.msra.mxu1 %v5611_v34 }
 0x2a0   :  { %5581 = vmatmul.mubr.f32.vlgmr.msra.gmra.mrb[192].mxu1 %v4228_v24 }
 0x373   :  { %v5582_v46 = vpop.f32.mrb[192].mxu1 }
 0x374   :  { %v4313_v31 = vadd.f32 %v5582_v46, %v4239_v36  ;;  %v4307_v62 = vpop.f32.mrb[193].mxu1 }
 0x375   :  { %v4308_v29 = vadd.f32 %v4307_v62, %v4234_v51 }
 0x376   :  { %4317 = vst [vmem:[%s7700_s5 + $0x8] sm:$0x3] %v4313_v31 }
 0x377   :  { %4316 = vst [vmem:[%s7700_s5] sm:$0xff] %v4308_v29 }

</bundles_post_ra>
